<compile_context>
chip_gen: v7x
topology: tpu7x:2x2x1
jax: 0.10.0
libtpu: 0.0.40
codegen_flags: <defaults>
</compile_context>

<pallas_src>
import jax
import jax.numpy as jnp
from jax.experimental import pallas as pl
from jax.experimental.pallas import tpu as pltpu


def conv_unshuffle_kernel(w_ref, x_ref, o_ref):
    # w_ref: SMEM (Cout*Cin*9,) f32   -- flattened OIHW conv weights (scalar reads)
    # x_ref: VMEM (1, 2, 2, Cin, H/2+1, W/2+1)  parity-split, zero-padded input
    #        x_ref[0, ra, rb, ci, i, j] == x_pad[ci, 2*i + ra, 2*j + rb]
    # o_ref: VMEM (1, 4, H/2, W/2)    -- the 4 unshuffled channels of conv-channel `co`
    co = pl.program_id(1)
    _, _, _, Cin, Hp2, Wp2 = x_ref.shape
    H2, W2 = Hp2 - 1, Wp2 - 1
    w_base = co * (Cin * 9)

    # out[4*co + 2*dr + dc, h2, w2] =
    #   sum_{ci,di,dj} w[co,ci,di,dj] * x_pad[ci, 2*h2 + dr + di, 2*w2 + dc + dj]
    # With a = dr+di = 2*qa + ra and b = dc+dj = 2*qb + rb, each tap is the
    # unit-stride slab xs[ra, rb, ci, qa:qa+H2, qb:qb+W2].
    for dr in range(2):
        for dc in range(2):
            acc = jnp.zeros((H2, W2), jnp.float32)
            for ci in range(Cin):
                for di in range(3):
                    for dj in range(3):
                        a = dr + di
                        b = dc + dj
                        ra, qa = a & 1, a >> 1
                        rb, qb = b & 1, b >> 1
                        wv = w_ref[w_base + ci * 9 + di * 3 + dj]
                        patch = x_ref[0, ra, rb, ci, qa:qa + H2, qb:qb + W2]
                        acc = acc + wv * patch
            o_ref[0, 2 * dr + dc, :, :] = acc.astype(o_ref.dtype)


def downsample(x_nchw, w_oihw):
    """Conv2d(C, C//2, 3, padding=1, bias=False) followed by PixelUnshuffle(2)."""
    N, C, H, W = x_nchw.shape
    Cout = w_oihw.shape[0]
    assert Cout == C // 2 and H % 2 == 0 and W % 2 == 0
    H2, W2 = H // 2, W // 2
    Hp2, Wp2 = H2 + 1, W2 + 1

    # Input prep (single fused XLA pass over x): zero-pad the 1-px halo and split the
    # padded image into its 4 (row, col) parity planes, NCHW stays channel-major so
    # the lane dim is spatial.
    x_pad = jnp.pad(x_nchw, ((0, 0), (0, 0), (1, 1), (1, 1)))
    xs = x_pad.reshape(N, C, Hp2, 2, Wp2, 2)
    xs = jnp.transpose(xs, (0, 3, 5, 1, 2, 4))  # (N, 2, 2, C, Hp2, Wp2)

    # Flattened weights -> SMEM scalars (next_pow2 padding only; no (3,3) lane waste).
    w_flat = w_oihw.astype(jnp.float32).reshape(-1)  # (Cout*C*9,)

    out = pl.pallas_call(
        conv_unshuffle_kernel,
        out_shape=jax.ShapeDtypeStruct((N, 4 * Cout, H2, W2), x_nchw.dtype),
        grid=(N, Cout),
        in_specs=[
            pl.BlockSpec(memory_space=pltpu.MemorySpace.SMEM),
            pl.BlockSpec((1, 2, 2, C, Hp2, Wp2),
                         lambda n, co: (n, 0, 0, 0, 0, 0)),
        ],
        out_specs=pl.BlockSpec((1, 4, H2, W2), lambda n, co: (n, co, 0, 0)),
        compiler_params=pltpu.CompilerParams(
            dimension_semantics=("parallel", "parallel")),
    )(w_flat, xs)
    return out


def _pixel_unshuffle_ref(x_nchw, r=2):
    """Reference PixelUnshuffle (XLA), used only for the correctness check."""
    N, C, H, W = x_nchw.shape
    x = x_nchw.reshape(N, C, H // r, r, W // r, r)
    x = jnp.transpose(x, (0, 1, 3, 5, 2, 4))
    return x.reshape(N, C * r * r, H // r, W // r)


if __name__ == "__main__":
    key = jax.random.PRNGKey(0)
    kx, kw = jax.random.split(key)

    N, C, H, W = 2, 4, 16, 16
    x = jax.random.normal(kx, (N, C, H, W), dtype=jnp.float32)
    # Conv2d(channels, channels//2, 3, padding=1, bias=False) -> weight (C//2, C, 3, 3)
    w = jax.random.normal(kw, (C // 2, C, 3, 3), dtype=jnp.float32) * 0.1

    out = downsample(x, w)
    out = jax.block_until_ready(out)

    # Reference: XLA conv + PixelUnshuffle.
    ref_conv = jax.lax.conv_general_dilated(
        x, w, window_strides=(1, 1), padding=((1, 1), (1, 1)),
        dimension_numbers=("NCHW", "OIHW", "NCHW"))
    ref = _pixel_unshuffle_ref(ref_conv, 2)

    assert out.shape == (N, 2 * C, H // 2, W // 2), out.shape
    assert jnp.allclose(out, ref, atol=1e-4, rtol=1e-4), "mismatch vs reference"

    print("KERNEL_OK")
</pallas_src>

<mosaic_0001>
module attributes {stable_mosaic.version = 11 : i64} {
  func.func @conv_unshuffle_kernel(%arg0: i32, %arg1: i32, %arg2: memref<72xf32, #tpu.memory_space<smem>>, %arg3: memref<1x2x2x4x9x9xf32, #tpu.memory_space<vmem>>, %arg4: memref<1x4x8x8xf32, #tpu.memory_space<vmem>>) attributes {dimension_semantics = [#tpu.dimension_semantics<parallel>, #tpu.dimension_semantics<parallel>], iteration_bounds = array<i64: 2, 2>, scalar_prefetch = 0 : i64, scratch_operands = 0 : i64, tpu.core_type = #tpu.core_type<tc>, window_params = [{transform_indices = @transform_0, window_bounds = array<i64: 72>}, {transform_indices = @transform_1, window_bounds = array<i64: 1, 2, 2, 4, 9, 9>}, {transform_indices = @transform_2, window_bounds = array<i64: 1, 4, 8, 8>}]} {
    %c36_i32 = arith.constant 36 : i32
    %0 = arith.muli %arg1, %c36_i32 : i32
    %cst = arith.constant 0.000000e+00 : f32
    %1 = vector.broadcast %cst : f32 to vector<8x8xf32>
    %c0_i32 = arith.constant 0 : i32
    %2 = arith.addi %0, %c0_i32 : i32
    %c0_i32_0 = arith.constant 0 : i32
    %3 = arith.addi %2, %c0_i32_0 : i32
    %c0_i32_1 = arith.constant 0 : i32
    %4 = arith.addi %3, %c0_i32_1 : i32
    %5 = arith.index_cast %4 : i32 to index
    %6 = memref.load %arg2[%5] : memref<72xf32, #tpu.memory_space<smem>>
    %c0 = arith.constant 0 : index
    %c0_2 = arith.constant 0 : index
    %c0_3 = arith.constant 0 : index
    %c0_4 = arith.constant 0 : index
    %c0_5 = arith.constant 0 : index
    %c0_6 = arith.constant 0 : index
    %7 = vector.load %arg3[%c0, %c0_2, %c0_3, %c0_4, %c0_5, %c0_6] : memref<1x2x2x4x9x9xf32, #tpu.memory_space<vmem>>, vector<1x1x1x1x8x8xf32>
    %8 = vector.shape_cast %7 : vector<1x1x1x1x8x8xf32> to vector<8x8xf32>
    %9 = vector.broadcast %6 : f32 to vector<8x8xf32>
    %10 = arith.mulf %9, %8 : vector<8x8xf32>
    %11 = arith.addf %1, %10 : vector<8x8xf32>
    %c0_i32_7 = arith.constant 0 : i32
    %12 = arith.addi %0, %c0_i32_7 : i32
    %c0_i32_8 = arith.constant 0 : i32
    %13 = arith.addi %12, %c0_i32_8 : i32
    %c1_i32 = arith.constant 1 : i32
    %14 = arith.addi %13, %c1_i32 : i32
    %15 = arith.index_cast %14 : i32 to index
    %16 = memref.load %arg2[%15] : memref<72xf32, #tpu.memory_space<smem>>
    %c0_9 = arith.constant 0 : index
    %c0_10 = arith.constant 0 : index
    %c1 = arith.constant 1 : index
    %c0_11 = arith.constant 0 : index
    %c0_12 = arith.constant 0 : index
    %c0_13 = arith.constant 0 : index
    %17 = vector.load %arg3[%c0_9, %c0_10, %c1, %c0_11, %c0_12, %c0_13] : memref<1x2x2x4x9x9xf32, #tpu.memory_space<vmem>>, vector<1x1x1x1x8x8xf32>
    %18 = vector.shape_cast %17 : vector<1x1x1x1x8x8xf32> to vector<8x8xf32>
    %19 = vector.broadcast %16 : f32 to vector<8x8xf32>
    %20 = arith.mulf %19, %18 : vector<8x8xf32>
    %21 = arith.addf %11, %20 : vector<8x8xf32>
    %c0_i32_14 = arith.constant 0 : i32
    %22 = arith.addi %0, %c0_i32_14 : i32
    %c0_i32_15 = arith.constant 0 : i32
    %23 = arith.addi %22, %c0_i32_15 : i32
    %c2_i32 = arith.constant 2 : i32
    %24 = arith.addi %23, %c2_i32 : i32
    %25 = arith.index_cast %24 : i32 to index
    %26 = memref.load %arg2[%25] : memref<72xf32, #tpu.memory_space<smem>>
    %c0_16 = arith.constant 0 : index
    %c0_17 = arith.constant 0 : index
    %c0_18 = arith.constant 0 : index
    %c0_19 = arith.constant 0 : index
    %c0_20 = arith.constant 0 : index
    %c1_21 = arith.constant 1 : index
    %27 = vector.load %arg3[%c0_16, %c0_17, %c0_18, %c0_19, %c0_20, %c1_21] : memref<1x2x2x4x9x9xf32, #tpu.memory_space<vmem>>, vector<1x1x1x1x8x8xf32>
    %28 = vector.shape_cast %27 : vector<1x1x1x1x8x8xf32> to vector<8x8xf32>
    %29 = vector.broadcast %26 : f32 to vector<8x8xf32>
    %30 = arith.mulf %29, %28 : vector<8x8xf32>
    %31 = arith.addf %21, %30 : vector<8x8xf32>
    %c0_i32_22 = arith.constant 0 : i32
    %32 = arith.addi %0, %c0_i32_22 : i32
    %c3_i32 = arith.constant 3 : i32
    %33 = arith.addi %32, %c3_i32 : i32
    %c0_i32_23 = arith.constant 0 : i32
    %34 = arith.addi %33, %c0_i32_23 : i32
    %35 = arith.index_cast %34 : i32 to index
    %36 = memref.load %arg2[%35] : memref<72xf32, #tpu.memory_space<smem>>
    %c0_24 = arith.constant 0 : index
    %c1_25 = arith.constant 1 : index
    %c0_26 = arith.constant 0 : index
    %c0_27 = arith.constant 0 : index
    %c0_28 = arith.constant 0 : index
    %c0_29 = arith.constant 0 : index
    %37 = vector.load %arg3[%c0_24, %c1_25, %c0_26, %c0_27, %c0_28, %c0_29] : memref<1x2x2x4x9x9xf32, #tpu.memory_space<vmem>>, vector<1x1x1x1x8x8xf32>
    %38 = vector.shape_cast %37 : vector<1x1x1x1x8x8xf32> to vector<8x8xf32>
    %39 = vector.broadcast %36 : f32 to vector<8x8xf32>
    %40 = arith.mulf %39, %38 : vector<8x8xf32>
    %41 = arith.addf %31, %40 : vector<8x8xf32>
    %c0_i32_30 = arith.constant 0 : i32
    %42 = arith.addi %0, %c0_i32_30 : i32
    %c3_i32_31 = arith.constant 3 : i32
    %43 = arith.addi %42, %c3_i32_31 : i32
    %c1_i32_32 = arith.constant 1 : i32
    %44 = arith.addi %43, %c1_i32_32 : i32
    %45 = arith.index_cast %44 : i32 to index
    %46 = memref.load %arg2[%45] : memref<72xf32, #tpu.memory_space<smem>>
    %c0_33 = arith.constant 0 : index
    %c1_34 = arith.constant 1 : index
    %c1_35 = arith.constant 1 : index
    %c0_36 = arith.constant 0 : index
    %c0_37 = arith.constant 0 : index
    %c0_38 = arith.constant 0 : index
    %47 = vector.load %arg3[%c0_33, %c1_34, %c1_35, %c0_36, %c0_37, %c0_38] : memref<1x2x2x4x9x9xf32, #tpu.memory_space<vmem>>, vector<1x1x1x1x8x8xf32>
    %48 = vector.shape_cast %47 : vector<1x1x1x1x8x8xf32> to vector<8x8xf32>
    %49 = vector.broadcast %46 : f32 to vector<8x8xf32>
    %50 = arith.mulf %49, %48 : vector<8x8xf32>
    %51 = arith.addf %41, %50 : vector<8x8xf32>
    %c0_i32_39 = arith.constant 0 : i32
    %52 = arith.addi %0, %c0_i32_39 : i32
    %c3_i32_40 = arith.constant 3 : i32
    %53 = arith.addi %52, %c3_i32_40 : i32
    %c2_i32_41 = arith.constant 2 : i32
    %54 = arith.addi %53, %c2_i32_41 : i32
    %55 = arith.index_cast %54 : i32 to index
    %56 = memref.load %arg2[%55] : memref<72xf32, #tpu.memory_space<smem>>
    %c0_42 = arith.constant 0 : index
    %c1_43 = arith.constant 1 : index
    %c0_44 = arith.constant 0 : index
    %c0_45 = arith.constant 0 : index
    %c0_46 = arith.constant 0 : index
    %c1_47 = arith.constant 1 : index
    %57 = vector.load %arg3[%c0_42, %c1_43, %c0_44, %c0_45, %c0_46, %c1_47] : memref<1x2x2x4x9x9xf32, #tpu.memory_space<vmem>>, vector<1x1x1x1x8x8xf32>
    %58 = vector.shape_cast %57 : vector<1x1x1x1x8x8xf32> to vector<8x8xf32>
    %59 = vector.broadcast %56 : f32 to vector<8x8xf32>
    %60 = arith.mulf %59, %58 : vector<8x8xf32>
    %61 = arith.addf %51, %60 : vector<8x8xf32>
    %c0_i32_48 = arith.constant 0 : i32
    %62 = arith.addi %0, %c0_i32_48 : i32
    %c6_i32 = arith.constant 6 : i32
    %63 = arith.addi %62, %c6_i32 : i32
    %c0_i32_49 = arith.constant 0 : i32
    %64 = arith.addi %63, %c0_i32_49 : i32
    %65 = arith.index_cast %64 : i32 to index
    %66 = memref.load %arg2[%65] : memref<72xf32, #tpu.memory_space<smem>>
    %c0_50 = arith.constant 0 : index
    %c0_51 = arith.constant 0 : index
    %c0_52 = arith.constant 0 : index
    %c0_53 = arith.constant 0 : index
    %c1_54 = arith.constant 1 : index
    %c0_55 = arith.constant 0 : index
    %67 = vector.load %arg3[%c0_50, %c0_51, %c0_52, %c0_53, %c1_54, %c0_55] : memref<1x2x2x4x9x9xf32, #tpu.memory_space<vmem>>, vector<1x1x1x1x8x8xf32>
    %68 = vector.shape_cast %67 : vector<1x1x1x1x8x8xf32> to vector<8x8xf32>
    %69 = vector.broadcast %66 : f32 to vector<8x8xf32>
    %70 = arith.mulf %69, %68 : vector<8x8xf32>
    %71 = arith.addf %61, %70 : vector<8x8xf32>
    %c0_i32_56 = arith.constant 0 : i32
    %72 = arith.addi %0, %c0_i32_56 : i32
    %c6_i32_57 = arith.constant 6 : i32
    %73 = arith.addi %72, %c6_i32_57 : i32
    %c1_i32_58 = arith.constant 1 : i32
    %74 = arith.addi %73, %c1_i32_58 : i32
    %75 = arith.index_cast %74 : i32 to index
    %76 = memref.load %arg2[%75] : memref<72xf32, #tpu.memory_space<smem>>
    %c0_59 = arith.constant 0 : index
    %c0_60 = arith.constant 0 : index
    %c1_61 = arith.constant 1 : index
    %c0_62 = arith.constant 0 : index
    %c1_63 = arith.constant 1 : index
    %c0_64 = arith.constant 0 : index
    %77 = vector.load %arg3[%c0_59, %c0_60, %c1_61, %c0_62, %c1_63, %c0_64] : memref<1x2x2x4x9x9xf32, #tpu.memory_space<vmem>>, vector<1x1x1x1x8x8xf32>
    %78 = vector.shape_cast %77 : vector<1x1x1x1x8x8xf32> to vector<8x8xf32>
    %79 = vector.broadcast %76 : f32 to vector<8x8xf32>
    %80 = arith.mulf %79, %78 : vector<8x8xf32>
    %81 = arith.addf %71, %80 : vector<8x8xf32>
    %c0_i32_65 = arith.constant 0 : i32
    %82 = arith.addi %0, %c0_i32_65 : i32
    %c6_i32_66 = arith.constant 6 : i32
    %83 = arith.addi %82, %c6_i32_66 : i32
    %c2_i32_67 = arith.constant 2 : i32
    %84 = arith.addi %83, %c2_i32_67 : i32
    %85 = arith.index_cast %84 : i32 to index
    %86 = memref.load %arg2[%85] : memref<72xf32, #tpu.memory_space<smem>>
    %c0_68 = arith.constant 0 : index
    %c0_69 = arith.constant 0 : index
    %c0_70 = arith.constant 0 : index
    %c0_71 = arith.constant 0 : index
    %c1_72 = arith.constant 1 : index
    %c1_73 = arith.constant 1 : index
    %87 = vector.load %arg3[%c0_68, %c0_69, %c0_70, %c0_71, %c1_72, %c1_73] : memref<1x2x2x4x9x9xf32, #tpu.memory_space<vmem>>, vector<1x1x1x1x8x8xf32>
    %88 = vector.shape_cast %87 : vector<1x1x1x1x8x8xf32> to vector<8x8xf32>
    %89 = vector.broadcast %86 : f32 to vector<8x8xf32>
    %90 = arith.mulf %89, %88 : vector<8x8xf32>
    %91 = arith.addf %81, %90 : vector<8x8xf32>
    %c9_i32 = arith.constant 9 : i32
    %92 = arith.addi %0, %c9_i32 : i32
    %c0_i32_74 = arith.constant 0 : i32
    %93 = arith.addi %92, %c0_i32_74 : i32
    %c0_i32_75 = arith.constant 0 : i32
    %94 = arith.addi %93, %c0_i32_75 : i32
    %95 = arith.index_cast %94 : i32 to index
    %96 = memref.load %arg2[%95] : memref<72xf32, #tpu.memory_space<smem>>
    %c0_76 = arith.constant 0 : index
    %c0_77 = arith.constant 0 : index
    %c0_78 = arith.constant 0 : index
    %c1_79 = arith.constant 1 : index
    %c0_80 = arith.constant 0 : index
    %c0_81 = arith.constant 0 : index
    %97 = vector.load %arg3[%c0_76, %c0_77, %c0_78, %c1_79, %c0_80, %c0_81] : memref<1x2x2x4x9x9xf32, #tpu.memory_space<vmem>>, vector<1x1x1x1x8x8xf32>
    %98 = vector.shape_cast %97 : vector<1x1x1x1x8x8xf32> to vector<8x8xf32>
    %99 = vector.broadcast %96 : f32 to vector<8x8xf32>
    %100 = arith.mulf %99, %98 : vector<8x8xf32>
    %101 = arith.addf %91, %100 : vector<8x8xf32>
    %c9_i32_82 = arith.constant 9 : i32
    %102 = arith.addi %0, %c9_i32_82 : i32
    %c0_i32_83 = arith.constant 0 : i32
    %103 = arith.addi %102, %c0_i32_83 : i32
    %c1_i32_84 = arith.constant 1 : i32
    %104 = arith.addi %103, %c1_i32_84 : i32
    %105 = arith.index_cast %104 : i32 to index
    %106 = memref.load %arg2[%105] : memref<72xf32, #tpu.memory_space<smem>>
    %c0_85 = arith.constant 0 : index
    %c0_86 = arith.constant 0 : index
    %c1_87 = arith.constant 1 : index
    %c1_88 = arith.constant 1 : index
    %c0_89 = arith.constant 0 : index
    %c0_90 = arith.constant 0 : index
    %107 = vector.load %arg3[%c0_85, %c0_86, %c1_87, %c1_88, %c0_89, %c0_90] : memref<1x2x2x4x9x9xf32, #tpu.memory_space<vmem>>, vector<1x1x1x1x8x8xf32>
    %108 = vector.shape_cast %107 : vector<1x1x1x1x8x8xf32> to vector<8x8xf32>
    %109 = vector.broadcast %106 : f32 to vector<8x8xf32>
    %110 = arith.mulf %109, %108 : vector<8x8xf32>
    %111 = arith.addf %101, %110 : vector<8x8xf32>
    %c9_i32_91 = arith.constant 9 : i32
    %112 = arith.addi %0, %c9_i32_91 : i32
    %c0_i32_92 = arith.constant 0 : i32
    %113 = arith.addi %112, %c0_i32_92 : i32
    %c2_i32_93 = arith.constant 2 : i32
    %114 = arith.addi %113, %c2_i32_93 : i32
    %115 = arith.index_cast %114 : i32 to index
    %116 = memref.load %arg2[%115] : memref<72xf32, #tpu.memory_space<smem>>
    %c0_94 = arith.constant 0 : index
    %c0_95 = arith.constant 0 : index
    %c0_96 = arith.constant 0 : index
    %c1_97 = arith.constant 1 : index
    %c0_98 = arith.constant 0 : index
    %c1_99 = arith.constant 1 : index
    %117 = vector.load %arg3[%c0_94, %c0_95, %c0_96, %c1_97, %c0_98, %c1_99] : memref<1x2x2x4x9x9xf32, #tpu.memory_space<vmem>>, vector<1x1x1x1x8x8xf32>
    %118 = vector.shape_cast %117 : vector<1x1x1x1x8x8xf32> to vector<8x8xf32>
    %119 = vector.broadcast %116 : f32 to vector<8x8xf32>
    %120 = arith.mulf %119, %118 : vector<8x8xf32>
    %121 = arith.addf %111, %120 : vector<8x8xf32>
    %c9_i32_100 = arith.constant 9 : i32
    %122 = arith.addi %0, %c9_i32_100 : i32
    %c3_i32_101 = arith.constant 3 : i32
    %123 = arith.addi %122, %c3_i32_101 : i32
    %c0_i32_102 = arith.constant 0 : i32
    %124 = arith.addi %123, %c0_i32_102 : i32
    %125 = arith.index_cast %124 : i32 to index
    %126 = memref.load %arg2[%125] : memref<72xf32, #tpu.memory_space<smem>>
    %c0_103 = arith.constant 0 : index
    %c1_104 = arith.constant 1 : index
    %c0_105 = arith.constant 0 : index
    %c1_106 = arith.constant 1 : index
    %c0_107 = arith.constant 0 : index
    %c0_108 = arith.constant 0 : index
    %127 = vector.load %arg3[%c0_103, %c1_104, %c0_105, %c1_106, %c0_107, %c0_108] : memref<1x2x2x4x9x9xf32, #tpu.memory_space<vmem>>, vector<1x1x1x1x8x8xf32>
    %128 = vector.shape_cast %127 : vector<1x1x1x1x8x8xf32> to vector<8x8xf32>
    %129 = vector.broadcast %126 : f32 to vector<8x8xf32>
    %130 = arith.mulf %129, %128 : vector<8x8xf32>
    %131 = arith.addf %121, %130 : vector<8x8xf32>
    %c9_i32_109 = arith.constant 9 : i32
    %132 = arith.addi %0, %c9_i32_109 : i32
    %c3_i32_110 = arith.constant 3 : i32
    %133 = arith.addi %132, %c3_i32_110 : i32
    %c1_i32_111 = arith.constant 1 : i32
    %134 = arith.addi %133, %c1_i32_111 : i32
    %135 = arith.index_cast %134 : i32 to index
    %136 = memref.load %arg2[%135] : memref<72xf32, #tpu.memory_space<smem>>
    %c0_112 = arith.constant 0 : index
    %c1_113 = arith.constant 1 : index
    %c1_114 = arith.constant 1 : index
    %c1_115 = arith.constant 1 : index
    %c0_116 = arith.constant 0 : index
    %c0_117 = arith.constant 0 : index
    %137 = vector.load %arg3[%c0_112, %c1_113, %c1_114, %c1_115, %c0_116, %c0_117] : memref<1x2x2x4x9x9xf32, #tpu.memory_space<vmem>>, vector<1x1x1x1x8x8xf32>
    %138 = vector.shape_cast %137 : vector<1x1x1x1x8x8xf32> to vector<8x8xf32>
    %139 = vector.broadcast %136 : f32 to vector<8x8xf32>
    %140 = arith.mulf %139, %138 : vector<8x8xf32>
    %141 = arith.addf %131, %140 : vector<8x8xf32>
    %c9_i32_118 = arith.constant 9 : i32
    %142 = arith.addi %0, %c9_i32_118 : i32
    %c3_i32_119 = arith.constant 3 : i32
    %143 = arith.addi %142, %c3_i32_119 : i32
    %c2_i32_120 = arith.constant 2 : i32
    %144 = arith.addi %143, %c2_i32_120 : i32
    %145 = arith.index_cast %144 : i32 to index
    %146 = memref.load %arg2[%145] : memref<72xf32, #tpu.memory_space<smem>>
    %c0_121 = arith.constant 0 : index
    %c1_122 = arith.constant 1 : index
    %c0_123 = arith.constant 0 : index
    %c1_124 = arith.constant 1 : index
    %c0_125 = arith.constant 0 : index
    %c1_126 = arith.constant 1 : index
    %147 = vector.load %arg3[%c0_121, %c1_122, %c0_123, %c1_124, %c0_125, %c1_126] : memref<1x2x2x4x9x9xf32, #tpu.memory_space<vmem>>, vector<1x1x1x1x8x8xf32>
    %148 = vector.shape_cast %147 : vector<1x1x1x1x8x8xf32> to vector<8x8xf32>
    %149 = vector.broadcast %146 : f32 to vector<8x8xf32>
    %150 = arith.mulf %149, %148 : vector<8x8xf32>
    %151 = arith.addf %141, %150 : vector<8x8xf32>
    %c9_i32_127 = arith.constant 9 : i32
    %152 = arith.addi %0, %c9_i32_127 : i32
    %c6_i32_128 = arith.constant 6 : i32
    %153 = arith.addi %152, %c6_i32_128 : i32
    %c0_i32_129 = arith.constant 0 : i32
    %154 = arith.addi %153, %c0_i32_129 : i32
    %155 = arith.index_cast %154 : i32 to index
    %156 = memref.load %arg2[%155] : memref<72xf32, #tpu.memory_space<smem>>
    %c0_130 = arith.constant 0 : index
    %c0_131 = arith.constant 0 : index
    %c0_132 = arith.constant 0 : index
    %c1_133 = arith.constant 1 : index
    %c1_134 = arith.constant 1 : index
    %c0_135 = arith.constant 0 : index
    %157 = vector.load %arg3[%c0_130, %c0_131, %c0_132, %c1_133, %c1_134, %c0_135] : memref<1x2x2x4x9x9xf32, #tpu.memory_space<vmem>>, vector<1x1x1x1x8x8xf32>
    %158 = vector.shape_cast %157 : vector<1x1x1x1x8x8xf32> to vector<8x8xf32>
    %159 = vector.broadcast %156 : f32 to vector<8x8xf32>
    %160 = arith.mulf %159, %158 : vector<8x8xf32>
    %161 = arith.addf %151, %160 : vector<8x8xf32>
    %c9_i32_136 = arith.constant 9 : i32
    %162 = arith.addi %0, %c9_i32_136 : i32
    %c6_i32_137 = arith.constant 6 : i32
    %163 = arith.addi %162, %c6_i32_137 : i32
    %c1_i32_138 = arith.constant 1 : i32
    %164 = arith.addi %163, %c1_i32_138 : i32
    %165 = arith.index_cast %164 : i32 to index
    %166 = memref.load %arg2[%165] : memref<72xf32, #tpu.memory_space<smem>>
    %c0_139 = arith.constant 0 : index
    %c0_140 = arith.constant 0 : index
    %c1_141 = arith.constant 1 : index
    %c1_142 = arith.constant 1 : index
    %c1_143 = arith.constant 1 : index
    %c0_144 = arith.constant 0 : index
    %167 = vector.load %arg3[%c0_139, %c0_140, %c1_141, %c1_142, %c1_143, %c0_144] : memref<1x2x2x4x9x9xf32, #tpu.memory_space<vmem>>, vector<1x1x1x1x8x8xf32>
    %168 = vector.shape_cast %167 : vector<1x1x1x1x8x8xf32> to vector<8x8xf32>
    %169 = vector.broadcast %166 : f32 to vector<8x8xf32>
    %170 = arith.mulf %169, %168 : vector<8x8xf32>
    %171 = arith.addf %161, %170 : vector<8x8xf32>
    %c9_i32_145 = arith.constant 9 : i32
    %172 = arith.addi %0, %c9_i32_145 : i32
    %c6_i32_146 = arith.constant 6 : i32
    %173 = arith.addi %172, %c6_i32_146 : i32
    %c2_i32_147 = arith.constant 2 : i32
    %174 = arith.addi %173, %c2_i32_147 : i32
    %175 = arith.index_cast %174 : i32 to index
    %176 = memref.load %arg2[%175] : memref<72xf32, #tpu.memory_space<smem>>
    %c0_148 = arith.constant 0 : index
    %c0_149 = arith.constant 0 : index
    %c0_150 = arith.constant 0 : index
    %c1_151 = arith.constant 1 : index
    %c1_152 = arith.constant 1 : index
    %c1_153 = arith.constant 1 : index
    %177 = vector.load %arg3[%c0_148, %c0_149, %c0_150, %c1_151, %c1_152, %c1_153] : memref<1x2x2x4x9x9xf32, #tpu.memory_space<vmem>>, vector<1x1x1x1x8x8xf32>
    %178 = vector.shape_cast %177 : vector<1x1x1x1x8x8xf32> to vector<8x8xf32>
    %179 = vector.broadcast %176 : f32 to vector<8x8xf32>
    %180 = arith.mulf %179, %178 : vector<8x8xf32>
    %181 = arith.addf %171, %180 : vector<8x8xf32>
    %c18_i32 = arith.constant 18 : i32
    %182 = arith.addi %0, %c18_i32 : i32
    %c0_i32_154 = arith.constant 0 : i32
    %183 = arith.addi %182, %c0_i32_154 : i32
    %c0_i32_155 = arith.constant 0 : i32
    %184 = arith.addi %183, %c0_i32_155 : i32
    %185 = arith.index_cast %184 : i32 to index
    %186 = memref.load %arg2[%185] : memref<72xf32, #tpu.memory_space<smem>>
    %c0_156 = arith.constant 0 : index
    %c0_157 = arith.constant 0 : index
    %c0_158 = arith.constant 0 : index
    %c2 = arith.constant 2 : index
    %c0_159 = arith.constant 0 : index
    %c0_160 = arith.constant 0 : index
    %187 = vector.load %arg3[%c0_156, %c0_157, %c0_158, %c2, %c0_159, %c0_160] : memref<1x2x2x4x9x9xf32, #tpu.memory_space<vmem>>, vector<1x1x1x1x8x8xf32>
    %188 = vector.shape_cast %187 : vector<1x1x1x1x8x8xf32> to vector<8x8xf32>
    %189 = vector.broadcast %186 : f32 to vector<8x8xf32>
    %190 = arith.mulf %189, %188 : vector<8x8xf32>
    %191 = arith.addf %181, %190 : vector<8x8xf32>
    %c18_i32_161 = arith.constant 18 : i32
    %192 = arith.addi %0, %c18_i32_161 : i32
    %c0_i32_162 = arith.constant 0 : i32
    %193 = arith.addi %192, %c0_i32_162 : i32
    %c1_i32_163 = arith.constant 1 : i32
    %194 = arith.addi %193, %c1_i32_163 : i32
    %195 = arith.index_cast %194 : i32 to index
    %196 = memref.load %arg2[%195] : memref<72xf32, #tpu.memory_space<smem>>
    %c0_164 = arith.constant 0 : index
    %c0_165 = arith.constant 0 : index
    %c1_166 = arith.constant 1 : index
    %c2_167 = arith.constant 2 : index
    %c0_168 = arith.constant 0 : index
    %c0_169 = arith.constant 0 : index
    %197 = vector.load %arg3[%c0_164, %c0_165, %c1_166, %c2_167, %c0_168, %c0_169] : memref<1x2x2x4x9x9xf32, #tpu.memory_space<vmem>>, vector<1x1x1x1x8x8xf32>
    %198 = vector.shape_cast %197 : vector<1x1x1x1x8x8xf32> to vector<8x8xf32>
    %199 = vector.broadcast %196 : f32 to vector<8x8xf32>
    %200 = arith.mulf %199, %198 : vector<8x8xf32>
    %201 = arith.addf %191, %200 : vector<8x8xf32>
    %c18_i32_170 = arith.constant 18 : i32
    %202 = arith.addi %0, %c18_i32_170 : i32
    %c0_i32_171 = arith.constant 0 : i32
    %203 = arith.addi %202, %c0_i32_171 : i32
    %c2_i32_172 = arith.constant 2 : i32
    %204 = arith.addi %203, %c2_i32_172 : i32
    %205 = arith.index_cast %204 : i32 to index
    %206 = memref.load %arg2[%205] : memref<72xf32, #tpu.memory_space<smem>>
    %c0_173 = arith.constant 0 : index
    %c0_174 = arith.constant 0 : index
    %c0_175 = arith.constant 0 : index
    %c2_176 = arith.constant 2 : index
    %c0_177 = arith.constant 0 : index
    %c1_178 = arith.constant 1 : index
    %207 = vector.load %arg3[%c0_173, %c0_174, %c0_175, %c2_176, %c0_177, %c1_178] : memref<1x2x2x4x9x9xf32, #tpu.memory_space<vmem>>, vector<1x1x1x1x8x8xf32>
    %208 = vector.shape_cast %207 : vector<1x1x1x1x8x8xf32> to vector<8x8xf32>
    %209 = vector.broadcast %206 : f32 to vector<8x8xf32>
    %210 = arith.mulf %209, %208 : vector<8x8xf32>
    %211 = arith.addf %201, %210 : vector<8x8xf32>
    %c18_i32_179 = arith.constant 18 : i32
    %212 = arith.addi %0, %c18_i32_179 : i32
    %c3_i32_180 = arith.constant 3 : i32
    %213 = arith.addi %212, %c3_i32_180 : i32
    %c0_i32_181 = arith.constant 0 : i32
    %214 = arith.addi %213, %c0_i32_181 : i32
    %215 = arith.index_cast %214 : i32 to index
    %216 = memref.load %arg2[%215] : memref<72xf32, #tpu.memory_space<smem>>
    %c0_182 = arith.constant 0 : index
    %c1_183 = arith.constant 1 : index
    %c0_184 = arith.constant 0 : index
    %c2_185 = arith.constant 2 : index
    %c0_186 = arith.constant 0 : index
    %c0_187 = arith.constant 0 : index
    %217 = vector.load %arg3[%c0_182, %c1_183, %c0_184, %c2_185, %c0_186, %c0_187] : memref<1x2x2x4x9x9xf32, #tpu.memory_space<vmem>>, vector<1x1x1x1x8x8xf32>
    %218 = vector.shape_cast %217 : vector<1x1x1x1x8x8xf32> to vector<8x8xf32>
    %219 = vector.broadcast %216 : f32 to vector<8x8xf32>
    %220 = arith.mulf %219, %218 : vector<8x8xf32>
    %221 = arith.addf %211, %220 : vector<8x8xf32>
    %c18_i32_188 = arith.constant 18 : i32
    %222 = arith.addi %0, %c18_i32_188 : i32
    %c3_i32_189 = arith.constant 3 : i32
    %223 = arith.addi %222, %c3_i32_189 : i32
    %c1_i32_190 = arith.constant 1 : i32
    %224 = arith.addi %223, %c1_i32_190 : i32
    %225 = arith.index_cast %224 : i32 to index
    %226 = memref.load %arg2[%225] : memref<72xf32, #tpu.memory_space<smem>>
    %c0_191 = arith.constant 0 : index
    %c1_192 = arith.constant 1 : index
    %c1_193 = arith.constant 1 : index
    %c2_194 = arith.constant 2 : index
    %c0_195 = arith.constant 0 : index
    %c0_196 = arith.constant 0 : index
    %227 = vector.load %arg3[%c0_191, %c1_192, %c1_193, %c2_194, %c0_195, %c0_196] : memref<1x2x2x4x9x9xf32, #tpu.memory_space<vmem>>, vector<1x1x1x1x8x8xf32>
    %228 = vector.shape_cast %227 : vector<1x1x1x1x8x8xf32> to vector<8x8xf32>
    %229 = vector.broadcast %226 : f32 to vector<8x8xf32>
    %230 = arith.mulf %229, %228 : vector<8x8xf32>
    %231 = arith.addf %221, %230 : vector<8x8xf32>
    %c18_i32_197 = arith.constant 18 : i32
    %232 = arith.addi %0, %c18_i32_197 : i32
    %c3_i32_198 = arith.constant 3 : i32
    %233 = arith.addi %232, %c3_i32_198 : i32
    %c2_i32_199 = arith.constant 2 : i32
    %234 = arith.addi %233, %c2_i32_199 : i32
    %235 = arith.index_cast %234 : i32 to index
    %236 = memref.load %arg2[%235] : memref<72xf32, #tpu.memory_space<smem>>
    %c0_200 = arith.constant 0 : index
    %c1_201 = arith.constant 1 : index
    %c0_202 = arith.constant 0 : index
    %c2_203 = arith.constant 2 : index
    %c0_204 = arith.constant 0 : index
    %c1_205 = arith.constant 1 : index
    %237 = vector.load %arg3[%c0_200, %c1_201, %c0_202, %c2_203, %c0_204, %c1_205] : memref<1x2x2x4x9x9xf32, #tpu.memory_space<vmem>>, vector<1x1x1x1x8x8xf32>
    %238 = vector.shape_cast %237 : vector<1x1x1x1x8x8xf32> to vector<8x8xf32>
    %239 = vector.broadcast %236 : f32 to vector<8x8xf32>
    %240 = arith.mulf %239, %238 : vector<8x8xf32>
    %241 = arith.addf %231, %240 : vector<8x8xf32>
    %c18_i32_206 = arith.constant 18 : i32
    %242 = arith.addi %0, %c18_i32_206 : i32
    %c6_i32_207 = arith.constant 6 : i32
    %243 = arith.addi %242, %c6_i32_207 : i32
    %c0_i32_208 = arith.constant 0 : i32
    %244 = arith.addi %243, %c0_i32_208 : i32
    %245 = arith.index_cast %244 : i32 to index
    %246 = memref.load %arg2[%245] : memref<72xf32, #tpu.memory_space<smem>>
    %c0_209 = arith.constant 0 : index
    %c0_210 = arith.constant 0 : index
    %c0_211 = arith.constant 0 : index
    %c2_212 = arith.constant 2 : index
    %c1_213 = arith.constant 1 : index
    %c0_214 = arith.constant 0 : index
    %247 = vector.load %arg3[%c0_209, %c0_210, %c0_211, %c2_212, %c1_213, %c0_214] : memref<1x2x2x4x9x9xf32, #tpu.memory_space<vmem>>, vector<1x1x1x1x8x8xf32>
    %248 = vector.shape_cast %247 : vector<1x1x1x1x8x8xf32> to vector<8x8xf32>
    %249 = vector.broadcast %246 : f32 to vector<8x8xf32>
    %250 = arith.mulf %249, %248 : vector<8x8xf32>
    %251 = arith.addf %241, %250 : vector<8x8xf32>
    %c18_i32_215 = arith.constant 18 : i32
    %252 = arith.addi %0, %c18_i32_215 : i32
    %c6_i32_216 = arith.constant 6 : i32
    %253 = arith.addi %252, %c6_i32_216 : i32
    %c1_i32_217 = arith.constant 1 : i32
    %254 = arith.addi %253, %c1_i32_217 : i32
    %255 = arith.index_cast %254 : i32 to index
    %256 = memref.load %arg2[%255] : memref<72xf32, #tpu.memory_space<smem>>
    %c0_218 = arith.constant 0 : index
    %c0_219 = arith.constant 0 : index
    %c1_220 = arith.constant 1 : index
    %c2_221 = arith.constant 2 : index
    %c1_222 = arith.constant 1 : index
    %c0_223 = arith.constant 0 : index
    %257 = vector.load %arg3[%c0_218, %c0_219, %c1_220, %c2_221, %c1_222, %c0_223] : memref<1x2x2x4x9x9xf32, #tpu.memory_space<vmem>>, vector<1x1x1x1x8x8xf32>
    %258 = vector.shape_cast %257 : vector<1x1x1x1x8x8xf32> to vector<8x8xf32>
    %259 = vector.broadcast %256 : f32 to vector<8x8xf32>
    %260 = arith.mulf %259, %258 : vector<8x8xf32>
    %261 = arith.addf %251, %260 : vector<8x8xf32>
    %c18_i32_224 = arith.constant 18 : i32
    %262 = arith.addi %0, %c18_i32_224 : i32
    %c6_i32_225 = arith.constant 6 : i32
    %263 = arith.addi %262, %c6_i32_225 : i32
    %c2_i32_226 = arith.constant 2 : i32
    %264 = arith.addi %263, %c2_i32_226 : i32
    %265 = arith.index_cast %264 : i32 to index
    %266 = memref.load %arg2[%265] : memref<72xf32, #tpu.memory_space<smem>>
    %c0_227 = arith.constant 0 : index
    %c0_228 = arith.constant 0 : index
    %c0_229 = arith.constant 0 : index
    %c2_230 = arith.constant 2 : index
    %c1_231 = arith.constant 1 : index
    %c1_232 = arith.constant 1 : index
    %267 = vector.load %arg3[%c0_227, %c0_228, %c0_229, %c2_230, %c1_231, %c1_232] : memref<1x2x2x4x9x9xf32, #tpu.memory_space<vmem>>, vector<1x1x1x1x8x8xf32>
    %268 = vector.shape_cast %267 : vector<1x1x1x1x8x8xf32> to vector<8x8xf32>
    %269 = vector.broadcast %266 : f32 to vector<8x8xf32>
    %270 = arith.mulf %269, %268 : vector<8x8xf32>
    %271 = arith.addf %261, %270 : vector<8x8xf32>
    %c27_i32 = arith.constant 27 : i32
    %272 = arith.addi %0, %c27_i32 : i32
    %c0_i32_233 = arith.constant 0 : i32
    %273 = arith.addi %272, %c0_i32_233 : i32
    %c0_i32_234 = arith.constant 0 : i32
    %274 = arith.addi %273, %c0_i32_234 : i32
    %275 = arith.index_cast %274 : i32 to index
    %276 = memref.load %arg2[%275] : memref<72xf32, #tpu.memory_space<smem>>
    %c0_235 = arith.constant 0 : index
    %c0_236 = arith.constant 0 : index
    %c0_237 = arith.constant 0 : index
    %c3 = arith.constant 3 : index
    %c0_238 = arith.constant 0 : index
    %c0_239 = arith.constant 0 : index
    %277 = vector.load %arg3[%c0_235, %c0_236, %c0_237, %c3, %c0_238, %c0_239] : memref<1x2x2x4x9x9xf32, #tpu.memory_space<vmem>>, vector<1x1x1x1x8x8xf32>
    %278 = vector.shape_cast %277 : vector<1x1x1x1x8x8xf32> to vector<8x8xf32>
    %279 = vector.broadcast %276 : f32 to vector<8x8xf32>
    %280 = arith.mulf %279, %278 : vector<8x8xf32>
    %281 = arith.addf %271, %280 : vector<8x8xf32>
    %c27_i32_240 = arith.constant 27 : i32
    %282 = arith.addi %0, %c27_i32_240 : i32
    %c0_i32_241 = arith.constant 0 : i32
    %283 = arith.addi %282, %c0_i32_241 : i32
    %c1_i32_242 = arith.constant 1 : i32
    %284 = arith.addi %283, %c1_i32_242 : i32
    %285 = arith.index_cast %284 : i32 to index
    %286 = memref.load %arg2[%285] : memref<72xf32, #tpu.memory_space<smem>>
    %c0_243 = arith.constant 0 : index
    %c0_244 = arith.constant 0 : index
    %c1_245 = arith.constant 1 : index
    %c3_246 = arith.constant 3 : index
    %c0_247 = arith.constant 0 : index
    %c0_248 = arith.constant 0 : index
    %287 = vector.load %arg3[%c0_243, %c0_244, %c1_245, %c3_246, %c0_247, %c0_248] : memref<1x2x2x4x9x9xf32, #tpu.memory_space<vmem>>, vector<1x1x1x1x8x8xf32>
    %288 = vector.shape_cast %287 : vector<1x1x1x1x8x8xf32> to vector<8x8xf32>
    %289 = vector.broadcast %286 : f32 to vector<8x8xf32>
    %290 = arith.mulf %289, %288 : vector<8x8xf32>
    %291 = arith.addf %281, %290 : vector<8x8xf32>
    %c27_i32_249 = arith.constant 27 : i32
    %292 = arith.addi %0, %c27_i32_249 : i32
    %c0_i32_250 = arith.constant 0 : i32
    %293 = arith.addi %292, %c0_i32_250 : i32
    %c2_i32_251 = arith.constant 2 : i32
    %294 = arith.addi %293, %c2_i32_251 : i32
    %295 = arith.index_cast %294 : i32 to index
    %296 = memref.load %arg2[%295] : memref<72xf32, #tpu.memory_space<smem>>
    %c0_252 = arith.constant 0 : index
    %c0_253 = arith.constant 0 : index
    %c0_254 = arith.constant 0 : index
    %c3_255 = arith.constant 3 : index
    %c0_256 = arith.constant 0 : index
    %c1_257 = arith.constant 1 : index
    %297 = vector.load %arg3[%c0_252, %c0_253, %c0_254, %c3_255, %c0_256, %c1_257] : memref<1x2x2x4x9x9xf32, #tpu.memory_space<vmem>>, vector<1x1x1x1x8x8xf32>
    %298 = vector.shape_cast %297 : vector<1x1x1x1x8x8xf32> to vector<8x8xf32>
    %299 = vector.broadcast %296 : f32 to vector<8x8xf32>
    %300 = arith.mulf %299, %298 : vector<8x8xf32>
    %301 = arith.addf %291, %300 : vector<8x8xf32>
    %c27_i32_258 = arith.constant 27 : i32
    %302 = arith.addi %0, %c27_i32_258 : i32
    %c3_i32_259 = arith.constant 3 : i32
    %303 = arith.addi %302, %c3_i32_259 : i32
    %c0_i32_260 = arith.constant 0 : i32
    %304 = arith.addi %303, %c0_i32_260 : i32
    %305 = arith.index_cast %304 : i32 to index
    %306 = memref.load %arg2[%305] : memref<72xf32, #tpu.memory_space<smem>>
    %c0_261 = arith.constant 0 : index
    %c1_262 = arith.constant 1 : index
    %c0_263 = arith.constant 0 : index
    %c3_264 = arith.constant 3 : index
    %c0_265 = arith.constant 0 : index
    %c0_266 = arith.constant 0 : index
    %307 = vector.load %arg3[%c0_261, %c1_262, %c0_263, %c3_264, %c0_265, %c0_266] : memref<1x2x2x4x9x9xf32, #tpu.memory_space<vmem>>, vector<1x1x1x1x8x8xf32>
    %308 = vector.shape_cast %307 : vector<1x1x1x1x8x8xf32> to vector<8x8xf32>
    %309 = vector.broadcast %306 : f32 to vector<8x8xf32>
    %310 = arith.mulf %309, %308 : vector<8x8xf32>
    %311 = arith.addf %301, %310 : vector<8x8xf32>
    %c27_i32_267 = arith.constant 27 : i32
    %312 = arith.addi %0, %c27_i32_267 : i32
    %c3_i32_268 = arith.constant 3 : i32
    %313 = arith.addi %312, %c3_i32_268 : i32
    %c1_i32_269 = arith.constant 1 : i32
    %314 = arith.addi %313, %c1_i32_269 : i32
    %315 = arith.index_cast %314 : i32 to index
    %316 = memref.load %arg2[%315] : memref<72xf32, #tpu.memory_space<smem>>
    %c0_270 = arith.constant 0 : index
    %c1_271 = arith.constant 1 : index
    %c1_272 = arith.constant 1 : index
    %c3_273 = arith.constant 3 : index
    %c0_274 = arith.constant 0 : index
    %c0_275 = arith.constant 0 : index
    %317 = vector.load %arg3[%c0_270, %c1_271, %c1_272, %c3_273, %c0_274, %c0_275] : memref<1x2x2x4x9x9xf32, #tpu.memory_space<vmem>>, vector<1x1x1x1x8x8xf32>
    %318 = vector.shape_cast %317 : vector<1x1x1x1x8x8xf32> to vector<8x8xf32>
    %319 = vector.broadcast %316 : f32 to vector<8x8xf32>
    %320 = arith.mulf %319, %318 : vector<8x8xf32>
    %321 = arith.addf %311, %320 : vector<8x8xf32>
    %c27_i32_276 = arith.constant 27 : i32
    %322 = arith.addi %0, %c27_i32_276 : i32
    %c3_i32_277 = arith.constant 3 : i32
    %323 = arith.addi %322, %c3_i32_277 : i32
    %c2_i32_278 = arith.constant 2 : i32
    %324 = arith.addi %323, %c2_i32_278 : i32
    %325 = arith.index_cast %324 : i32 to index
    %326 = memref.load %arg2[%325] : memref<72xf32, #tpu.memory_space<smem>>
    %c0_279 = arith.constant 0 : index
    %c1_280 = arith.constant 1 : index
    %c0_281 = arith.constant 0 : index
    %c3_282 = arith.constant 3 : index
    %c0_283 = arith.constant 0 : index
    %c1_284 = arith.constant 1 : index
    %327 = vector.load %arg3[%c0_279, %c1_280, %c0_281, %c3_282, %c0_283, %c1_284] : memref<1x2x2x4x9x9xf32, #tpu.memory_space<vmem>>, vector<1x1x1x1x8x8xf32>
    %328 = vector.shape_cast %327 : vector<1x1x1x1x8x8xf32> to vector<8x8xf32>
    %329 = vector.broadcast %326 : f32 to vector<8x8xf32>
    %330 = arith.mulf %329, %328 : vector<8x8xf32>
    %331 = arith.addf %321, %330 : vector<8x8xf32>
    %c27_i32_285 = arith.constant 27 : i32
    %332 = arith.addi %0, %c27_i32_285 : i32
    %c6_i32_286 = arith.constant 6 : i32
    %333 = arith.addi %332, %c6_i32_286 : i32
    %c0_i32_287 = arith.constant 0 : i32
    %334 = arith.addi %333, %c0_i32_287 : i32
    %335 = arith.index_cast %334 : i32 to index
    %336 = memref.load %arg2[%335] : memref<72xf32, #tpu.memory_space<smem>>
    %c0_288 = arith.constant 0 : index
    %c0_289 = arith.constant 0 : index
    %c0_290 = arith.constant 0 : index
    %c3_291 = arith.constant 3 : index
    %c1_292 = arith.constant 1 : index
    %c0_293 = arith.constant 0 : index
    %337 = vector.load %arg3[%c0_288, %c0_289, %c0_290, %c3_291, %c1_292, %c0_293] : memref<1x2x2x4x9x9xf32, #tpu.memory_space<vmem>>, vector<1x1x1x1x8x8xf32>
    %338 = vector.shape_cast %337 : vector<1x1x1x1x8x8xf32> to vector<8x8xf32>
    %339 = vector.broadcast %336 : f32 to vector<8x8xf32>
    %340 = arith.mulf %339, %338 : vector<8x8xf32>
    %341 = arith.addf %331, %340 : vector<8x8xf32>
    %c27_i32_294 = arith.constant 27 : i32
    %342 = arith.addi %0, %c27_i32_294 : i32
    %c6_i32_295 = arith.constant 6 : i32
    %343 = arith.addi %342, %c6_i32_295 : i32
    %c1_i32_296 = arith.constant 1 : i32
    %344 = arith.addi %343, %c1_i32_296 : i32
    %345 = arith.index_cast %344 : i32 to index
    %346 = memref.load %arg2[%345] : memref<72xf32, #tpu.memory_space<smem>>
    %c0_297 = arith.constant 0 : index
    %c0_298 = arith.constant 0 : index
    %c1_299 = arith.constant 1 : index
    %c3_300 = arith.constant 3 : index
    %c1_301 = arith.constant 1 : index
    %c0_302 = arith.constant 0 : index
    %347 = vector.load %arg3[%c0_297, %c0_298, %c1_299, %c3_300, %c1_301, %c0_302] : memref<1x2x2x4x9x9xf32, #tpu.memory_space<vmem>>, vector<1x1x1x1x8x8xf32>
    %348 = vector.shape_cast %347 : vector<1x1x1x1x8x8xf32> to vector<8x8xf32>
    %349 = vector.broadcast %346 : f32 to vector<8x8xf32>
    %350 = arith.mulf %349, %348 : vector<8x8xf32>
    %351 = arith.addf %341, %350 : vector<8x8xf32>
    %c27_i32_303 = arith.constant 27 : i32
    %352 = arith.addi %0, %c27_i32_303 : i32
    %c6_i32_304 = arith.constant 6 : i32
    %353 = arith.addi %352, %c6_i32_304 : i32
    %c2_i32_305 = arith.constant 2 : i32
    %354 = arith.addi %353, %c2_i32_305 : i32
    %355 = arith.index_cast %354 : i32 to index
    %356 = memref.load %arg2[%355] : memref<72xf32, #tpu.memory_space<smem>>
    %c0_306 = arith.constant 0 : index
    %c0_307 = arith.constant 0 : index
    %c0_308 = arith.constant 0 : index
    %c3_309 = arith.constant 3 : index
    %c1_310 = arith.constant 1 : index
    %c1_311 = arith.constant 1 : index
    %357 = vector.load %arg3[%c0_306, %c0_307, %c0_308, %c3_309, %c1_310, %c1_311] : memref<1x2x2x4x9x9xf32, #tpu.memory_space<vmem>>, vector<1x1x1x1x8x8xf32>
    %358 = vector.shape_cast %357 : vector<1x1x1x1x8x8xf32> to vector<8x8xf32>
    %359 = vector.broadcast %356 : f32 to vector<8x8xf32>
    %360 = arith.mulf %359, %358 : vector<8x8xf32>
    %361 = arith.addf %351, %360 : vector<8x8xf32>
    %c0_312 = arith.constant 0 : index
    %c0_313 = arith.constant 0 : index
    %c0_314 = arith.constant 0 : index
    %c0_315 = arith.constant 0 : index
    %362 = vector.load %arg4[%c0_312, %c0_313, %c0_314, %c0_315] : memref<1x4x8x8xf32, #tpu.memory_space<vmem>>, vector<1x1x8x8xf32>
    %363 = vector.shape_cast %362 : vector<1x1x8x8xf32> to vector<8x8xf32>
    %364 = vector.shape_cast %361 : vector<8x8xf32> to vector<1x1x8x8xf32>
    tpu.vector_store %arg4[%c0_312, %c0_313, %c0_314, %c0_315], %364 {strides = array<i32>} : memref<1x4x8x8xf32, #tpu.memory_space<vmem>>, vector<1x1x8x8xf32>,
    %cst_316 = arith.constant 0.000000e+00 : f32
    %365 = vector.broadcast %cst_316 : f32 to vector<8x8xf32>
    %c0_i32_317 = arith.constant 0 : i32
    %366 = arith.addi %0, %c0_i32_317 : i32
    %c0_i32_318 = arith.constant 0 : i32
    %367 = arith.addi %366, %c0_i32_318 : i32
    %c0_i32_319 = arith.constant 0 : i32
    %368 = arith.addi %367, %c0_i32_319 : i32
    %369 = arith.index_cast %368 : i32 to index
    %370 = memref.load %arg2[%369] : memref<72xf32, #tpu.memory_space<smem>>
    %c0_320 = arith.constant 0 : index
    %c0_321 = arith.constant 0 : index
    %c1_322 = arith.constant 1 : index
    %c0_323 = arith.constant 0 : index
    %c0_324 = arith.constant 0 : index
    %c0_325 = arith.constant 0 : index
    %371 = vector.load %arg3[%c0_320, %c0_321, %c1_322, %c0_323, %c0_324, %c0_325] : memref<1x2x2x4x9x9xf32, #tpu.memory_space<vmem>>, vector<1x1x1x1x8x8xf32>
    %372 = vector.shape_cast %371 : vector<1x1x1x1x8x8xf32> to vector<8x8xf32>
    %373 = vector.broadcast %370 : f32 to vector<8x8xf32>
    %374 = arith.mulf %373, %372 : vector<8x8xf32>
    %375 = arith.addf %365, %374 : vector<8x8xf32>
    %c0_i32_326 = arith.constant 0 : i32
    %376 = arith.addi %0, %c0_i32_326 : i32
    %c0_i32_327 = arith.constant 0 : i32
    %377 = arith.addi %376, %c0_i32_327 : i32
    %c1_i32_328 = arith.constant 1 : i32
    %378 = arith.addi %377, %c1_i32_328 : i32
    %379 = arith.index_cast %378 : i32 to index
    %380 = memref.load %arg2[%379] : memref<72xf32, #tpu.memory_space<smem>>
    %c0_329 = arith.constant 0 : index
    %c0_330 = arith.constant 0 : index
    %c0_331 = arith.constant 0 : index
    %c0_332 = arith.constant 0 : index
    %c0_333 = arith.constant 0 : index
    %c1_334 = arith.constant 1 : index
    %381 = vector.load %arg3[%c0_329, %c0_330, %c0_331, %c0_332, %c0_333, %c1_334] : memref<1x2x2x4x9x9xf32, #tpu.memory_space<vmem>>, vector<1x1x1x1x8x8xf32>
    %382 = vector.shape_cast %381 : vector<1x1x1x1x8x8xf32> to vector<8x8xf32>
    %383 = vector.broadcast %380 : f32 to vector<8x8xf32>
    %384 = arith.mulf %383, %382 : vector<8x8xf32>
    %385 = arith.addf %375, %384 : vector<8x8xf32>
    %c0_i32_335 = arith.constant 0 : i32
    %386 = arith.addi %0, %c0_i32_335 : i32
    %c0_i32_336 = arith.constant 0 : i32
    %387 = arith.addi %386, %c0_i32_336 : i32
    %c2_i32_337 = arith.constant 2 : i32
    %388 = arith.addi %387, %c2_i32_337 : i32
    %389 = arith.index_cast %388 : i32 to index
    %390 = memref.load %arg2[%389] : memref<72xf32, #tpu.memory_space<smem>>
    %c0_338 = arith.constant 0 : index
    %c0_339 = arith.constant 0 : index
    %c1_340 = arith.constant 1 : index
    %c0_341 = arith.constant 0 : index
    %c0_342 = arith.constant 0 : index
    %c1_343 = arith.constant 1 : index
    %391 = vector.load %arg3[%c0_338, %c0_339, %c1_340, %c0_341, %c0_342, %c1_343] : memref<1x2x2x4x9x9xf32, #tpu.memory_space<vmem>>, vector<1x1x1x1x8x8xf32>
    %392 = vector.shape_cast %391 : vector<1x1x1x1x8x8xf32> to vector<8x8xf32>
    %393 = vector.broadcast %390 : f32 to vector<8x8xf32>
    %394 = arith.mulf %393, %392 : vector<8x8xf32>
    %395 = arith.addf %385, %394 : vector<8x8xf32>
    %c0_i32_344 = arith.constant 0 : i32
    %396 = arith.addi %0, %c0_i32_344 : i32
    %c3_i32_345 = arith.constant 3 : i32
    %397 = arith.addi %396, %c3_i32_345 : i32
    %c0_i32_346 = arith.constant 0 : i32
    %398 = arith.addi %397, %c0_i32_346 : i32
    %399 = arith.index_cast %398 : i32 to index
    %400 = memref.load %arg2[%399] : memref<72xf32, #tpu.memory_space<smem>>
    %c0_347 = arith.constant 0 : index
    %c1_348 = arith.constant 1 : index
    %c1_349 = arith.constant 1 : index
    %c0_350 = arith.constant 0 : index
    %c0_351 = arith.constant 0 : index
    %c0_352 = arith.constant 0 : index
    %401 = vector.load %arg3[%c0_347, %c1_348, %c1_349, %c0_350, %c0_351, %c0_352] : memref<1x2x2x4x9x9xf32, #tpu.memory_space<vmem>>, vector<1x1x1x1x8x8xf32>
    %402 = vector.shape_cast %401 : vector<1x1x1x1x8x8xf32> to vector<8x8xf32>
    %403 = vector.broadcast %400 : f32 to vector<8x8xf32>
    %404 = arith.mulf %403, %402 : vector<8x8xf32>
    %405 = arith.addf %395, %404 : vector<8x8xf32>
    %c0_i32_353 = arith.constant 0 : i32
    %406 = arith.addi %0, %c0_i32_353 : i32
    %c3_i32_354 = arith.constant 3 : i32
    %407 = arith.addi %406, %c3_i32_354 : i32
    %c1_i32_355 = arith.constant 1 : i32
    %408 = arith.addi %407, %c1_i32_355 : i32
    %409 = arith.index_cast %408 : i32 to index
    %410 = memref.load %arg2[%409] : memref<72xf32, #tpu.memory_space<smem>>
    %c0_356 = arith.constant 0 : index
    %c1_357 = arith.constant 1 : index
    %c0_358 = arith.constant 0 : index
    %c0_359 = arith.constant 0 : index
    %c0_360 = arith.constant 0 : index
    %c1_361 = arith.constant 1 : index
    %411 = vector.load %arg3[%c0_356, %c1_357, %c0_358, %c0_359, %c0_360, %c1_361] : memref<1x2x2x4x9x9xf32, #tpu.memory_space<vmem>>, vector<1x1x1x1x8x8xf32>
    %412 = vector.shape_cast %411 : vector<1x1x1x1x8x8xf32> to vector<8x8xf32>
    %413 = vector.broadcast %410 : f32 to vector<8x8xf32>
    %414 = arith.mulf %413, %412 : vector<8x8xf32>
    %415 = arith.addf %405, %414 : vector<8x8xf32>
    %c0_i32_362 = arith.constant 0 : i32
    %416 = arith.addi %0, %c0_i32_362 : i32
    %c3_i32_363 = arith.constant 3 : i32
    %417 = arith.addi %416, %c3_i32_363 : i32
    %c2_i32_364 = arith.constant 2 : i32
    %418 = arith.addi %417, %c2_i32_364 : i32
    %419 = arith.index_cast %418 : i32 to index
    %420 = memref.load %arg2[%419] : memref<72xf32, #tpu.memory_space<smem>>
    %c0_365 = arith.constant 0 : index
    %c1_366 = arith.constant 1 : index
    %c1_367 = arith.constant 1 : index
    %c0_368 = arith.constant 0 : index
    %c0_369 = arith.constant 0 : index
    %c1_370 = arith.constant 1 : index
    %421 = vector.load %arg3[%c0_365, %c1_366, %c1_367, %c0_368, %c0_369, %c1_370] : memref<1x2x2x4x9x9xf32, #tpu.memory_space<vmem>>, vector<1x1x1x1x8x8xf32>
    %422 = vector.shape_cast %421 : vector<1x1x1x1x8x8xf32> to vector<8x8xf32>
    %423 = vector.broadcast %420 : f32 to vector<8x8xf32>
    %424 = arith.mulf %423, %422 : vector<8x8xf32>
    %425 = arith.addf %415, %424 : vector<8x8xf32>
    %c0_i32_371 = arith.constant 0 : i32
    %426 = arith.addi %0, %c0_i32_371 : i32
    %c6_i32_372 = arith.constant 6 : i32
    %427 = arith.addi %426, %c6_i32_372 : i32
    %c0_i32_373 = arith.constant 0 : i32
    %428 = arith.addi %427, %c0_i32_373 : i32
    %429 = arith.index_cast %428 : i32 to index
    %430 = memref.load %arg2[%429] : memref<72xf32, #tpu.memory_space<smem>>
    %c0_374 = arith.constant 0 : index
    %c0_375 = arith.constant 0 : index
    %c1_376 = arith.constant 1 : index
    %c0_377 = arith.constant 0 : index
    %c1_378 = arith.constant 1 : index
    %c0_379 = arith.constant 0 : index
    %431 = vector.load %arg3[%c0_374, %c0_375, %c1_376, %c0_377, %c1_378, %c0_379] : memref<1x2x2x4x9x9xf32, #tpu.memory_space<vmem>>, vector<1x1x1x1x8x8xf32>
    %432 = vector.shape_cast %431 : vector<1x1x1x1x8x8xf32> to vector<8x8xf32>
    %433 = vector.broadcast %430 : f32 to vector<8x8xf32>
    %434 = arith.mulf %433, %432 : vector<8x8xf32>
    %435 = arith.addf %425, %434 : vector<8x8xf32>
    %c0_i32_380 = arith.constant 0 : i32
    %436 = arith.addi %0, %c0_i32_380 : i32
    %c6_i32_381 = arith.constant 6 : i32
    %437 = arith.addi %436, %c6_i32_381 : i32
    %c1_i32_382 = arith.constant 1 : i32
    %438 = arith.addi %437, %c1_i32_382 : i32
    %439 = arith.index_cast %438 : i32 to index
    %440 = memref.load %arg2[%439] : memref<72xf32, #tpu.memory_space<smem>>
    %c0_383 = arith.constant 0 : index
    %c0_384 = arith.constant 0 : index
    %c0_385 = arith.constant 0 : index
    %c0_386 = arith.constant 0 : index
    %c1_387 = arith.constant 1 : index
    %c1_388 = arith.constant 1 : index
    %441 = vector.load %arg3[%c0_383, %c0_384, %c0_385, %c0_386, %c1_387, %c1_388] : memref<1x2x2x4x9x9xf32, #tpu.memory_space<vmem>>, vector<1x1x1x1x8x8xf32>
    %442 = vector.shape_cast %441 : vector<1x1x1x1x8x8xf32> to vector<8x8xf32>
    %443 = vector.broadcast %440 : f32 to vector<8x8xf32>
    %444 = arith.mulf %443, %442 : vector<8x8xf32>
    %445 = arith.addf %435, %444 : vector<8x8xf32>
    %c0_i32_389 = arith.constant 0 : i32
    %446 = arith.addi %0, %c0_i32_389 : i32
    %c6_i32_390 = arith.constant 6 : i32
    %447 = arith.addi %446, %c6_i32_390 : i32
    %c2_i32_391 = arith.constant 2 : i32
    %448 = arith.addi %447, %c2_i32_391 : i32
    %449 = arith.index_cast %448 : i32 to index
    %450 = memref.load %arg2[%449] : memref<72xf32, #tpu.memory_space<smem>>
    %c0_392 = arith.constant 0 : index
    %c0_393 = arith.constant 0 : index
    %c1_394 = arith.constant 1 : index
    %c0_395 = arith.constant 0 : index
    %c1_396 = arith.constant 1 : index
    %c1_397 = arith.constant 1 : index
    %451 = vector.load %arg3[%c0_392, %c0_393, %c1_394, %c0_395, %c1_396, %c1_397] : memref<1x2x2x4x9x9xf32, #tpu.memory_space<vmem>>, vector<1x1x1x1x8x8xf32>
    %452 = vector.shape_cast %451 : vector<1x1x1x1x8x8xf32> to vector<8x8xf32>
    %453 = vector.broadcast %450 : f32 to vector<8x8xf32>
    %454 = arith.mulf %453, %452 : vector<8x8xf32>
    %455 = arith.addf %445, %454 : vector<8x8xf32>
    %c9_i32_398 = arith.constant 9 : i32
    %456 = arith.addi %0, %c9_i32_398 : i32
    %c0_i32_399 = arith.constant 0 : i32
    %457 = arith.addi %456, %c0_i32_399 : i32
    %c0_i32_400 = arith.constant 0 : i32
    %458 = arith.addi %457, %c0_i32_400 : i32
    %459 = arith.index_cast %458 : i32 to index
    %460 = memref.load %arg2[%459] : memref<72xf32, #tpu.memory_space<smem>>
    %c0_401 = arith.constant 0 : index
    %c0_402 = arith.constant 0 : index
    %c1_403 = arith.constant 1 : index
    %c1_404 = arith.constant 1 : index
    %c0_405 = arith.constant 0 : index
    %c0_406 = arith.constant 0 : index
    %461 = vector.load %arg3[%c0_401, %c0_402, %c1_403, %c1_404, %c0_405, %c0_406] : memref<1x2x2x4x9x9xf32, #tpu.memory_space<vmem>>, vector<1x1x1x1x8x8xf32>
    %462 = vector.shape_cast %461 : vector<1x1x1x1x8x8xf32> to vector<8x8xf32>
    %463 = vector.broadcast %460 : f32 to vector<8x8xf32>
    %464 = arith.mulf %463, %462 : vector<8x8xf32>
    %465 = arith.addf %455, %464 : vector<8x8xf32>
    %c9_i32_407 = arith.constant 9 : i32
    %466 = arith.addi %0, %c9_i32_407 : i32
    %c0_i32_408 = arith.constant 0 : i32
    %467 = arith.addi %466, %c0_i32_408 : i32
    %c1_i32_409 = arith.constant 1 : i32
    %468 = arith.addi %467, %c1_i32_409 : i32
    %469 = arith.index_cast %468 : i32 to index
    %470 = memref.load %arg2[%469] : memref<72xf32, #tpu.memory_space<smem>>
    %c0_410 = arith.constant 0 : index
    %c0_411 = arith.constant 0 : index
    %c0_412 = arith.constant 0 : index
    %c1_413 = arith.constant 1 : index
    %c0_414 = arith.constant 0 : index
    %c1_415 = arith.constant 1 : index
    %471 = vector.load %arg3[%c0_410, %c0_411, %c0_412, %c1_413, %c0_414, %c1_415] : memref<1x2x2x4x9x9xf32, #tpu.memory_space<vmem>>, vector<1x1x1x1x8x8xf32>
    %472 = vector.shape_cast %471 : vector<1x1x1x1x8x8xf32> to vector<8x8xf32>
    %473 = vector.broadcast %470 : f32 to vector<8x8xf32>
    %474 = arith.mulf %473, %472 : vector<8x8xf32>
    %475 = arith.addf %465, %474 : vector<8x8xf32>
    %c9_i32_416 = arith.constant 9 : i32
    %476 = arith.addi %0, %c9_i32_416 : i32
    %c0_i32_417 = arith.constant 0 : i32
    %477 = arith.addi %476, %c0_i32_417 : i32
    %c2_i32_418 = arith.constant 2 : i32
    %478 = arith.addi %477, %c2_i32_418 : i32
    %479 = arith.index_cast %478 : i32 to index
    %480 = memref.load %arg2[%479] : memref<72xf32, #tpu.memory_space<smem>>
    %c0_419 = arith.constant 0 : index
    %c0_420 = arith.constant 0 : index
    %c1_421 = arith.constant 1 : index
    %c1_422 = arith.constant 1 : index
    %c0_423 = arith.constant 0 : index
    %c1_424 = arith.constant 1 : index
    %481 = vector.load %arg3[%c0_419, %c0_420, %c1_421, %c1_422, %c0_423, %c1_424] : memref<1x2x2x4x9x9xf32, #tpu.memory_space<vmem>>, vector<1x1x1x1x8x8xf32>
    %482 = vector.shape_cast %481 : vector<1x1x1x1x8x8xf32> to vector<8x8xf32>
    %483 = vector.broadcast %480 : f32 to vector<8x8xf32>
    %484 = arith.mulf %483, %482 : vector<8x8xf32>
    %485 = arith.addf %475, %484 : vector<8x8xf32>
    %c9_i32_425 = arith.constant 9 : i32
    %486 = arith.addi %0, %c9_i32_425 : i32
    %c3_i32_426 = arith.constant 3 : i32
    %487 = arith.addi %486, %c3_i32_426 : i32
    %c0_i32_427 = arith.constant 0 : i32
    %488 = arith.addi %487, %c0_i32_427 : i32
    %489 = arith.index_cast %488 : i32 to index
    %490 = memref.load %arg2[%489] : memref<72xf32, #tpu.memory_space<smem>>
    %c0_428 = arith.constant 0 : index
    %c1_429 = arith.constant 1 : index
    %c1_430 = arith.constant 1 : index
    %c1_431 = arith.constant 1 : index
    %c0_432 = arith.constant 0 : index
    %c0_433 = arith.constant 0 : index
    %491 = vector.load %arg3[%c0_428, %c1_429, %c1_430, %c1_431, %c0_432, %c0_433] : memref<1x2x2x4x9x9xf32, #tpu.memory_space<vmem>>, vector<1x1x1x1x8x8xf32>
    %492 = vector.shape_cast %491 : vector<1x1x1x1x8x8xf32> to vector<8x8xf32>
    %493 = vector.broadcast %490 : f32 to vector<8x8xf32>
    %494 = arith.mulf %493, %492 : vector<8x8xf32>
    %495 = arith.addf %485, %494 : vector<8x8xf32>
    %c9_i32_434 = arith.constant 9 : i32
    %496 = arith.addi %0, %c9_i32_434 : i32
    %c3_i32_435 = arith.constant 3 : i32
    %497 = arith.addi %496, %c3_i32_435 : i32
    %c1_i32_436 = arith.constant 1 : i32
    %498 = arith.addi %497, %c1_i32_436 : i32
    %499 = arith.index_cast %498 : i32 to index
    %500 = memref.load %arg2[%499] : memref<72xf32, #tpu.memory_space<smem>>
    %c0_437 = arith.constant 0 : index
    %c1_438 = arith.constant 1 : index
    %c0_439 = arith.constant 0 : index
    %c1_440 = arith.constant 1 : index
    %c0_441 = arith.constant 0 : index
    %c1_442 = arith.constant 1 : index
    %501 = vector.load %arg3[%c0_437, %c1_438, %c0_439, %c1_440, %c0_441, %c1_442] : memref<1x2x2x4x9x9xf32, #tpu.memory_space<vmem>>, vector<1x1x1x1x8x8xf32>
    %502 = vector.shape_cast %501 : vector<1x1x1x1x8x8xf32> to vector<8x8xf32>
    %503 = vector.broadcast %500 : f32 to vector<8x8xf32>
    %504 = arith.mulf %503, %502 : vector<8x8xf32>
    %505 = arith.addf %495, %504 : vector<8x8xf32>
    %c9_i32_443 = arith.constant 9 : i32
    %506 = arith.addi %0, %c9_i32_443 : i32
    %c3_i32_444 = arith.constant 3 : i32
    %507 = arith.addi %506, %c3_i32_444 : i32
    %c2_i32_445 = arith.constant 2 : i32
    %508 = arith.addi %507, %c2_i32_445 : i32
    %509 = arith.index_cast %508 : i32 to index
    %510 = memref.load %arg2[%509] : memref<72xf32, #tpu.memory_space<smem>>
    %c0_446 = arith.constant 0 : index
    %c1_447 = arith.constant 1 : index
    %c1_448 = arith.constant 1 : index
    %c1_449 = arith.constant 1 : index
    %c0_450 = arith.constant 0 : index
    %c1_451 = arith.constant 1 : index
    %511 = vector.load %arg3[%c0_446, %c1_447, %c1_448, %c1_449, %c0_450, %c1_451] : memref<1x2x2x4x9x9xf32, #tpu.memory_space<vmem>>, vector<1x1x1x1x8x8xf32>
    %512 = vector.shape_cast %511 : vector<1x1x1x1x8x8xf32> to vector<8x8xf32>
    %513 = vector.broadcast %510 : f32 to vector<8x8xf32>
    %514 = arith.mulf %513, %512 : vector<8x8xf32>
    %515 = arith.addf %505, %514 : vector<8x8xf32>
    %c9_i32_452 = arith.constant 9 : i32
    %516 = arith.addi %0, %c9_i32_452 : i32
    %c6_i32_453 = arith.constant 6 : i32
    %517 = arith.addi %516, %c6_i32_453 : i32
    %c0_i32_454 = arith.constant 0 : i32
    %518 = arith.addi %517, %c0_i32_454 : i32
    %519 = arith.index_cast %518 : i32 to index
    %520 = memref.load %arg2[%519] : memref<72xf32, #tpu.memory_space<smem>>
    %c0_455 = arith.constant 0 : index
    %c0_456 = arith.constant 0 : index
    %c1_457 = arith.constant 1 : index
    %c1_458 = arith.constant 1 : index
    %c1_459 = arith.constant 1 : index
    %c0_460 = arith.constant 0 : index
    %521 = vector.load %arg3[%c0_455, %c0_456, %c1_457, %c1_458, %c1_459, %c0_460] : memref<1x2x2x4x9x9xf32, #tpu.memory_space<vmem>>, vector<1x1x1x1x8x8xf32>
    %522 = vector.shape_cast %521 : vector<1x1x1x1x8x8xf32> to vector<8x8xf32>
    %523 = vector.broadcast %520 : f32 to vector<8x8xf32>
    %524 = arith.mulf %523, %522 : vector<8x8xf32>
    %525 = arith.addf %515, %524 : vector<8x8xf32>
    %c9_i32_461 = arith.constant 9 : i32
    %526 = arith.addi %0, %c9_i32_461 : i32
    %c6_i32_462 = arith.constant 6 : i32
    %527 = arith.addi %526, %c6_i32_462 : i32
    %c1_i32_463 = arith.constant 1 : i32
    %528 = arith.addi %527, %c1_i32_463 : i32
    %529 = arith.index_cast %528 : i32 to index
    %530 = memref.load %arg2[%529] : memref<72xf32, #tpu.memory_space<smem>>
    %c0_464 = arith.constant 0 : index
    %c0_465 = arith.constant 0 : index
    %c0_466 = arith.constant 0 : index
    %c1_467 = arith.constant 1 : index
    %c1_468 = arith.constant 1 : index
    %c1_469 = arith.constant 1 : index
    %531 = vector.load %arg3[%c0_464, %c0_465, %c0_466, %c1_467, %c1_468, %c1_469] : memref<1x2x2x4x9x9xf32, #tpu.memory_space<vmem>>, vector<1x1x1x1x8x8xf32>
    %532 = vector.shape_cast %531 : vector<1x1x1x1x8x8xf32> to vector<8x8xf32>
    %533 = vector.broadcast %530 : f32 to vector<8x8xf32>
    %534 = arith.mulf %533, %532 : vector<8x8xf32>
    %535 = arith.addf %525, %534 : vector<8x8xf32>
    %c9_i32_470 = arith.constant 9 : i32
    %536 = arith.addi %0, %c9_i32_470 : i32
    %c6_i32_471 = arith.constant 6 : i32
    %537 = arith.addi %536, %c6_i32_471 : i32
    %c2_i32_472 = arith.constant 2 : i32
    %538 = arith.addi %537, %c2_i32_472 : i32
    %539 = arith.index_cast %538 : i32 to index
    %540 = memref.load %arg2[%539] : memref<72xf32, #tpu.memory_space<smem>>
    %c0_473 = arith.constant 0 : index
    %c0_474 = arith.constant 0 : index
    %c1_475 = arith.constant 1 : index
    %c1_476 = arith.constant 1 : index
    %c1_477 = arith.constant 1 : index
    %c1_478 = arith.constant 1 : index
    %541 = vector.load %arg3[%c0_473, %c0_474, %c1_475, %c1_476, %c1_477, %c1_478] : memref<1x2x2x4x9x9xf32, #tpu.memory_space<vmem>>, vector<1x1x1x1x8x8xf32>
    %542 = vector.shape_cast %541 : vector<1x1x1x1x8x8xf32> to vector<8x8xf32>
    %543 = vector.broadcast %540 : f32 to vector<8x8xf32>
    %544 = arith.mulf %543, %542 : vector<8x8xf32>
    %545 = arith.addf %535, %544 : vector<8x8xf32>
    %c18_i32_479 = arith.constant 18 : i32
    %546 = arith.addi %0, %c18_i32_479 : i32
    %c0_i32_480 = arith.constant 0 : i32
    %547 = arith.addi %546, %c0_i32_480 : i32
    %c0_i32_481 = arith.constant 0 : i32
    %548 = arith.addi %547, %c0_i32_481 : i32
    %549 = arith.index_cast %548 : i32 to index
    %550 = memref.load %arg2[%549] : memref<72xf32, #tpu.memory_space<smem>>
    %c0_482 = arith.constant 0 : index
    %c0_483 = arith.constant 0 : index
    %c1_484 = arith.constant 1 : index
    %c2_485 = arith.constant 2 : index
    %c0_486 = arith.constant 0 : index
    %c0_487 = arith.constant 0 : index
    %551 = vector.load %arg3[%c0_482, %c0_483, %c1_484, %c2_485, %c0_486, %c0_487] : memref<1x2x2x4x9x9xf32, #tpu.memory_space<vmem>>, vector<1x1x1x1x8x8xf32>
    %552 = vector.shape_cast %551 : vector<1x1x1x1x8x8xf32> to vector<8x8xf32>
    %553 = vector.broadcast %550 : f32 to vector<8x8xf32>
    %554 = arith.mulf %553, %552 : vector<8x8xf32>
    %555 = arith.addf %545, %554 : vector<8x8xf32>
    %c18_i32_488 = arith.constant 18 : i32
    %556 = arith.addi %0, %c18_i32_488 : i32
    %c0_i32_489 = arith.constant 0 : i32
    %557 = arith.addi %556, %c0_i32_489 : i32
    %c1_i32_490 = arith.constant 1 : i32
    %558 = arith.addi %557, %c1_i32_490 : i32
    %559 = arith.index_cast %558 : i32 to index
    %560 = memref.load %arg2[%559] : memref<72xf32, #tpu.memory_space<smem>>
    %c0_491 = arith.constant 0 : index
    %c0_492 = arith.constant 0 : index
    %c0_493 = arith.constant 0 : index
    %c2_494 = arith.constant 2 : index
    %c0_495 = arith.constant 0 : index
    %c1_496 = arith.constant 1 : index
    %561 = vector.load %arg3[%c0_491, %c0_492, %c0_493, %c2_494, %c0_495, %c1_496] : memref<1x2x2x4x9x9xf32, #tpu.memory_space<vmem>>, vector<1x1x1x1x8x8xf32>
    %562 = vector.shape_cast %561 : vector<1x1x1x1x8x8xf32> to vector<8x8xf32>
    %563 = vector.broadcast %560 : f32 to vector<8x8xf32>
    %564 = arith.mulf %563, %562 : vector<8x8xf32>
    %565 = arith.addf %555, %564 : vector<8x8xf32>
    %c18_i32_497 = arith.constant 18 : i32
    %566 = arith.addi %0, %c18_i32_497 : i32
    %c0_i32_498 = arith.constant 0 : i32
    %567 = arith.addi %566, %c0_i32_498 : i32
    %c2_i32_499 = arith.constant 2 : i32
    %568 = arith.addi %567, %c2_i32_499 : i32
    %569 = arith.index_cast %568 : i32 to index
    %570 = memref.load %arg2[%569] : memref<72xf32, #tpu.memory_space<smem>>
    %c0_500 = arith.constant 0 : index
    %c0_501 = arith.constant 0 : index
    %c1_502 = arith.constant 1 : index
    %c2_503 = arith.constant 2 : index
    %c0_504 = arith.constant 0 : index
    %c1_505 = arith.constant 1 : index
    %571 = vector.load %arg3[%c0_500, %c0_501, %c1_502, %c2_503, %c0_504, %c1_505] : memref<1x2x2x4x9x9xf32, #tpu.memory_space<vmem>>, vector<1x1x1x1x8x8xf32>
    %572 = vector.shape_cast %571 : vector<1x1x1x1x8x8xf32> to vector<8x8xf32>
    %573 = vector.broadcast %570 : f32 to vector<8x8xf32>
    %574 = arith.mulf %573, %572 : vector<8x8xf32>
    %575 = arith.addf %565, %574 : vector<8x8xf32>
    %c18_i32_506 = arith.constant 18 : i32
    %576 = arith.addi %0, %c18_i32_506 : i32
    %c3_i32_507 = arith.constant 3 : i32
    %577 = arith.addi %576, %c3_i32_507 : i32
    %c0_i32_508 = arith.constant 0 : i32
    %578 = arith.addi %577, %c0_i32_508 : i32
    %579 = arith.index_cast %578 : i32 to index
    %580 = memref.load %arg2[%579] : memref<72xf32, #tpu.memory_space<smem>>
    %c0_509 = arith.constant 0 : index
    %c1_510 = arith.constant 1 : index
    %c1_511 = arith.constant 1 : index
    %c2_512 = arith.constant 2 : index
    %c0_513 = arith.constant 0 : index
    %c0_514 = arith.constant 0 : index
    %581 = vector.load %arg3[%c0_509, %c1_510, %c1_511, %c2_512, %c0_513, %c0_514] : memref<1x2x2x4x9x9xf32, #tpu.memory_space<vmem>>, vector<1x1x1x1x8x8xf32>
    %582 = vector.shape_cast %581 : vector<1x1x1x1x8x8xf32> to vector<8x8xf32>
    %583 = vector.broadcast %580 : f32 to vector<8x8xf32>
    %584 = arith.mulf %583, %582 : vector<8x8xf32>
    %585 = arith.addf %575, %584 : vector<8x8xf32>
    %c18_i32_515 = arith.constant 18 : i32
    %586 = arith.addi %0, %c18_i32_515 : i32
    %c3_i32_516 = arith.constant 3 : i32
    %587 = arith.addi %586, %c3_i32_516 : i32
    %c1_i32_517 = arith.constant 1 : i32
    %588 = arith.addi %587, %c1_i32_517 : i32
    %589 = arith.index_cast %588 : i32 to index
    %590 = memref.load %arg2[%589] : memref<72xf32, #tpu.memory_space<smem>>
    %c0_518 = arith.constant 0 : index
    %c1_519 = arith.constant 1 : index
    %c0_520 = arith.constant 0 : index
    %c2_521 = arith.constant 2 : index
    %c0_522 = arith.constant 0 : index
    %c1_523 = arith.constant 1 : index
    %591 = vector.load %arg3[%c0_518, %c1_519, %c0_520, %c2_521, %c0_522, %c1_523] : memref<1x2x2x4x9x9xf32, #tpu.memory_space<vmem>>, vector<1x1x1x1x8x8xf32>
    %592 = vector.shape_cast %591 : vector<1x1x1x1x8x8xf32> to vector<8x8xf32>
    %593 = vector.broadcast %590 : f32 to vector<8x8xf32>
    %594 = arith.mulf %593, %592 : vector<8x8xf32>
    %595 = arith.addf %585, %594 : vector<8x8xf32>
    %c18_i32_524 = arith.constant 18 : i32
    %596 = arith.addi %0, %c18_i32_524 : i32
    %c3_i32_525 = arith.constant 3 : i32
    %597 = arith.addi %596, %c3_i32_525 : i32
    %c2_i32_526 = arith.constant 2 : i32
    %598 = arith.addi %597, %c2_i32_526 : i32
    %599 = arith.index_cast %598 : i32 to index
    %600 = memref.load %arg2[%599] : memref<72xf32, #tpu.memory_space<smem>>
    %c0_527 = arith.constant 0 : index
    %c1_528 = arith.constant 1 : index
    %c1_529 = arith.constant 1 : index
    %c2_530 = arith.constant 2 : index
    %c0_531 = arith.constant 0 : index
    %c1_532 = arith.constant 1 : index
    %601 = vector.load %arg3[%c0_527, %c1_528, %c1_529, %c2_530, %c0_531, %c1_532] : memref<1x2x2x4x9x9xf32, #tpu.memory_space<vmem>>, vector<1x1x1x1x8x8xf32>
    %602 = vector.shape_cast %601 : vector<1x1x1x1x8x8xf32> to vector<8x8xf32>
    %603 = vector.broadcast %600 : f32 to vector<8x8xf32>
    %604 = arith.mulf %603, %602 : vector<8x8xf32>
    %605 = arith.addf %595, %604 : vector<8x8xf32>
    %c18_i32_533 = arith.constant 18 : i32
    %606 = arith.addi %0, %c18_i32_533 : i32
    %c6_i32_534 = arith.constant 6 : i32
    %607 = arith.addi %606, %c6_i32_534 : i32
    %c0_i32_535 = arith.constant 0 : i32
    %608 = arith.addi %607, %c0_i32_535 : i32
    %609 = arith.index_cast %608 : i32 to index
    %610 = memref.load %arg2[%609] : memref<72xf32, #tpu.memory_space<smem>>
    %c0_536 = arith.constant 0 : index
    %c0_537 = arith.constant 0 : index
    %c1_538 = arith.constant 1 : index
    %c2_539 = arith.constant 2 : index
    %c1_540 = arith.constant 1 : index
    %c0_541 = arith.constant 0 : index
    %611 = vector.load %arg3[%c0_536, %c0_537, %c1_538, %c2_539, %c1_540, %c0_541] : memref<1x2x2x4x9x9xf32, #tpu.memory_space<vmem>>, vector<1x1x1x1x8x8xf32>
    %612 = vector.shape_cast %611 : vector<1x1x1x1x8x8xf32> to vector<8x8xf32>
    %613 = vector.broadcast %610 : f32 to vector<8x8xf32>
    %614 = arith.mulf %613, %612 : vector<8x8xf32>
    %615 = arith.addf %605, %614 : vector<8x8xf32>
    %c18_i32_542 = arith.constant 18 : i32
    %616 = arith.addi %0, %c18_i32_542 : i32
    %c6_i32_543 = arith.constant 6 : i32
    %617 = arith.addi %616, %c6_i32_543 : i32
    %c1_i32_544 = arith.constant 1 : i32
    %618 = arith.addi %617, %c1_i32_544 : i32
    %619 = arith.index_cast %618 : i32 to index
    %620 = memref.load %arg2[%619] : memref<72xf32, #tpu.memory_space<smem>>
    %c0_545 = arith.constant 0 : index
    %c0_546 = arith.constant 0 : index
    %c0_547 = arith.constant 0 : index
    %c2_548 = arith.constant 2 : index
    %c1_549 = arith.constant 1 : index
    %c1_550 = arith.constant 1 : index
    %621 = vector.load %arg3[%c0_545, %c0_546, %c0_547, %c2_548, %c1_549, %c1_550] : memref<1x2x2x4x9x9xf32, #tpu.memory_space<vmem>>, vector<1x1x1x1x8x8xf32>
    %622 = vector.shape_cast %621 : vector<1x1x1x1x8x8xf32> to vector<8x8xf32>
    %623 = vector.broadcast %620 : f32 to vector<8x8xf32>
    %624 = arith.mulf %623, %622 : vector<8x8xf32>
    %625 = arith.addf %615, %624 : vector<8x8xf32>
    %c18_i32_551 = arith.constant 18 : i32
    %626 = arith.addi %0, %c18_i32_551 : i32
    %c6_i32_552 = arith.constant 6 : i32
    %627 = arith.addi %626, %c6_i32_552 : i32
    %c2_i32_553 = arith.constant 2 : i32
    %628 = arith.addi %627, %c2_i32_553 : i32
    %629 = arith.index_cast %628 : i32 to index
    %630 = memref.load %arg2[%629] : memref<72xf32, #tpu.memory_space<smem>>
    %c0_554 = arith.constant 0 : index
    %c0_555 = arith.constant 0 : index
    %c1_556 = arith.constant 1 : index
    %c2_557 = arith.constant 2 : index
    %c1_558 = arith.constant 1 : index
    %c1_559 = arith.constant 1 : index
    %631 = vector.load %arg3[%c0_554, %c0_555, %c1_556, %c2_557, %c1_558, %c1_559] : memref<1x2x2x4x9x9xf32, #tpu.memory_space<vmem>>, vector<1x1x1x1x8x8xf32>
    %632 = vector.shape_cast %631 : vector<1x1x1x1x8x8xf32> to vector<8x8xf32>
    %633 = vector.broadcast %630 : f32 to vector<8x8xf32>
    %634 = arith.mulf %633, %632 : vector<8x8xf32>
    %635 = arith.addf %625, %634 : vector<8x8xf32>
    %c27_i32_560 = arith.constant 27 : i32
    %636 = arith.addi %0, %c27_i32_560 : i32
    %c0_i32_561 = arith.constant 0 : i32
    %637 = arith.addi %636, %c0_i32_561 : i32
    %c0_i32_562 = arith.constant 0 : i32
    %638 = arith.addi %637, %c0_i32_562 : i32
    %639 = arith.index_cast %638 : i32 to index
    %640 = memref.load %arg2[%639] : memref<72xf32, #tpu.memory_space<smem>>
    %c0_563 = arith.constant 0 : index
    %c0_564 = arith.constant 0 : index
    %c1_565 = arith.constant 1 : index
    %c3_566 = arith.constant 3 : index
    %c0_567 = arith.constant 0 : index
    %c0_568 = arith.constant 0 : index
    %641 = vector.load %arg3[%c0_563, %c0_564, %c1_565, %c3_566, %c0_567, %c0_568] : memref<1x2x2x4x9x9xf32, #tpu.memory_space<vmem>>, vector<1x1x1x1x8x8xf32>
    %642 = vector.shape_cast %641 : vector<1x1x1x1x8x8xf32> to vector<8x8xf32>
    %643 = vector.broadcast %640 : f32 to vector<8x8xf32>
    %644 = arith.mulf %643, %642 : vector<8x8xf32>
    %645 = arith.addf %635, %644 : vector<8x8xf32>
    %c27_i32_569 = arith.constant 27 : i32
    %646 = arith.addi %0, %c27_i32_569 : i32
    %c0_i32_570 = arith.constant 0 : i32
    %647 = arith.addi %646, %c0_i32_570 : i32
    %c1_i32_571 = arith.constant 1 : i32
    %648 = arith.addi %647, %c1_i32_571 : i32
    %649 = arith.index_cast %648 : i32 to index
    %650 = memref.load %arg2[%649] : memref<72xf32, #tpu.memory_space<smem>>
    %c0_572 = arith.constant 0 : index
    %c0_573 = arith.constant 0 : index
    %c0_574 = arith.constant 0 : index
    %c3_575 = arith.constant 3 : index
    %c0_576 = arith.constant 0 : index
    %c1_577 = arith.constant 1 : index
    %651 = vector.load %arg3[%c0_572, %c0_573, %c0_574, %c3_575, %c0_576, %c1_577] : memref<1x2x2x4x9x9xf32, #tpu.memory_space<vmem>>, vector<1x1x1x1x8x8xf32>
    %652 = vector.shape_cast %651 : vector<1x1x1x1x8x8xf32> to vector<8x8xf32>
    %653 = vector.broadcast %650 : f32 to vector<8x8xf32>
    %654 = arith.mulf %653, %652 : vector<8x8xf32>
    %655 = arith.addf %645, %654 : vector<8x8xf32>
    %c27_i32_578 = arith.constant 27 : i32
    %656 = arith.addi %0, %c27_i32_578 : i32
    %c0_i32_579 = arith.constant 0 : i32
    %657 = arith.addi %656, %c0_i32_579 : i32
    %c2_i32_580 = arith.constant 2 : i32
    %658 = arith.addi %657, %c2_i32_580 : i32
    %659 = arith.index_cast %658 : i32 to index
    %660 = memref.load %arg2[%659] : memref<72xf32, #tpu.memory_space<smem>>
    %c0_581 = arith.constant 0 : index
    %c0_582 = arith.constant 0 : index
    %c1_583 = arith.constant 1 : index
    %c3_584 = arith.constant 3 : index
    %c0_585 = arith.constant 0 : index
    %c1_586 = arith.constant 1 : index
    %661 = vector.load %arg3[%c0_581, %c0_582, %c1_583, %c3_584, %c0_585, %c1_586] : memref<1x2x2x4x9x9xf32, #tpu.memory_space<vmem>>, vector<1x1x1x1x8x8xf32>
    %662 = vector.shape_cast %661 : vector<1x1x1x1x8x8xf32> to vector<8x8xf32>
    %663 = vector.broadcast %660 : f32 to vector<8x8xf32>
    %664 = arith.mulf %663, %662 : vector<8x8xf32>
    %665 = arith.addf %655, %664 : vector<8x8xf32>
    %c27_i32_587 = arith.constant 27 : i32
    %666 = arith.addi %0, %c27_i32_587 : i32
    %c3_i32_588 = arith.constant 3 : i32
    %667 = arith.addi %666, %c3_i32_588 : i32
    %c0_i32_589 = arith.constant 0 : i32
    %668 = arith.addi %667, %c0_i32_589 : i32
    %669 = arith.index_cast %668 : i32 to index
    %670 = memref.load %arg2[%669] : memref<72xf32, #tpu.memory_space<smem>>
    %c0_590 = arith.constant 0 : index
    %c1_591 = arith.constant 1 : index
    %c1_592 = arith.constant 1 : index
    %c3_593 = arith.constant 3 : index
    %c0_594 = arith.constant 0 : index
    %c0_595 = arith.constant 0 : index
    %671 = vector.load %arg3[%c0_590, %c1_591, %c1_592, %c3_593, %c0_594, %c0_595] : memref<1x2x2x4x9x9xf32, #tpu.memory_space<vmem>>, vector<1x1x1x1x8x8xf32>
    %672 = vector.shape_cast %671 : vector<1x1x1x1x8x8xf32> to vector<8x8xf32>
    %673 = vector.broadcast %670 : f32 to vector<8x8xf32>
    %674 = arith.mulf %673, %672 : vector<8x8xf32>
    %675 = arith.addf %665, %674 : vector<8x8xf32>
    %c27_i32_596 = arith.constant 27 : i32
    %676 = arith.addi %0, %c27_i32_596 : i32
    %c3_i32_597 = arith.constant 3 : i32
    %677 = arith.addi %676, %c3_i32_597 : i32
    %c1_i32_598 = arith.constant 1 : i32
    %678 = arith.addi %677, %c1_i32_598 : i32
    %679 = arith.index_cast %678 : i32 to index
    %680 = memref.load %arg2[%679] : memref<72xf32, #tpu.memory_space<smem>>
    %c0_599 = arith.constant 0 : index
    %c1_600 = arith.constant 1 : index
    %c0_601 = arith.constant 0 : index
    %c3_602 = arith.constant 3 : index
    %c0_603 = arith.constant 0 : index
    %c1_604 = arith.constant 1 : index
    %681 = vector.load %arg3[%c0_599, %c1_600, %c0_601, %c3_602, %c0_603, %c1_604] : memref<1x2x2x4x9x9xf32, #tpu.memory_space<vmem>>, vector<1x1x1x1x8x8xf32>
    %682 = vector.shape_cast %681 : vector<1x1x1x1x8x8xf32> to vector<8x8xf32>
    %683 = vector.broadcast %680 : f32 to vector<8x8xf32>
    %684 = arith.mulf %683, %682 : vector<8x8xf32>
    %685 = arith.addf %675, %684 : vector<8x8xf32>
    %c27_i32_605 = arith.constant 27 : i32
    %686 = arith.addi %0, %c27_i32_605 : i32
    %c3_i32_606 = arith.constant 3 : i32
    %687 = arith.addi %686, %c3_i32_606 : i32
    %c2_i32_607 = arith.constant 2 : i32
    %688 = arith.addi %687, %c2_i32_607 : i32
    %689 = arith.index_cast %688 : i32 to index
    %690 = memref.load %arg2[%689] : memref<72xf32, #tpu.memory_space<smem>>
    %c0_608 = arith.constant 0 : index
    %c1_609 = arith.constant 1 : index
    %c1_610 = arith.constant 1 : index
    %c3_611 = arith.constant 3 : index
    %c0_612 = arith.constant 0 : index
    %c1_613 = arith.constant 1 : index
    %691 = vector.load %arg3[%c0_608, %c1_609, %c1_610, %c3_611, %c0_612, %c1_613] : memref<1x2x2x4x9x9xf32, #tpu.memory_space<vmem>>, vector<1x1x1x1x8x8xf32>
    %692 = vector.shape_cast %691 : vector<1x1x1x1x8x8xf32> to vector<8x8xf32>
    %693 = vector.broadcast %690 : f32 to vector<8x8xf32>
    %694 = arith.mulf %693, %692 : vector<8x8xf32>
    %695 = arith.addf %685, %694 : vector<8x8xf32>
    %c27_i32_614 = arith.constant 27 : i32
    %696 = arith.addi %0, %c27_i32_614 : i32
    %c6_i32_615 = arith.constant 6 : i32
    %697 = arith.addi %696, %c6_i32_615 : i32
    %c0_i32_616 = arith.constant 0 : i32
    %698 = arith.addi %697, %c0_i32_616 : i32
    %699 = arith.index_cast %698 : i32 to index
    %700 = memref.load %arg2[%699] : memref<72xf32, #tpu.memory_space<smem>>
    %c0_617 = arith.constant 0 : index
    %c0_618 = arith.constant 0 : index
    %c1_619 = arith.constant 1 : index
    %c3_620 = arith.constant 3 : index
    %c1_621 = arith.constant 1 : index
    %c0_622 = arith.constant 0 : index
    %701 = vector.load %arg3[%c0_617, %c0_618, %c1_619, %c3_620, %c1_621, %c0_622] : memref<1x2x2x4x9x9xf32, #tpu.memory_space<vmem>>, vector<1x1x1x1x8x8xf32>
    %702 = vector.shape_cast %701 : vector<1x1x1x1x8x8xf32> to vector<8x8xf32>
    %703 = vector.broadcast %700 : f32 to vector<8x8xf32>
    %704 = arith.mulf %703, %702 : vector<8x8xf32>
    %705 = arith.addf %695, %704 : vector<8x8xf32>
    %c27_i32_623 = arith.constant 27 : i32
    %706 = arith.addi %0, %c27_i32_623 : i32
    %c6_i32_624 = arith.constant 6 : i32
    %707 = arith.addi %706, %c6_i32_624 : i32
    %c1_i32_625 = arith.constant 1 : i32
    %708 = arith.addi %707, %c1_i32_625 : i32
    %709 = arith.index_cast %708 : i32 to index
    %710 = memref.load %arg2[%709] : memref<72xf32, #tpu.memory_space<smem>>
    %c0_626 = arith.constant 0 : index
    %c0_627 = arith.constant 0 : index
    %c0_628 = arith.constant 0 : index
    %c3_629 = arith.constant 3 : index
    %c1_630 = arith.constant 1 : index
    %c1_631 = arith.constant 1 : index
    %711 = vector.load %arg3[%c0_626, %c0_627, %c0_628, %c3_629, %c1_630, %c1_631] : memref<1x2x2x4x9x9xf32, #tpu.memory_space<vmem>>, vector<1x1x1x1x8x8xf32>
    %712 = vector.shape_cast %711 : vector<1x1x1x1x8x8xf32> to vector<8x8xf32>
    %713 = vector.broadcast %710 : f32 to vector<8x8xf32>
    %714 = arith.mulf %713, %712 : vector<8x8xf32>
    %715 = arith.addf %705, %714 : vector<8x8xf32>
    %c27_i32_632 = arith.constant 27 : i32
    %716 = arith.addi %0, %c27_i32_632 : i32
    %c6_i32_633 = arith.constant 6 : i32
    %717 = arith.addi %716, %c6_i32_633 : i32
    %c2_i32_634 = arith.constant 2 : i32
    %718 = arith.addi %717, %c2_i32_634 : i32
    %719 = arith.index_cast %718 : i32 to index
    %720 = memref.load %arg2[%719] : memref<72xf32, #tpu.memory_space<smem>>
    %c0_635 = arith.constant 0 : index
    %c0_636 = arith.constant 0 : index
    %c1_637 = arith.constant 1 : index
    %c3_638 = arith.constant 3 : index
    %c1_639 = arith.constant 1 : index
    %c1_640 = arith.constant 1 : index
    %721 = vector.load %arg3[%c0_635, %c0_636, %c1_637, %c3_638, %c1_639, %c1_640] : memref<1x2x2x4x9x9xf32, #tpu.memory_space<vmem>>, vector<1x1x1x1x8x8xf32>
    %722 = vector.shape_cast %721 : vector<1x1x1x1x8x8xf32> to vector<8x8xf32>
    %723 = vector.broadcast %720 : f32 to vector<8x8xf32>
    %724 = arith.mulf %723, %722 : vector<8x8xf32>
    %725 = arith.addf %715, %724 : vector<8x8xf32>
    %c0_641 = arith.constant 0 : index
    %c1_642 = arith.constant 1 : index
    %c0_643 = arith.constant 0 : index
    %c0_644 = arith.constant 0 : index
    %726 = vector.load %arg4[%c0_641, %c1_642, %c0_643, %c0_644] : memref<1x4x8x8xf32, #tpu.memory_space<vmem>>, vector<1x1x8x8xf32>
    %727 = vector.shape_cast %726 : vector<1x1x8x8xf32> to vector<8x8xf32>
    %728 = vector.shape_cast %725 : vector<8x8xf32> to vector<1x1x8x8xf32>
    tpu.vector_store %arg4[%c0_641, %c1_642, %c0_643, %c0_644], %728 {strides = array<i32>} : memref<1x4x8x8xf32, #tpu.memory_space<vmem>>, vector<1x1x8x8xf32>,
    %cst_645 = arith.constant 0.000000e+00 : f32
    %729 = vector.broadcast %cst_645 : f32 to vector<8x8xf32>
    %c0_i32_646 = arith.constant 0 : i32
    %730 = arith.addi %0, %c0_i32_646 : i32
    %c0_i32_647 = arith.constant 0 : i32
    %731 = arith.addi %730, %c0_i32_647 : i32
    %c0_i32_648 = arith.constant 0 : i32
    %732 = arith.addi %731, %c0_i32_648 : i32
    %733 = arith.index_cast %732 : i32 to index
    %734 = memref.load %arg2[%733] : memref<72xf32, #tpu.memory_space<smem>>
    %c0_649 = arith.constant 0 : index
    %c1_650 = arith.constant 1 : index
    %c0_651 = arith.constant 0 : index
    %c0_652 = arith.constant 0 : index
    %c0_653 = arith.constant 0 : index
    %c0_654 = arith.constant 0 : index
    %735 = vector.load %arg3[%c0_649, %c1_650, %c0_651, %c0_652, %c0_653, %c0_654] : memref<1x2x2x4x9x9xf32, #tpu.memory_space<vmem>>, vector<1x1x1x1x8x8xf32>
    %736 = vector.shape_cast %735 : vector<1x1x1x1x8x8xf32> to vector<8x8xf32>
    %737 = vector.broadcast %734 : f32 to vector<8x8xf32>
    %738 = arith.mulf %737, %736 : vector<8x8xf32>
    %739 = arith.addf %729, %738 : vector<8x8xf32>
    %c0_i32_655 = arith.constant 0 : i32
    %740 = arith.addi %0, %c0_i32_655 : i32
    %c0_i32_656 = arith.constant 0 : i32
    %741 = arith.addi %740, %c0_i32_656 : i32
    %c1_i32_657 = arith.constant 1 : i32
    %742 = arith.addi %741, %c1_i32_657 : i32
    %743 = arith.index_cast %742 : i32 to index
    %744 = memref.load %arg2[%743] : memref<72xf32, #tpu.memory_space<smem>>
    %c0_658 = arith.constant 0 : index
    %c1_659 = arith.constant 1 : index
    %c1_660 = arith.constant 1 : index
    %c0_661 = arith.constant 0 : index
    %c0_662 = arith.constant 0 : index
    %c0_663 = arith.constant 0 : index
    %745 = vector.load %arg3[%c0_658, %c1_659, %c1_660, %c0_661, %c0_662, %c0_663] : memref<1x2x2x4x9x9xf32, #tpu.memory_space<vmem>>, vector<1x1x1x1x8x8xf32>
    %746 = vector.shape_cast %745 : vector<1x1x1x1x8x8xf32> to vector<8x8xf32>
    %747 = vector.broadcast %744 : f32 to vector<8x8xf32>
    %748 = arith.mulf %747, %746 : vector<8x8xf32>
    %749 = arith.addf %739, %748 : vector<8x8xf32>
    %c0_i32_664 = arith.constant 0 : i32
    %750 = arith.addi %0, %c0_i32_664 : i32
    %c0_i32_665 = arith.constant 0 : i32
    %751 = arith.addi %750, %c0_i32_665 : i32
    %c2_i32_666 = arith.constant 2 : i32
    %752 = arith.addi %751, %c2_i32_666 : i32
    %753 = arith.index_cast %752 : i32 to index
    %754 = memref.load %arg2[%753] : memref<72xf32, #tpu.memory_space<smem>>
    %c0_667 = arith.constant 0 : index
    %c1_668 = arith.constant 1 : index
    %c0_669 = arith.constant 0 : index
    %c0_670 = arith.constant 0 : index
    %c0_671 = arith.constant 0 : index
    %c1_672 = arith.constant 1 : index
    %755 = vector.load %arg3[%c0_667, %c1_668, %c0_669, %c0_670, %c0_671, %c1_672] : memref<1x2x2x4x9x9xf32, #tpu.memory_space<vmem>>, vector<1x1x1x1x8x8xf32>
    %756 = vector.shape_cast %755 : vector<1x1x1x1x8x8xf32> to vector<8x8xf32>
    %757 = vector.broadcast %754 : f32 to vector<8x8xf32>
    %758 = arith.mulf %757, %756 : vector<8x8xf32>
    %759 = arith.addf %749, %758 : vector<8x8xf32>
    %c0_i32_673 = arith.constant 0 : i32
    %760 = arith.addi %0, %c0_i32_673 : i32
    %c3_i32_674 = arith.constant 3 : i32
    %761 = arith.addi %760, %c3_i32_674 : i32
    %c0_i32_675 = arith.constant 0 : i32
    %762 = arith.addi %761, %c0_i32_675 : i32
    %763 = arith.index_cast %762 : i32 to index
    %764 = memref.load %arg2[%763] : memref<72xf32, #tpu.memory_space<smem>>
    %c0_676 = arith.constant 0 : index
    %c0_677 = arith.constant 0 : index
    %c0_678 = arith.constant 0 : index
    %c0_679 = arith.constant 0 : index
    %c1_680 = arith.constant 1 : index
    %c0_681 = arith.constant 0 : index
    %765 = vector.load %arg3[%c0_676, %c0_677, %c0_678, %c0_679, %c1_680, %c0_681] : memref<1x2x2x4x9x9xf32, #tpu.memory_space<vmem>>, vector<1x1x1x1x8x8xf32>
    %766 = vector.shape_cast %765 : vector<1x1x1x1x8x8xf32> to vector<8x8xf32>
    %767 = vector.broadcast %764 : f32 to vector<8x8xf32>
    %768 = arith.mulf %767, %766 : vector<8x8xf32>
    %769 = arith.addf %759, %768 : vector<8x8xf32>
    %c0_i32_682 = arith.constant 0 : i32
    %770 = arith.addi %0, %c0_i32_682 : i32
    %c3_i32_683 = arith.constant 3 : i32
    %771 = arith.addi %770, %c3_i32_683 : i32
    %c1_i32_684 = arith.constant 1 : i32
    %772 = arith.addi %771, %c1_i32_684 : i32
    %773 = arith.index_cast %772 : i32 to index
    %774 = memref.load %arg2[%773] : memref<72xf32, #tpu.memory_space<smem>>
    %c0_685 = arith.constant 0 : index
    %c0_686 = arith.constant 0 : index
    %c1_687 = arith.constant 1 : index
    %c0_688 = arith.constant 0 : index
    %c1_689 = arith.constant 1 : index
    %c0_690 = arith.constant 0 : index
    %775 = vector.load %arg3[%c0_685, %c0_686, %c1_687, %c0_688, %c1_689, %c0_690] : memref<1x2x2x4x9x9xf32, #tpu.memory_space<vmem>>, vector<1x1x1x1x8x8xf32>
    %776 = vector.shape_cast %775 : vector<1x1x1x1x8x8xf32> to vector<8x8xf32>
    %777 = vector.broadcast %774 : f32 to vector<8x8xf32>
    %778 = arith.mulf %777, %776 : vector<8x8xf32>
    %779 = arith.addf %769, %778 : vector<8x8xf32>
    %c0_i32_691 = arith.constant 0 : i32
    %780 = arith.addi %0, %c0_i32_691 : i32
    %c3_i32_692 = arith.constant 3 : i32
    %781 = arith.addi %780, %c3_i32_692 : i32
    %c2_i32_693 = arith.constant 2 : i32
    %782 = arith.addi %781, %c2_i32_693 : i32
    %783 = arith.index_cast %782 : i32 to index
    %784 = memref.load %arg2[%783] : memref<72xf32, #tpu.memory_space<smem>>
    %c0_694 = arith.constant 0 : index
    %c0_695 = arith.constant 0 : index
    %c0_696 = arith.constant 0 : index
    %c0_697 = arith.constant 0 : index
    %c1_698 = arith.constant 1 : index
    %c1_699 = arith.constant 1 : index
    %785 = vector.load %arg3[%c0_694, %c0_695, %c0_696, %c0_697, %c1_698, %c1_699] : memref<1x2x2x4x9x9xf32, #tpu.memory_space<vmem>>, vector<1x1x1x1x8x8xf32>
    %786 = vector.shape_cast %785 : vector<1x1x1x1x8x8xf32> to vector<8x8xf32>
    %787 = vector.broadcast %784 : f32 to vector<8x8xf32>
    %788 = arith.mulf %787, %786 : vector<8x8xf32>
    %789 = arith.addf %779, %788 : vector<8x8xf32>
    %c0_i32_700 = arith.constant 0 : i32
    %790 = arith.addi %0, %c0_i32_700 : i32
    %c6_i32_701 = arith.constant 6 : i32
    %791 = arith.addi %790, %c6_i32_701 : i32
    %c0_i32_702 = arith.constant 0 : i32
    %792 = arith.addi %791, %c0_i32_702 : i32
    %793 = arith.index_cast %792 : i32 to index
    %794 = memref.load %arg2[%793] : memref<72xf32, #tpu.memory_space<smem>>
    %c0_703 = arith.constant 0 : index
    %c1_704 = arith.constant 1 : index
    %c0_705 = arith.constant 0 : index
    %c0_706 = arith.constant 0 : index
    %c1_707 = arith.constant 1 : index
    %c0_708 = arith.constant 0 : index
    %795 = vector.load %arg3[%c0_703, %c1_704, %c0_705, %c0_706, %c1_707, %c0_708] : memref<1x2x2x4x9x9xf32, #tpu.memory_space<vmem>>, vector<1x1x1x1x8x8xf32>
    %796 = vector.shape_cast %795 : vector<1x1x1x1x8x8xf32> to vector<8x8xf32>
    %797 = vector.broadcast %794 : f32 to vector<8x8xf32>
    %798 = arith.mulf %797, %796 : vector<8x8xf32>
    %799 = arith.addf %789, %798 : vector<8x8xf32>
    %c0_i32_709 = arith.constant 0 : i32
    %800 = arith.addi %0, %c0_i32_709 : i32
    %c6_i32_710 = arith.constant 6 : i32
    %801 = arith.addi %800, %c6_i32_710 : i32
    %c1_i32_711 = arith.constant 1 : i32
    %802 = arith.addi %801, %c1_i32_711 : i32
    %803 = arith.index_cast %802 : i32 to index
    %804 = memref.load %arg2[%803] : memref<72xf32, #tpu.memory_space<smem>>
    %c0_712 = arith.constant 0 : index
    %c1_713 = arith.constant 1 : index
    %c1_714 = arith.constant 1 : index
    %c0_715 = arith.constant 0 : index
    %c1_716 = arith.constant 1 : index
    %c0_717 = arith.constant 0 : index
    %805 = vector.load %arg3[%c0_712, %c1_713, %c1_714, %c0_715, %c1_716, %c0_717] : memref<1x2x2x4x9x9xf32, #tpu.memory_space<vmem>>, vector<1x1x1x1x8x8xf32>
    %806 = vector.shape_cast %805 : vector<1x1x1x1x8x8xf32> to vector<8x8xf32>
    %807 = vector.broadcast %804 : f32 to vector<8x8xf32>
    %808 = arith.mulf %807, %806 : vector<8x8xf32>
    %809 = arith.addf %799, %808 : vector<8x8xf32>
    %c0_i32_718 = arith.constant 0 : i32
    %810 = arith.addi %0, %c0_i32_718 : i32
    %c6_i32_719 = arith.constant 6 : i32
    %811 = arith.addi %810, %c6_i32_719 : i32
    %c2_i32_720 = arith.constant 2 : i32
    %812 = arith.addi %811, %c2_i32_720 : i32
    %813 = arith.index_cast %812 : i32 to index
    %814 = memref.load %arg2[%813] : memref<72xf32, #tpu.memory_space<smem>>
    %c0_721 = arith.constant 0 : index
    %c1_722 = arith.constant 1 : index
    %c0_723 = arith.constant 0 : index
    %c0_724 = arith.constant 0 : index
    %c1_725 = arith.constant 1 : index
    %c1_726 = arith.constant 1 : index
    %815 = vector.load %arg3[%c0_721, %c1_722, %c0_723, %c0_724, %c1_725, %c1_726] : memref<1x2x2x4x9x9xf32, #tpu.memory_space<vmem>>, vector<1x1x1x1x8x8xf32>
    %816 = vector.shape_cast %815 : vector<1x1x1x1x8x8xf32> to vector<8x8xf32>
    %817 = vector.broadcast %814 : f32 to vector<8x8xf32>
    %818 = arith.mulf %817, %816 : vector<8x8xf32>
    %819 = arith.addf %809, %818 : vector<8x8xf32>
    %c9_i32_727 = arith.constant 9 : i32
    %820 = arith.addi %0, %c9_i32_727 : i32
    %c0_i32_728 = arith.constant 0 : i32
    %821 = arith.addi %820, %c0_i32_728 : i32
    %c0_i32_729 = arith.constant 0 : i32
    %822 = arith.addi %821, %c0_i32_729 : i32
    %823 = arith.index_cast %822 : i32 to index
    %824 = memref.load %arg2[%823] : memref<72xf32, #tpu.memory_space<smem>>
    %c0_730 = arith.constant 0 : index
    %c1_731 = arith.constant 1 : index
    %c0_732 = arith.constant 0 : index
    %c1_733 = arith.constant 1 : index
    %c0_734 = arith.constant 0 : index
    %c0_735 = arith.constant 0 : index
    %825 = vector.load %arg3[%c0_730, %c1_731, %c0_732, %c1_733, %c0_734, %c0_735] : memref<1x2x2x4x9x9xf32, #tpu.memory_space<vmem>>, vector<1x1x1x1x8x8xf32>
    %826 = vector.shape_cast %825 : vector<1x1x1x1x8x8xf32> to vector<8x8xf32>
    %827 = vector.broadcast %824 : f32 to vector<8x8xf32>
    %828 = arith.mulf %827, %826 : vector<8x8xf32>
    %829 = arith.addf %819, %828 : vector<8x8xf32>
    %c9_i32_736 = arith.constant 9 : i32
    %830 = arith.addi %0, %c9_i32_736 : i32
    %c0_i32_737 = arith.constant 0 : i32
    %831 = arith.addi %830, %c0_i32_737 : i32
    %c1_i32_738 = arith.constant 1 : i32
    %832 = arith.addi %831, %c1_i32_738 : i32
    %833 = arith.index_cast %832 : i32 to index
    %834 = memref.load %arg2[%833] : memref<72xf32, #tpu.memory_space<smem>>
    %c0_739 = arith.constant 0 : index
    %c1_740 = arith.constant 1 : index
    %c1_741 = arith.constant 1 : index
    %c1_742 = arith.constant 1 : index
    %c0_743 = arith.constant 0 : index
    %c0_744 = arith.constant 0 : index
    %835 = vector.load %arg3[%c0_739, %c1_740, %c1_741, %c1_742, %c0_743, %c0_744] : memref<1x2x2x4x9x9xf32, #tpu.memory_space<vmem>>, vector<1x1x1x1x8x8xf32>
    %836 = vector.shape_cast %835 : vector<1x1x1x1x8x8xf32> to vector<8x8xf32>
    %837 = vector.broadcast %834 : f32 to vector<8x8xf32>
    %838 = arith.mulf %837, %836 : vector<8x8xf32>
    %839 = arith.addf %829, %838 : vector<8x8xf32>
    %c9_i32_745 = arith.constant 9 : i32
    %840 = arith.addi %0, %c9_i32_745 : i32
    %c0_i32_746 = arith.constant 0 : i32
    %841 = arith.addi %840, %c0_i32_746 : i32
    %c2_i32_747 = arith.constant 2 : i32
    %842 = arith.addi %841, %c2_i32_747 : i32
    %843 = arith.index_cast %842 : i32 to index
    %844 = memref.load %arg2[%843] : memref<72xf32, #tpu.memory_space<smem>>
    %c0_748 = arith.constant 0 : index
    %c1_749 = arith.constant 1 : index
    %c0_750 = arith.constant 0 : index
    %c1_751 = arith.constant 1 : index
    %c0_752 = arith.constant 0 : index
    %c1_753 = arith.constant 1 : index
    %845 = vector.load %arg3[%c0_748, %c1_749, %c0_750, %c1_751, %c0_752, %c1_753] : memref<1x2x2x4x9x9xf32, #tpu.memory_space<vmem>>, vector<1x1x1x1x8x8xf32>
    %846 = vector.shape_cast %845 : vector<1x1x1x1x8x8xf32> to vector<8x8xf32>
    %847 = vector.broadcast %844 : f32 to vector<8x8xf32>
    %848 = arith.mulf %847, %846 : vector<8x8xf32>
    %849 = arith.addf %839, %848 : vector<8x8xf32>
    %c9_i32_754 = arith.constant 9 : i32
    %850 = arith.addi %0, %c9_i32_754 : i32
    %c3_i32_755 = arith.constant 3 : i32
    %851 = arith.addi %850, %c3_i32_755 : i32
    %c0_i32_756 = arith.constant 0 : i32
    %852 = arith.addi %851, %c0_i32_756 : i32
    %853 = arith.index_cast %852 : i32 to index
    %854 = memref.load %arg2[%853] : memref<72xf32, #tpu.memory_space<smem>>
    %c0_757 = arith.constant 0 : index
    %c0_758 = arith.constant 0 : index
    %c0_759 = arith.constant 0 : index
    %c1_760 = arith.constant 1 : index
    %c1_761 = arith.constant 1 : index
    %c0_762 = arith.constant 0 : index
    %855 = vector.load %arg3[%c0_757, %c0_758, %c0_759, %c1_760, %c1_761, %c0_762] : memref<1x2x2x4x9x9xf32, #tpu.memory_space<vmem>>, vector<1x1x1x1x8x8xf32>
    %856 = vector.shape_cast %855 : vector<1x1x1x1x8x8xf32> to vector<8x8xf32>
    %857 = vector.broadcast %854 : f32 to vector<8x8xf32>
    %858 = arith.mulf %857, %856 : vector<8x8xf32>
    %859 = arith.addf %849, %858 : vector<8x8xf32>
    %c9_i32_763 = arith.constant 9 : i32
    %860 = arith.addi %0, %c9_i32_763 : i32
    %c3_i32_764 = arith.constant 3 : i32
    %861 = arith.addi %860, %c3_i32_764 : i32
    %c1_i32_765 = arith.constant 1 : i32
    %862 = arith.addi %861, %c1_i32_765 : i32
    %863 = arith.index_cast %862 : i32 to index
    %864 = memref.load %arg2[%863] : memref<72xf32, #tpu.memory_space<smem>>
    %c0_766 = arith.constant 0 : index
    %c0_767 = arith.constant 0 : index
    %c1_768 = arith.constant 1 : index
    %c1_769 = arith.constant 1 : index
    %c1_770 = arith.constant 1 : index
    %c0_771 = arith.constant 0 : index
    %865 = vector.load %arg3[%c0_766, %c0_767, %c1_768, %c1_769, %c1_770, %c0_771] : memref<1x2x2x4x9x9xf32, #tpu.memory_space<vmem>>, vector<1x1x1x1x8x8xf32>
    %866 = vector.shape_cast %865 : vector<1x1x1x1x8x8xf32> to vector<8x8xf32>
    %867 = vector.broadcast %864 : f32 to vector<8x8xf32>
    %868 = arith.mulf %867, %866 : vector<8x8xf32>
    %869 = arith.addf %859, %868 : vector<8x8xf32>
    %c9_i32_772 = arith.constant 9 : i32
    %870 = arith.addi %0, %c9_i32_772 : i32
    %c3_i32_773 = arith.constant 3 : i32
    %871 = arith.addi %870, %c3_i32_773 : i32
    %c2_i32_774 = arith.constant 2 : i32
    %872 = arith.addi %871, %c2_i32_774 : i32
    %873 = arith.index_cast %872 : i32 to index
    %874 = memref.load %arg2[%873] : memref<72xf32, #tpu.memory_space<smem>>
    %c0_775 = arith.constant 0 : index
    %c0_776 = arith.constant 0 : index
    %c0_777 = arith.constant 0 : index
    %c1_778 = arith.constant 1 : index
    %c1_779 = arith.constant 1 : index
    %c1_780 = arith.constant 1 : index
    %875 = vector.load %arg3[%c0_775, %c0_776, %c0_777, %c1_778, %c1_779, %c1_780] : memref<1x2x2x4x9x9xf32, #tpu.memory_space<vmem>>, vector<1x1x1x1x8x8xf32>
    %876 = vector.shape_cast %875 : vector<1x1x1x1x8x8xf32> to vector<8x8xf32>
    %877 = vector.broadcast %874 : f32 to vector<8x8xf32>
    %878 = arith.mulf %877, %876 : vector<8x8xf32>
    %879 = arith.addf %869, %878 : vector<8x8xf32>
    %c9_i32_781 = arith.constant 9 : i32
    %880 = arith.addi %0, %c9_i32_781 : i32
    %c6_i32_782 = arith.constant 6 : i32
    %881 = arith.addi %880, %c6_i32_782 : i32
    %c0_i32_783 = arith.constant 0 : i32
    %882 = arith.addi %881, %c0_i32_783 : i32
    %883 = arith.index_cast %882 : i32 to index
    %884 = memref.load %arg2[%883] : memref<72xf32, #tpu.memory_space<smem>>
    %c0_784 = arith.constant 0 : index
    %c1_785 = arith.constant 1 : index
    %c0_786 = arith.constant 0 : index
    %c1_787 = arith.constant 1 : index
    %c1_788 = arith.constant 1 : index
    %c0_789 = arith.constant 0 : index
    %885 = vector.load %arg3[%c0_784, %c1_785, %c0_786, %c1_787, %c1_788, %c0_789] : memref<1x2x2x4x9x9xf32, #tpu.memory_space<vmem>>, vector<1x1x1x1x8x8xf32>
    %886 = vector.shape_cast %885 : vector<1x1x1x1x8x8xf32> to vector<8x8xf32>
    %887 = vector.broadcast %884 : f32 to vector<8x8xf32>
    %888 = arith.mulf %887, %886 : vector<8x8xf32>
    %889 = arith.addf %879, %888 : vector<8x8xf32>
    %c9_i32_790 = arith.constant 9 : i32
    %890 = arith.addi %0, %c9_i32_790 : i32
    %c6_i32_791 = arith.constant 6 : i32
    %891 = arith.addi %890, %c6_i32_791 : i32
    %c1_i32_792 = arith.constant 1 : i32
    %892 = arith.addi %891, %c1_i32_792 : i32
    %893 = arith.index_cast %892 : i32 to index
    %894 = memref.load %arg2[%893] : memref<72xf32, #tpu.memory_space<smem>>
    %c0_793 = arith.constant 0 : index
    %c1_794 = arith.constant 1 : index
    %c1_795 = arith.constant 1 : index
    %c1_796 = arith.constant 1 : index
    %c1_797 = arith.constant 1 : index
    %c0_798 = arith.constant 0 : index
    %895 = vector.load %arg3[%c0_793, %c1_794, %c1_795, %c1_796, %c1_797, %c0_798] : memref<1x2x2x4x9x9xf32, #tpu.memory_space<vmem>>, vector<1x1x1x1x8x8xf32>
    %896 = vector.shape_cast %895 : vector<1x1x1x1x8x8xf32> to vector<8x8xf32>
    %897 = vector.broadcast %894 : f32 to vector<8x8xf32>
    %898 = arith.mulf %897, %896 : vector<8x8xf32>
    %899 = arith.addf %889, %898 : vector<8x8xf32>
    %c9_i32_799 = arith.constant 9 : i32
    %900 = arith.addi %0, %c9_i32_799 : i32
    %c6_i32_800 = arith.constant 6 : i32
    %901 = arith.addi %900, %c6_i32_800 : i32
    %c2_i32_801 = arith.constant 2 : i32
    %902 = arith.addi %901, %c2_i32_801 : i32
    %903 = arith.index_cast %902 : i32 to index
    %904 = memref.load %arg2[%903] : memref<72xf32, #tpu.memory_space<smem>>
    %c0_802 = arith.constant 0 : index
    %c1_803 = arith.constant 1 : index
    %c0_804 = arith.constant 0 : index
    %c1_805 = arith.constant 1 : index
    %c1_806 = arith.constant 1 : index
    %c1_807 = arith.constant 1 : index
    %905 = vector.load %arg3[%c0_802, %c1_803, %c0_804, %c1_805, %c1_806, %c1_807] : memref<1x2x2x4x9x9xf32, #tpu.memory_space<vmem>>, vector<1x1x1x1x8x8xf32>
    %906 = vector.shape_cast %905 : vector<1x1x1x1x8x8xf32> to vector<8x8xf32>
    %907 = vector.broadcast %904 : f32 to vector<8x8xf32>
    %908 = arith.mulf %907, %906 : vector<8x8xf32>
    %909 = arith.addf %899, %908 : vector<8x8xf32>
    %c18_i32_808 = arith.constant 18 : i32
    %910 = arith.addi %0, %c18_i32_808 : i32
    %c0_i32_809 = arith.constant 0 : i32
    %911 = arith.addi %910, %c0_i32_809 : i32
    %c0_i32_810 = arith.constant 0 : i32
    %912 = arith.addi %911, %c0_i32_810 : i32
    %913 = arith.index_cast %912 : i32 to index
    %914 = memref.load %arg2[%913] : memref<72xf32, #tpu.memory_space<smem>>
    %c0_811 = arith.constant 0 : index
    %c1_812 = arith.constant 1 : index
    %c0_813 = arith.constant 0 : index
    %c2_814 = arith.constant 2 : index
    %c0_815 = arith.constant 0 : index
    %c0_816 = arith.constant 0 : index
    %915 = vector.load %arg3[%c0_811, %c1_812, %c0_813, %c2_814, %c0_815, %c0_816] : memref<1x2x2x4x9x9xf32, #tpu.memory_space<vmem>>, vector<1x1x1x1x8x8xf32>
    %916 = vector.shape_cast %915 : vector<1x1x1x1x8x8xf32> to vector<8x8xf32>
    %917 = vector.broadcast %914 : f32 to vector<8x8xf32>
    %918 = arith.mulf %917, %916 : vector<8x8xf32>
    %919 = arith.addf %909, %918 : vector<8x8xf32>
    %c18_i32_817 = arith.constant 18 : i32
    %920 = arith.addi %0, %c18_i32_817 : i32
    %c0_i32_818 = arith.constant 0 : i32
    %921 = arith.addi %920, %c0_i32_818 : i32
    %c1_i32_819 = arith.constant 1 : i32
    %922 = arith.addi %921, %c1_i32_819 : i32
    %923 = arith.index_cast %922 : i32 to index
    %924 = memref.load %arg2[%923] : memref<72xf32, #tpu.memory_space<smem>>
    %c0_820 = arith.constant 0 : index
    %c1_821 = arith.constant 1 : index
    %c1_822 = arith.constant 1 : index
    %c2_823 = arith.constant 2 : index
    %c0_824 = arith.constant 0 : index
    %c0_825 = arith.constant 0 : index
    %925 = vector.load %arg3[%c0_820, %c1_821, %c1_822, %c2_823, %c0_824, %c0_825] : memref<1x2x2x4x9x9xf32, #tpu.memory_space<vmem>>, vector<1x1x1x1x8x8xf32>
    %926 = vector.shape_cast %925 : vector<1x1x1x1x8x8xf32> to vector<8x8xf32>
    %927 = vector.broadcast %924 : f32 to vector<8x8xf32>
    %928 = arith.mulf %927, %926 : vector<8x8xf32>
    %929 = arith.addf %919, %928 : vector<8x8xf32>
    %c18_i32_826 = arith.constant 18 : i32
    %930 = arith.addi %0, %c18_i32_826 : i32
    %c0_i32_827 = arith.constant 0 : i32
    %931 = arith.addi %930, %c0_i32_827 : i32
    %c2_i32_828 = arith.constant 2 : i32
    %932 = arith.addi %931, %c2_i32_828 : i32
    %933 = arith.index_cast %932 : i32 to index
    %934 = memref.load %arg2[%933] : memref<72xf32, #tpu.memory_space<smem>>
    %c0_829 = arith.constant 0 : index
    %c1_830 = arith.constant 1 : index
    %c0_831 = arith.constant 0 : index
    %c2_832 = arith.constant 2 : index
    %c0_833 = arith.constant 0 : index
    %c1_834 = arith.constant 1 : index
    %935 = vector.load %arg3[%c0_829, %c1_830, %c0_831, %c2_832, %c0_833, %c1_834] : memref<1x2x2x4x9x9xf32, #tpu.memory_space<vmem>>, vector<1x1x1x1x8x8xf32>
    %936 = vector.shape_cast %935 : vector<1x1x1x1x8x8xf32> to vector<8x8xf32>
    %937 = vector.broadcast %934 : f32 to vector<8x8xf32>
    %938 = arith.mulf %937, %936 : vector<8x8xf32>
    %939 = arith.addf %929, %938 : vector<8x8xf32>
    %c18_i32_835 = arith.constant 18 : i32
    %940 = arith.addi %0, %c18_i32_835 : i32
    %c3_i32_836 = arith.constant 3 : i32
    %941 = arith.addi %940, %c3_i32_836 : i32
    %c0_i32_837 = arith.constant 0 : i32
    %942 = arith.addi %941, %c0_i32_837 : i32
    %943 = arith.index_cast %942 : i32 to index
    %944 = memref.load %arg2[%943] : memref<72xf32, #tpu.memory_space<smem>>
    %c0_838 = arith.constant 0 : index
    %c0_839 = arith.constant 0 : index
    %c0_840 = arith.constant 0 : index
    %c2_841 = arith.constant 2 : index
    %c1_842 = arith.constant 1 : index
    %c0_843 = arith.constant 0 : index
    %945 = vector.load %arg3[%c0_838, %c0_839, %c0_840, %c2_841, %c1_842, %c0_843] : memref<1x2x2x4x9x9xf32, #tpu.memory_space<vmem>>, vector<1x1x1x1x8x8xf32>
    %946 = vector.shape_cast %945 : vector<1x1x1x1x8x8xf32> to vector<8x8xf32>
    %947 = vector.broadcast %944 : f32 to vector<8x8xf32>
    %948 = arith.mulf %947, %946 : vector<8x8xf32>
    %949 = arith.addf %939, %948 : vector<8x8xf32>
    %c18_i32_844 = arith.constant 18 : i32
    %950 = arith.addi %0, %c18_i32_844 : i32
    %c3_i32_845 = arith.constant 3 : i32
    %951 = arith.addi %950, %c3_i32_845 : i32
    %c1_i32_846 = arith.constant 1 : i32
    %952 = arith.addi %951, %c1_i32_846 : i32
    %953 = arith.index_cast %952 : i32 to index
    %954 = memref.load %arg2[%953] : memref<72xf32, #tpu.memory_space<smem>>
    %c0_847 = arith.constant 0 : index
    %c0_848 = arith.constant 0 : index
    %c1_849 = arith.constant 1 : index
    %c2_850 = arith.constant 2 : index
    %c1_851 = arith.constant 1 : index
    %c0_852 = arith.constant 0 : index
    %955 = vector.load %arg3[%c0_847, %c0_848, %c1_849, %c2_850, %c1_851, %c0_852] : memref<1x2x2x4x9x9xf32, #tpu.memory_space<vmem>>, vector<1x1x1x1x8x8xf32>
    %956 = vector.shape_cast %955 : vector<1x1x1x1x8x8xf32> to vector<8x8xf32>
    %957 = vector.broadcast %954 : f32 to vector<8x8xf32>
    %958 = arith.mulf %957, %956 : vector<8x8xf32>
    %959 = arith.addf %949, %958 : vector<8x8xf32>
    %c18_i32_853 = arith.constant 18 : i32
    %960 = arith.addi %0, %c18_i32_853 : i32
    %c3_i32_854 = arith.constant 3 : i32
    %961 = arith.addi %960, %c3_i32_854 : i32
    %c2_i32_855 = arith.constant 2 : i32
    %962 = arith.addi %961, %c2_i32_855 : i32
    %963 = arith.index_cast %962 : i32 to index
    %964 = memref.load %arg2[%963] : memref<72xf32, #tpu.memory_space<smem>>
    %c0_856 = arith.constant 0 : index
    %c0_857 = arith.constant 0 : index
    %c0_858 = arith.constant 0 : index
    %c2_859 = arith.constant 2 : index
    %c1_860 = arith.constant 1 : index
    %c1_861 = arith.constant 1 : index
    %965 = vector.load %arg3[%c0_856, %c0_857, %c0_858, %c2_859, %c1_860, %c1_861] : memref<1x2x2x4x9x9xf32, #tpu.memory_space<vmem>>, vector<1x1x1x1x8x8xf32>
    %966 = vector.shape_cast %965 : vector<1x1x1x1x8x8xf32> to vector<8x8xf32>
    %967 = vector.broadcast %964 : f32 to vector<8x8xf32>
    %968 = arith.mulf %967, %966 : vector<8x8xf32>
    %969 = arith.addf %959, %968 : vector<8x8xf32>
    %c18_i32_862 = arith.constant 18 : i32
    %970 = arith.addi %0, %c18_i32_862 : i32
    %c6_i32_863 = arith.constant 6 : i32
    %971 = arith.addi %970, %c6_i32_863 : i32
    %c0_i32_864 = arith.constant 0 : i32
    %972 = arith.addi %971, %c0_i32_864 : i32
    %973 = arith.index_cast %972 : i32 to index
    %974 = memref.load %arg2[%973] : memref<72xf32, #tpu.memory_space<smem>>
    %c0_865 = arith.constant 0 : index
    %c1_866 = arith.constant 1 : index
    %c0_867 = arith.constant 0 : index
    %c2_868 = arith.constant 2 : index
    %c1_869 = arith.constant 1 : index
    %c0_870 = arith.constant 0 : index
    %975 = vector.load %arg3[%c0_865, %c1_866, %c0_867, %c2_868, %c1_869, %c0_870] : memref<1x2x2x4x9x9xf32, #tpu.memory_space<vmem>>, vector<1x1x1x1x8x8xf32>
    %976 = vector.shape_cast %975 : vector<1x1x1x1x8x8xf32> to vector<8x8xf32>
    %977 = vector.broadcast %974 : f32 to vector<8x8xf32>
    %978 = arith.mulf %977, %976 : vector<8x8xf32>
    %979 = arith.addf %969, %978 : vector<8x8xf32>
    %c18_i32_871 = arith.constant 18 : i32
    %980 = arith.addi %0, %c18_i32_871 : i32
    %c6_i32_872 = arith.constant 6 : i32
    %981 = arith.addi %980, %c6_i32_872 : i32
    %c1_i32_873 = arith.constant 1 : i32
    %982 = arith.addi %981, %c1_i32_873 : i32
    %983 = arith.index_cast %982 : i32 to index
    %984 = memref.load %arg2[%983] : memref<72xf32, #tpu.memory_space<smem>>
    %c0_874 = arith.constant 0 : index
    %c1_875 = arith.constant 1 : index
    %c1_876 = arith.constant 1 : index
    %c2_877 = arith.constant 2 : index
    %c1_878 = arith.constant 1 : index
    %c0_879 = arith.constant 0 : index
    %985 = vector.load %arg3[%c0_874, %c1_875, %c1_876, %c2_877, %c1_878, %c0_879] : memref<1x2x2x4x9x9xf32, #tpu.memory_space<vmem>>, vector<1x1x1x1x8x8xf32>
    %986 = vector.shape_cast %985 : vector<1x1x1x1x8x8xf32> to vector<8x8xf32>
    %987 = vector.broadcast %984 : f32 to vector<8x8xf32>
    %988 = arith.mulf %987, %986 : vector<8x8xf32>
    %989 = arith.addf %979, %988 : vector<8x8xf32>
    %c18_i32_880 = arith.constant 18 : i32
    %990 = arith.addi %0, %c18_i32_880 : i32
    %c6_i32_881 = arith.constant 6 : i32
    %991 = arith.addi %990, %c6_i32_881 : i32
    %c2_i32_882 = arith.constant 2 : i32
    %992 = arith.addi %991, %c2_i32_882 : i32
    %993 = arith.index_cast %992 : i32 to index
    %994 = memref.load %arg2[%993] : memref<72xf32, #tpu.memory_space<smem>>
    %c0_883 = arith.constant 0 : index
    %c1_884 = arith.constant 1 : index
    %c0_885 = arith.constant 0 : index
    %c2_886 = arith.constant 2 : index
    %c1_887 = arith.constant 1 : index
    %c1_888 = arith.constant 1 : index
    %995 = vector.load %arg3[%c0_883, %c1_884, %c0_885, %c2_886, %c1_887, %c1_888] : memref<1x2x2x4x9x9xf32, #tpu.memory_space<vmem>>, vector<1x1x1x1x8x8xf32>
    %996 = vector.shape_cast %995 : vector<1x1x1x1x8x8xf32> to vector<8x8xf32>
    %997 = vector.broadcast %994 : f32 to vector<8x8xf32>
    %998 = arith.mulf %997, %996 : vector<8x8xf32>
    %999 = arith.addf %989, %998 : vector<8x8xf32>
    %c27_i32_889 = arith.constant 27 : i32
    %1000 = arith.addi %0, %c27_i32_889 : i32
    %c0_i32_890 = arith.constant 0 : i32
    %1001 = arith.addi %1000, %c0_i32_890 : i32
    %c0_i32_891 = arith.constant 0 : i32
    %1002 = arith.addi %1001, %c0_i32_891 : i32
    %1003 = arith.index_cast %1002 : i32 to index
    %1004 = memref.load %arg2[%1003] : memref<72xf32, #tpu.memory_space<smem>>
    %c0_892 = arith.constant 0 : index
    %c1_893 = arith.constant 1 : index
    %c0_894 = arith.constant 0 : index
    %c3_895 = arith.constant 3 : index
    %c0_896 = arith.constant 0 : index
    %c0_897 = arith.constant 0 : index
    %1005 = vector.load %arg3[%c0_892, %c1_893, %c0_894, %c3_895, %c0_896, %c0_897] : memref<1x2x2x4x9x9xf32, #tpu.memory_space<vmem>>, vector<1x1x1x1x8x8xf32>
    %1006 = vector.shape_cast %1005 : vector<1x1x1x1x8x8xf32> to vector<8x8xf32>
    %1007 = vector.broadcast %1004 : f32 to vector<8x8xf32>
    %1008 = arith.mulf %1007, %1006 : vector<8x8xf32>
    %1009 = arith.addf %999, %1008 : vector<8x8xf32>
    %c27_i32_898 = arith.constant 27 : i32
    %1010 = arith.addi %0, %c27_i32_898 : i32
    %c0_i32_899 = arith.constant 0 : i32
    %1011 = arith.addi %1010, %c0_i32_899 : i32
    %c1_i32_900 = arith.constant 1 : i32
    %1012 = arith.addi %1011, %c1_i32_900 : i32
    %1013 = arith.index_cast %1012 : i32 to index
    %1014 = memref.load %arg2[%1013] : memref<72xf32, #tpu.memory_space<smem>>
    %c0_901 = arith.constant 0 : index
    %c1_902 = arith.constant 1 : index
    %c1_903 = arith.constant 1 : index
    %c3_904 = arith.constant 3 : index
    %c0_905 = arith.constant 0 : index
    %c0_906 = arith.constant 0 : index
    %1015 = vector.load %arg3[%c0_901, %c1_902, %c1_903, %c3_904, %c0_905, %c0_906] : memref<1x2x2x4x9x9xf32, #tpu.memory_space<vmem>>, vector<1x1x1x1x8x8xf32>
    %1016 = vector.shape_cast %1015 : vector<1x1x1x1x8x8xf32> to vector<8x8xf32>
    %1017 = vector.broadcast %1014 : f32 to vector<8x8xf32>
    %1018 = arith.mulf %1017, %1016 : vector<8x8xf32>
    %1019 = arith.addf %1009, %1018 : vector<8x8xf32>
    %c27_i32_907 = arith.constant 27 : i32
    %1020 = arith.addi %0, %c27_i32_907 : i32
    %c0_i32_908 = arith.constant 0 : i32
    %1021 = arith.addi %1020, %c0_i32_908 : i32
    %c2_i32_909 = arith.constant 2 : i32
    %1022 = arith.addi %1021, %c2_i32_909 : i32
    %1023 = arith.index_cast %1022 : i32 to index
    %1024 = memref.load %arg2[%1023] : memref<72xf32, #tpu.memory_space<smem>>
    %c0_910 = arith.constant 0 : index
    %c1_911 = arith.constant 1 : index
    %c0_912 = arith.constant 0 : index
    %c3_913 = arith.constant 3 : index
    %c0_914 = arith.constant 0 : index
    %c1_915 = arith.constant 1 : index
    %1025 = vector.load %arg3[%c0_910, %c1_911, %c0_912, %c3_913, %c0_914, %c1_915] : memref<1x2x2x4x9x9xf32, #tpu.memory_space<vmem>>, vector<1x1x1x1x8x8xf32>
    %1026 = vector.shape_cast %1025 : vector<1x1x1x1x8x8xf32> to vector<8x8xf32>
    %1027 = vector.broadcast %1024 : f32 to vector<8x8xf32>
    %1028 = arith.mulf %1027, %1026 : vector<8x8xf32>
    %1029 = arith.addf %1019, %1028 : vector<8x8xf32>
    %c27_i32_916 = arith.constant 27 : i32
    %1030 = arith.addi %0, %c27_i32_916 : i32
    %c3_i32_917 = arith.constant 3 : i32
    %1031 = arith.addi %1030, %c3_i32_917 : i32
    %c0_i32_918 = arith.constant 0 : i32
    %1032 = arith.addi %1031, %c0_i32_918 : i32
    %1033 = arith.index_cast %1032 : i32 to index
    %1034 = memref.load %arg2[%1033] : memref<72xf32, #tpu.memory_space<smem>>
    %c0_919 = arith.constant 0 : index
    %c0_920 = arith.constant 0 : index
    %c0_921 = arith.constant 0 : index
    %c3_922 = arith.constant 3 : index
    %c1_923 = arith.constant 1 : index
    %c0_924 = arith.constant 0 : index
    %1035 = vector.load %arg3[%c0_919, %c0_920, %c0_921, %c3_922, %c1_923, %c0_924] : memref<1x2x2x4x9x9xf32, #tpu.memory_space<vmem>>, vector<1x1x1x1x8x8xf32>
    %1036 = vector.shape_cast %1035 : vector<1x1x1x1x8x8xf32> to vector<8x8xf32>
    %1037 = vector.broadcast %1034 : f32 to vector<8x8xf32>
    %1038 = arith.mulf %1037, %1036 : vector<8x8xf32>
    %1039 = arith.addf %1029, %1038 : vector<8x8xf32>
    %c27_i32_925 = arith.constant 27 : i32
    %1040 = arith.addi %0, %c27_i32_925 : i32
    %c3_i32_926 = arith.constant 3 : i32
    %1041 = arith.addi %1040, %c3_i32_926 : i32
    %c1_i32_927 = arith.constant 1 : i32
    %1042 = arith.addi %1041, %c1_i32_927 : i32
    %1043 = arith.index_cast %1042 : i32 to index
    %1044 = memref.load %arg2[%1043] : memref<72xf32, #tpu.memory_space<smem>>
    %c0_928 = arith.constant 0 : index
    %c0_929 = arith.constant 0 : index
    %c1_930 = arith.constant 1 : index
    %c3_931 = arith.constant 3 : index
    %c1_932 = arith.constant 1 : index
    %c0_933 = arith.constant 0 : index
    %1045 = vector.load %arg3[%c0_928, %c0_929, %c1_930, %c3_931, %c1_932, %c0_933] : memref<1x2x2x4x9x9xf32, #tpu.memory_space<vmem>>, vector<1x1x1x1x8x8xf32>
    %1046 = vector.shape_cast %1045 : vector<1x1x1x1x8x8xf32> to vector<8x8xf32>
    %1047 = vector.broadcast %1044 : f32 to vector<8x8xf32>
    %1048 = arith.mulf %1047, %1046 : vector<8x8xf32>
    %1049 = arith.addf %1039, %1048 : vector<8x8xf32>
    %c27_i32_934 = arith.constant 27 : i32
    %1050 = arith.addi %0, %c27_i32_934 : i32
    %c3_i32_935 = arith.constant 3 : i32
    %1051 = arith.addi %1050, %c3_i32_935 : i32
    %c2_i32_936 = arith.constant 2 : i32
    %1052 = arith.addi %1051, %c2_i32_936 : i32
    %1053 = arith.index_cast %1052 : i32 to index
    %1054 = memref.load %arg2[%1053] : memref<72xf32, #tpu.memory_space<smem>>
    %c0_937 = arith.constant 0 : index
    %c0_938 = arith.constant 0 : index
    %c0_939 = arith.constant 0 : index
    %c3_940 = arith.constant 3 : index
    %c1_941 = arith.constant 1 : index
    %c1_942 = arith.constant 1 : index
    %1055 = vector.load %arg3[%c0_937, %c0_938, %c0_939, %c3_940, %c1_941, %c1_942] : memref<1x2x2x4x9x9xf32, #tpu.memory_space<vmem>>, vector<1x1x1x1x8x8xf32>
    %1056 = vector.shape_cast %1055 : vector<1x1x1x1x8x8xf32> to vector<8x8xf32>
    %1057 = vector.broadcast %1054 : f32 to vector<8x8xf32>
    %1058 = arith.mulf %1057, %1056 : vector<8x8xf32>
    %1059 = arith.addf %1049, %1058 : vector<8x8xf32>
    %c27_i32_943 = arith.constant 27 : i32
    %1060 = arith.addi %0, %c27_i32_943 : i32
    %c6_i32_944 = arith.constant 6 : i32
    %1061 = arith.addi %1060, %c6_i32_944 : i32
    %c0_i32_945 = arith.constant 0 : i32
    %1062 = arith.addi %1061, %c0_i32_945 : i32
    %1063 = arith.index_cast %1062 : i32 to index
    %1064 = memref.load %arg2[%1063] : memref<72xf32, #tpu.memory_space<smem>>
    %c0_946 = arith.constant 0 : index
    %c1_947 = arith.constant 1 : index
    %c0_948 = arith.constant 0 : index
    %c3_949 = arith.constant 3 : index
    %c1_950 = arith.constant 1 : index
    %c0_951 = arith.constant 0 : index
    %1065 = vector.load %arg3[%c0_946, %c1_947, %c0_948, %c3_949, %c1_950, %c0_951] : memref<1x2x2x4x9x9xf32, #tpu.memory_space<vmem>>, vector<1x1x1x1x8x8xf32>
    %1066 = vector.shape_cast %1065 : vector<1x1x1x1x8x8xf32> to vector<8x8xf32>
    %1067 = vector.broadcast %1064 : f32 to vector<8x8xf32>
    %1068 = arith.mulf %1067, %1066 : vector<8x8xf32>
    %1069 = arith.addf %1059, %1068 : vector<8x8xf32>
    %c27_i32_952 = arith.constant 27 : i32
    %1070 = arith.addi %0, %c27_i32_952 : i32
    %c6_i32_953 = arith.constant 6 : i32
    %1071 = arith.addi %1070, %c6_i32_953 : i32
    %c1_i32_954 = arith.constant 1 : i32
    %1072 = arith.addi %1071, %c1_i32_954 : i32
    %1073 = arith.index_cast %1072 : i32 to index
    %1074 = memref.load %arg2[%1073] : memref<72xf32, #tpu.memory_space<smem>>
    %c0_955 = arith.constant 0 : index
    %c1_956 = arith.constant 1 : index
    %c1_957 = arith.constant 1 : index
    %c3_958 = arith.constant 3 : index
    %c1_959 = arith.constant 1 : index
    %c0_960 = arith.constant 0 : index
    %1075 = vector.load %arg3[%c0_955, %c1_956, %c1_957, %c3_958, %c1_959, %c0_960] : memref<1x2x2x4x9x9xf32, #tpu.memory_space<vmem>>, vector<1x1x1x1x8x8xf32>
    %1076 = vector.shape_cast %1075 : vector<1x1x1x1x8x8xf32> to vector<8x8xf32>
    %1077 = vector.broadcast %1074 : f32 to vector<8x8xf32>
    %1078 = arith.mulf %1077, %1076 : vector<8x8xf32>
    %1079 = arith.addf %1069, %1078 : vector<8x8xf32>
    %c27_i32_961 = arith.constant 27 : i32
    %1080 = arith.addi %0, %c27_i32_961 : i32
    %c6_i32_962 = arith.constant 6 : i32
    %1081 = arith.addi %1080, %c6_i32_962 : i32
    %c2_i32_963 = arith.constant 2 : i32
    %1082 = arith.addi %1081, %c2_i32_963 : i32
    %1083 = arith.index_cast %1082 : i32 to index
    %1084 = memref.load %arg2[%1083] : memref<72xf32, #tpu.memory_space<smem>>
    %c0_964 = arith.constant 0 : index
    %c1_965 = arith.constant 1 : index
    %c0_966 = arith.constant 0 : index
    %c3_967 = arith.constant 3 : index
    %c1_968 = arith.constant 1 : index
    %c1_969 = arith.constant 1 : index
    %1085 = vector.load %arg3[%c0_964, %c1_965, %c0_966, %c3_967, %c1_968, %c1_969] : memref<1x2x2x4x9x9xf32, #tpu.memory_space<vmem>>, vector<1x1x1x1x8x8xf32>
    %1086 = vector.shape_cast %1085 : vector<1x1x1x1x8x8xf32> to vector<8x8xf32>
    %1087 = vector.broadcast %1084 : f32 to vector<8x8xf32>
    %1088 = arith.mulf %1087, %1086 : vector<8x8xf32>
    %1089 = arith.addf %1079, %1088 : vector<8x8xf32>
    %c0_970 = arith.constant 0 : index
    %c2_971 = arith.constant 2 : index
    %c0_972 = arith.constant 0 : index
    %c0_973 = arith.constant 0 : index
    %1090 = vector.load %arg4[%c0_970, %c2_971, %c0_972, %c0_973] : memref<1x4x8x8xf32, #tpu.memory_space<vmem>>, vector<1x1x8x8xf32>
    %1091 = vector.shape_cast %1090 : vector<1x1x8x8xf32> to vector<8x8xf32>
    %1092 = vector.shape_cast %1089 : vector<8x8xf32> to vector<1x1x8x8xf32>
    tpu.vector_store %arg4[%c0_970, %c2_971, %c0_972, %c0_973], %1092 {strides = array<i32>} : memref<1x4x8x8xf32, #tpu.memory_space<vmem>>, vector<1x1x8x8xf32>,
    %cst_974 = arith.constant 0.000000e+00 : f32
    %1093 = vector.broadcast %cst_974 : f32 to vector<8x8xf32>
    %c0_i32_975 = arith.constant 0 : i32
    %1094 = arith.addi %0, %c0_i32_975 : i32
    %c0_i32_976 = arith.constant 0 : i32
    %1095 = arith.addi %1094, %c0_i32_976 : i32
    %c0_i32_977 = arith.constant 0 : i32
    %1096 = arith.addi %1095, %c0_i32_977 : i32
    %1097 = arith.index_cast %1096 : i32 to index
    %1098 = memref.load %arg2[%1097] : memref<72xf32, #tpu.memory_space<smem>>
    %c0_978 = arith.constant 0 : index
    %c1_979 = arith.constant 1 : index
    %c1_980 = arith.constant 1 : index
    %c0_981 = arith.constant 0 : index
    %c0_982 = arith.constant 0 : index
    %c0_983 = arith.constant 0 : index
    %1099 = vector.load %arg3[%c0_978, %c1_979, %c1_980, %c0_981, %c0_982, %c0_983] : memref<1x2x2x4x9x9xf32, #tpu.memory_space<vmem>>, vector<1x1x1x1x8x8xf32>
    %1100 = vector.shape_cast %1099 : vector<1x1x1x1x8x8xf32> to vector<8x8xf32>
    %1101 = vector.broadcast %1098 : f32 to vector<8x8xf32>
    %1102 = arith.mulf %1101, %1100 : vector<8x8xf32>
    %1103 = arith.addf %1093, %1102 : vector<8x8xf32>
    %c0_i32_984 = arith.constant 0 : i32
    %1104 = arith.addi %0, %c0_i32_984 : i32
    %c0_i32_985 = arith.constant 0 : i32
    %1105 = arith.addi %1104, %c0_i32_985 : i32
    %c1_i32_986 = arith.constant 1 : i32
    %1106 = arith.addi %1105, %c1_i32_986 : i32
    %1107 = arith.index_cast %1106 : i32 to index
    %1108 = memref.load %arg2[%1107] : memref<72xf32, #tpu.memory_space<smem>>
    %c0_987 = arith.constant 0 : index
    %c1_988 = arith.constant 1 : index
    %c0_989 = arith.constant 0 : index
    %c0_990 = arith.constant 0 : index
    %c0_991 = arith.constant 0 : index
    %c1_992 = arith.constant 1 : index
    %1109 = vector.load %arg3[%c0_987, %c1_988, %c0_989, %c0_990, %c0_991, %c1_992] : memref<1x2x2x4x9x9xf32, #tpu.memory_space<vmem>>, vector<1x1x1x1x8x8xf32>
    %1110 = vector.shape_cast %1109 : vector<1x1x1x1x8x8xf32> to vector<8x8xf32>
    %1111 = vector.broadcast %1108 : f32 to vector<8x8xf32>
    %1112 = arith.mulf %1111, %1110 : vector<8x8xf32>
    %1113 = arith.addf %1103, %1112 : vector<8x8xf32>
    %c0_i32_993 = arith.constant 0 : i32
    %1114 = arith.addi %0, %c0_i32_993 : i32
    %c0_i32_994 = arith.constant 0 : i32
    %1115 = arith.addi %1114, %c0_i32_994 : i32
    %c2_i32_995 = arith.constant 2 : i32
    %1116 = arith.addi %1115, %c2_i32_995 : i32
    %1117 = arith.index_cast %1116 : i32 to index
    %1118 = memref.load %arg2[%1117] : memref<72xf32, #tpu.memory_space<smem>>
    %c0_996 = arith.constant 0 : index
    %c1_997 = arith.constant 1 : index
    %c1_998 = arith.constant 1 : index
    %c0_999 = arith.constant 0 : index
    %c0_1000 = arith.constant 0 : index
    %c1_1001 = arith.constant 1 : index
    %1119 = vector.load %arg3[%c0_996, %c1_997, %c1_998, %c0_999, %c0_1000, %c1_1001] : memref<1x2x2x4x9x9xf32, #tpu.memory_space<vmem>>, vector<1x1x1x1x8x8xf32>
    %1120 = vector.shape_cast %1119 : vector<1x1x1x1x8x8xf32> to vector<8x8xf32>
    %1121 = vector.broadcast %1118 : f32 to vector<8x8xf32>
    %1122 = arith.mulf %1121, %1120 : vector<8x8xf32>
    %1123 = arith.addf %1113, %1122 : vector<8x8xf32>
    %c0_i32_1002 = arith.constant 0 : i32
    %1124 = arith.addi %0, %c0_i32_1002 : i32
    %c3_i32_1003 = arith.constant 3 : i32
    %1125 = arith.addi %1124, %c3_i32_1003 : i32
    %c0_i32_1004 = arith.constant 0 : i32
    %1126 = arith.addi %1125, %c0_i32_1004 : i32
    %1127 = arith.index_cast %1126 : i32 to index
    %1128 = memref.load %arg2[%1127] : memref<72xf32, #tpu.memory_space<smem>>
    %c0_1005 = arith.constant 0 : index
    %c0_1006 = arith.constant 0 : index
    %c1_1007 = arith.constant 1 : index
    %c0_1008 = arith.constant 0 : index
    %c1_1009 = arith.constant 1 : index
    %c0_1010 = arith.constant 0 : index
    %1129 = vector.load %arg3[%c0_1005, %c0_1006, %c1_1007, %c0_1008, %c1_1009, %c0_1010] : memref<1x2x2x4x9x9xf32, #tpu.memory_space<vmem>>, vector<1x1x1x1x8x8xf32>
    %1130 = vector.shape_cast %1129 : vector<1x1x1x1x8x8xf32> to vector<8x8xf32>
    %1131 = vector.broadcast %1128 : f32 to vector<8x8xf32>
    %1132 = arith.mulf %1131, %1130 : vector<8x8xf32>
    %1133 = arith.addf %1123, %1132 : vector<8x8xf32>
    %c0_i32_1011 = arith.constant 0 : i32
    %1134 = arith.addi %0, %c0_i32_1011 : i32
    %c3_i32_1012 = arith.constant 3 : i32
    %1135 = arith.addi %1134, %c3_i32_1012 : i32
    %c1_i32_1013 = arith.constant 1 : i32
    %1136 = arith.addi %1135, %c1_i32_1013 : i32
    %1137 = arith.index_cast %1136 : i32 to index
    %1138 = memref.load %arg2[%1137] : memref<72xf32, #tpu.memory_space<smem>>
    %c0_1014 = arith.constant 0 : index
    %c0_1015 = arith.constant 0 : index
    %c0_1016 = arith.constant 0 : index
    %c0_1017 = arith.constant 0 : index
    %c1_1018 = arith.constant 1 : index
    %c1_1019 = arith.constant 1 : index
    %1139 = vector.load %arg3[%c0_1014, %c0_1015, %c0_1016, %c0_1017, %c1_1018, %c1_1019] : memref<1x2x2x4x9x9xf32, #tpu.memory_space<vmem>>, vector<1x1x1x1x8x8xf32>
    %1140 = vector.shape_cast %1139 : vector<1x1x1x1x8x8xf32> to vector<8x8xf32>
    %1141 = vector.broadcast %1138 : f32 to vector<8x8xf32>
    %1142 = arith.mulf %1141, %1140 : vector<8x8xf32>
    %1143 = arith.addf %1133, %1142 : vector<8x8xf32>
    %c0_i32_1020 = arith.constant 0 : i32
    %1144 = arith.addi %0, %c0_i32_1020 : i32
    %c3_i32_1021 = arith.constant 3 : i32
    %1145 = arith.addi %1144, %c3_i32_1021 : i32
    %c2_i32_1022 = arith.constant 2 : i32
    %1146 = arith.addi %1145, %c2_i32_1022 : i32
    %1147 = arith.index_cast %1146 : i32 to index
    %1148 = memref.load %arg2[%1147] : memref<72xf32, #tpu.memory_space<smem>>
    %c0_1023 = arith.constant 0 : index
    %c0_1024 = arith.constant 0 : index
    %c1_1025 = arith.constant 1 : index
    %c0_1026 = arith.constant 0 : index
    %c1_1027 = arith.constant 1 : index
    %c1_1028 = arith.constant 1 : index
    %1149 = vector.load %arg3[%c0_1023, %c0_1024, %c1_1025, %c0_1026, %c1_1027, %c1_1028] : memref<1x2x2x4x9x9xf32, #tpu.memory_space<vmem>>, vector<1x1x1x1x8x8xf32>
    %1150 = vector.shape_cast %1149 : vector<1x1x1x1x8x8xf32> to vector<8x8xf32>
    %1151 = vector.broadcast %1148 : f32 to vector<8x8xf32>
    %1152 = arith.mulf %1151, %1150 : vector<8x8xf32>
    %1153 = arith.addf %1143, %1152 : vector<8x8xf32>
    %c0_i32_1029 = arith.constant 0 : i32
    %1154 = arith.addi %0, %c0_i32_1029 : i32
    %c6_i32_1030 = arith.constant 6 : i32
    %1155 = arith.addi %1154, %c6_i32_1030 : i32
    %c0_i32_1031 = arith.constant 0 : i32
    %1156 = arith.addi %1155, %c0_i32_1031 : i32
    %1157 = arith.index_cast %1156 : i32 to index
    %1158 = memref.load %arg2[%1157] : memref<72xf32, #tpu.memory_space<smem>>
    %c0_1032 = arith.constant 0 : index
    %c1_1033 = arith.constant 1 : index
    %c1_1034 = arith.constant 1 : index
    %c0_1035 = arith.constant 0 : index
    %c1_1036 = arith.constant 1 : index
    %c0_1037 = arith.constant 0 : index
    %1159 = vector.load %arg3[%c0_1032, %c1_1033, %c1_1034, %c0_1035, %c1_1036, %c0_1037] : memref<1x2x2x4x9x9xf32, #tpu.memory_space<vmem>>, vector<1x1x1x1x8x8xf32>
    %1160 = vector.shape_cast %1159 : vector<1x1x1x1x8x8xf32> to vector<8x8xf32>
    %1161 = vector.broadcast %1158 : f32 to vector<8x8xf32>
    %1162 = arith.mulf %1161, %1160 : vector<8x8xf32>
    %1163 = arith.addf %1153, %1162 : vector<8x8xf32>
    %c0_i32_1038 = arith.constant 0 : i32
    %1164 = arith.addi %0, %c0_i32_1038 : i32
    %c6_i32_1039 = arith.constant 6 : i32
    %1165 = arith.addi %1164, %c6_i32_1039 : i32
    %c1_i32_1040 = arith.constant 1 : i32
    %1166 = arith.addi %1165, %c1_i32_1040 : i32
    %1167 = arith.index_cast %1166 : i32 to index
    %1168 = memref.load %arg2[%1167] : memref<72xf32, #tpu.memory_space<smem>>
    %c0_1041 = arith.constant 0 : index
    %c1_1042 = arith.constant 1 : index
    %c0_1043 = arith.constant 0 : index
    %c0_1044 = arith.constant 0 : index
    %c1_1045 = arith.constant 1 : index
    %c1_1046 = arith.constant 1 : index
    %1169 = vector.load %arg3[%c0_1041, %c1_1042, %c0_1043, %c0_1044, %c1_1045, %c1_1046] : memref<1x2x2x4x9x9xf32, #tpu.memory_space<vmem>>, vector<1x1x1x1x8x8xf32>
    %1170 = vector.shape_cast %1169 : vector<1x1x1x1x8x8xf32> to vector<8x8xf32>
    %1171 = vector.broadcast %1168 : f32 to vector<8x8xf32>
    %1172 = arith.mulf %1171, %1170 : vector<8x8xf32>
    %1173 = arith.addf %1163, %1172 : vector<8x8xf32>
    %c0_i32_1047 = arith.constant 0 : i32
    %1174 = arith.addi %0, %c0_i32_1047 : i32
    %c6_i32_1048 = arith.constant 6 : i32
    %1175 = arith.addi %1174, %c6_i32_1048 : i32
    %c2_i32_1049 = arith.constant 2 : i32
    %1176 = arith.addi %1175, %c2_i32_1049 : i32
    %1177 = arith.index_cast %1176 : i32 to index
    %1178 = memref.load %arg2[%1177] : memref<72xf32, #tpu.memory_space<smem>>
    %c0_1050 = arith.constant 0 : index
    %c1_1051 = arith.constant 1 : index
    %c1_1052 = arith.constant 1 : index
    %c0_1053 = arith.constant 0 : index
    %c1_1054 = arith.constant 1 : index
    %c1_1055 = arith.constant 1 : index
    %1179 = vector.load %arg3[%c0_1050, %c1_1051, %c1_1052, %c0_1053, %c1_1054, %c1_1055] : memref<1x2x2x4x9x9xf32, #tpu.memory_space<vmem>>, vector<1x1x1x1x8x8xf32>
    %1180 = vector.shape_cast %1179 : vector<1x1x1x1x8x8xf32> to vector<8x8xf32>
    %1181 = vector.broadcast %1178 : f32 to vector<8x8xf32>
    %1182 = arith.mulf %1181, %1180 : vector<8x8xf32>
    %1183 = arith.addf %1173, %1182 : vector<8x8xf32>
    %c9_i32_1056 = arith.constant 9 : i32
    %1184 = arith.addi %0, %c9_i32_1056 : i32
    %c0_i32_1057 = arith.constant 0 : i32
    %1185 = arith.addi %1184, %c0_i32_1057 : i32
    %c0_i32_1058 = arith.constant 0 : i32
    %1186 = arith.addi %1185, %c0_i32_1058 : i32
    %1187 = arith.index_cast %1186 : i32 to index
    %1188 = memref.load %arg2[%1187] : memref<72xf32, #tpu.memory_space<smem>>
    %c0_1059 = arith.constant 0 : index
    %c1_1060 = arith.constant 1 : index
    %c1_1061 = arith.constant 1 : index
    %c1_1062 = arith.constant 1 : index
    %c0_1063 = arith.constant 0 : index
    %c0_1064 = arith.constant 0 : index
    %1189 = vector.load %arg3[%c0_1059, %c1_1060, %c1_1061, %c1_1062, %c0_1063, %c0_1064] : memref<1x2x2x4x9x9xf32, #tpu.memory_space<vmem>>, vector<1x1x1x1x8x8xf32>
    %1190 = vector.shape_cast %1189 : vector<1x1x1x1x8x8xf32> to vector<8x8xf32>
    %1191 = vector.broadcast %1188 : f32 to vector<8x8xf32>
    %1192 = arith.mulf %1191, %1190 : vector<8x8xf32>
    %1193 = arith.addf %1183, %1192 : vector<8x8xf32>
    %c9_i32_1065 = arith.constant 9 : i32
    %1194 = arith.addi %0, %c9_i32_1065 : i32
    %c0_i32_1066 = arith.constant 0 : i32
    %1195 = arith.addi %1194, %c0_i32_1066 : i32
    %c1_i32_1067 = arith.constant 1 : i32
    %1196 = arith.addi %1195, %c1_i32_1067 : i32
    %1197 = arith.index_cast %1196 : i32 to index
    %1198 = memref.load %arg2[%1197] : memref<72xf32, #tpu.memory_space<smem>>
    %c0_1068 = arith.constant 0 : index
    %c1_1069 = arith.constant 1 : index
    %c0_1070 = arith.constant 0 : index
    %c1_1071 = arith.constant 1 : index
    %c0_1072 = arith.constant 0 : index
    %c1_1073 = arith.constant 1 : index
    %1199 = vector.load %arg3[%c0_1068, %c1_1069, %c0_1070, %c1_1071, %c0_1072, %c1_1073] : memref<1x2x2x4x9x9xf32, #tpu.memory_space<vmem>>, vector<1x1x1x1x8x8xf32>
    %1200 = vector.shape_cast %1199 : vector<1x1x1x1x8x8xf32> to vector<8x8xf32>
    %1201 = vector.broadcast %1198 : f32 to vector<8x8xf32>
    %1202 = arith.mulf %1201, %1200 : vector<8x8xf32>
    %1203 = arith.addf %1193, %1202 : vector<8x8xf32>
    %c9_i32_1074 = arith.constant 9 : i32
    %1204 = arith.addi %0, %c9_i32_1074 : i32
    %c0_i32_1075 = arith.constant 0 : i32
    %1205 = arith.addi %1204, %c0_i32_1075 : i32
    %c2_i32_1076 = arith.constant 2 : i32
    %1206 = arith.addi %1205, %c2_i32_1076 : i32
    %1207 = arith.index_cast %1206 : i32 to index
    %1208 = memref.load %arg2[%1207] : memref<72xf32, #tpu.memory_space<smem>>
    %c0_1077 = arith.constant 0 : index
    %c1_1078 = arith.constant 1 : index
    %c1_1079 = arith.constant 1 : index
    %c1_1080 = arith.constant 1 : index
    %c0_1081 = arith.constant 0 : index
    %c1_1082 = arith.constant 1 : index
    %1209 = vector.load %arg3[%c0_1077, %c1_1078, %c1_1079, %c1_1080, %c0_1081, %c1_1082] : memref<1x2x2x4x9x9xf32, #tpu.memory_space<vmem>>, vector<1x1x1x1x8x8xf32>
    %1210 = vector.shape_cast %1209 : vector<1x1x1x1x8x8xf32> to vector<8x8xf32>
    %1211 = vector.broadcast %1208 : f32 to vector<8x8xf32>
    %1212 = arith.mulf %1211, %1210 : vector<8x8xf32>
    %1213 = arith.addf %1203, %1212 : vector<8x8xf32>
    %c9_i32_1083 = arith.constant 9 : i32
    %1214 = arith.addi %0, %c9_i32_1083 : i32
    %c3_i32_1084 = arith.constant 3 : i32
    %1215 = arith.addi %1214, %c3_i32_1084 : i32
    %c0_i32_1085 = arith.constant 0 : i32
    %1216 = arith.addi %1215, %c0_i32_1085 : i32
    %1217 = arith.index_cast %1216 : i32 to index
    %1218 = memref.load %arg2[%1217] : memref<72xf32, #tpu.memory_space<smem>>
    %c0_1086 = arith.constant 0 : index
    %c0_1087 = arith.constant 0 : index
    %c1_1088 = arith.constant 1 : index
    %c1_1089 = arith.constant 1 : index
    %c1_1090 = arith.constant 1 : index
    %c0_1091 = arith.constant 0 : index
    %1219 = vector.load %arg3[%c0_1086, %c0_1087, %c1_1088, %c1_1089, %c1_1090, %c0_1091] : memref<1x2x2x4x9x9xf32, #tpu.memory_space<vmem>>, vector<1x1x1x1x8x8xf32>
    %1220 = vector.shape_cast %1219 : vector<1x1x1x1x8x8xf32> to vector<8x8xf32>
    %1221 = vector.broadcast %1218 : f32 to vector<8x8xf32>
    %1222 = arith.mulf %1221, %1220 : vector<8x8xf32>
    %1223 = arith.addf %1213, %1222 : vector<8x8xf32>
    %c9_i32_1092 = arith.constant 9 : i32
    %1224 = arith.addi %0, %c9_i32_1092 : i32
    %c3_i32_1093 = arith.constant 3 : i32
    %1225 = arith.addi %1224, %c3_i32_1093 : i32
    %c1_i32_1094 = arith.constant 1 : i32
    %1226 = arith.addi %1225, %c1_i32_1094 : i32
    %1227 = arith.index_cast %1226 : i32 to index
    %1228 = memref.load %arg2[%1227] : memref<72xf32, #tpu.memory_space<smem>>
    %c0_1095 = arith.constant 0 : index
    %c0_1096 = arith.constant 0 : index
    %c0_1097 = arith.constant 0 : index
    %c1_1098 = arith.constant 1 : index
    %c1_1099 = arith.constant 1 : index
    %c1_1100 = arith.constant 1 : index
    %1229 = vector.load %arg3[%c0_1095, %c0_1096, %c0_1097, %c1_1098, %c1_1099, %c1_1100] : memref<1x2x2x4x9x9xf32, #tpu.memory_space<vmem>>, vector<1x1x1x1x8x8xf32>
    %1230 = vector.shape_cast %1229 : vector<1x1x1x1x8x8xf32> to vector<8x8xf32>
    %1231 = vector.broadcast %1228 : f32 to vector<8x8xf32>
    %1232 = arith.mulf %1231, %1230 : vector<8x8xf32>
    %1233 = arith.addf %1223, %1232 : vector<8x8xf32>
    %c9_i32_1101 = arith.constant 9 : i32
    %1234 = arith.addi %0, %c9_i32_1101 : i32
    %c3_i32_1102 = arith.constant 3 : i32
    %1235 = arith.addi %1234, %c3_i32_1102 : i32
    %c2_i32_1103 = arith.constant 2 : i32
    %1236 = arith.addi %1235, %c2_i32_1103 : i32
    %1237 = arith.index_cast %1236 : i32 to index
    %1238 = memref.load %arg2[%1237] : memref<72xf32, #tpu.memory_space<smem>>
    %c0_1104 = arith.constant 0 : index
    %c0_1105 = arith.constant 0 : index
    %c1_1106 = arith.constant 1 : index
    %c1_1107 = arith.constant 1 : index
    %c1_1108 = arith.constant 1 : index
    %c1_1109 = arith.constant 1 : index
    %1239 = vector.load %arg3[%c0_1104, %c0_1105, %c1_1106, %c1_1107, %c1_1108, %c1_1109] : memref<1x2x2x4x9x9xf32, #tpu.memory_space<vmem>>, vector<1x1x1x1x8x8xf32>
    %1240 = vector.shape_cast %1239 : vector<1x1x1x1x8x8xf32> to vector<8x8xf32>
    %1241 = vector.broadcast %1238 : f32 to vector<8x8xf32>
    %1242 = arith.mulf %1241, %1240 : vector<8x8xf32>
    %1243 = arith.addf %1233, %1242 : vector<8x8xf32>
    %c9_i32_1110 = arith.constant 9 : i32
    %1244 = arith.addi %0, %c9_i32_1110 : i32
    %c6_i32_1111 = arith.constant 6 : i32
    %1245 = arith.addi %1244, %c6_i32_1111 : i32
    %c0_i32_1112 = arith.constant 0 : i32
    %1246 = arith.addi %1245, %c0_i32_1112 : i32
    %1247 = arith.index_cast %1246 : i32 to index
    %1248 = memref.load %arg2[%1247] : memref<72xf32, #tpu.memory_space<smem>>
    %c0_1113 = arith.constant 0 : index
    %c1_1114 = arith.constant 1 : index
    %c1_1115 = arith.constant 1 : index
    %c1_1116 = arith.constant 1 : index
    %c1_1117 = arith.constant 1 : index
    %c0_1118 = arith.constant 0 : index
    %1249 = vector.load %arg3[%c0_1113, %c1_1114, %c1_1115, %c1_1116, %c1_1117, %c0_1118] : memref<1x2x2x4x9x9xf32, #tpu.memory_space<vmem>>, vector<1x1x1x1x8x8xf32>
    %1250 = vector.shape_cast %1249 : vector<1x1x1x1x8x8xf32> to vector<8x8xf32>
    %1251 = vector.broadcast %1248 : f32 to vector<8x8xf32>
    %1252 = arith.mulf %1251, %1250 : vector<8x8xf32>
    %1253 = arith.addf %1243, %1252 : vector<8x8xf32>
    %c9_i32_1119 = arith.constant 9 : i32
    %1254 = arith.addi %0, %c9_i32_1119 : i32
    %c6_i32_1120 = arith.constant 6 : i32
    %1255 = arith.addi %1254, %c6_i32_1120 : i32
    %c1_i32_1121 = arith.constant 1 : i32
    %1256 = arith.addi %1255, %c1_i32_1121 : i32
    %1257 = arith.index_cast %1256 : i32 to index
    %1258 = memref.load %arg2[%1257] : memref<72xf32, #tpu.memory_space<smem>>
    %c0_1122 = arith.constant 0 : index
    %c1_1123 = arith.constant 1 : index
    %c0_1124 = arith.constant 0 : index
    %c1_1125 = arith.constant 1 : index
    %c1_1126 = arith.constant 1 : index
    %c1_1127 = arith.constant 1 : index
    %1259 = vector.load %arg3[%c0_1122, %c1_1123, %c0_1124, %c1_1125, %c1_1126, %c1_1127] : memref<1x2x2x4x9x9xf32, #tpu.memory_space<vmem>>, vector<1x1x1x1x8x8xf32>
    %1260 = vector.shape_cast %1259 : vector<1x1x1x1x8x8xf32> to vector<8x8xf32>
    %1261 = vector.broadcast %1258 : f32 to vector<8x8xf32>
    %1262 = arith.mulf %1261, %1260 : vector<8x8xf32>
    %1263 = arith.addf %1253, %1262 : vector<8x8xf32>
    %c9_i32_1128 = arith.constant 9 : i32
    %1264 = arith.addi %0, %c9_i32_1128 : i32
    %c6_i32_1129 = arith.constant 6 : i32
    %1265 = arith.addi %1264, %c6_i32_1129 : i32
    %c2_i32_1130 = arith.constant 2 : i32
    %1266 = arith.addi %1265, %c2_i32_1130 : i32
    %1267 = arith.index_cast %1266 : i32 to index
    %1268 = memref.load %arg2[%1267] : memref<72xf32, #tpu.memory_space<smem>>
    %c0_1131 = arith.constant 0 : index
    %c1_1132 = arith.constant 1 : index
    %c1_1133 = arith.constant 1 : index
    %c1_1134 = arith.constant 1 : index
    %c1_1135 = arith.constant 1 : index
    %c1_1136 = arith.constant 1 : index
    %1269 = vector.load %arg3[%c0_1131, %c1_1132, %c1_1133, %c1_1134, %c1_1135, %c1_1136] : memref<1x2x2x4x9x9xf32, #tpu.memory_space<vmem>>, vector<1x1x1x1x8x8xf32>
    %1270 = vector.shape_cast %1269 : vector<1x1x1x1x8x8xf32> to vector<8x8xf32>
    %1271 = vector.broadcast %1268 : f32 to vector<8x8xf32>
    %1272 = arith.mulf %1271, %1270 : vector<8x8xf32>
    %1273 = arith.addf %1263, %1272 : vector<8x8xf32>
    %c18_i32_1137 = arith.constant 18 : i32
    %1274 = arith.addi %0, %c18_i32_1137 : i32
    %c0_i32_1138 = arith.constant 0 : i32
    %1275 = arith.addi %1274, %c0_i32_1138 : i32
    %c0_i32_1139 = arith.constant 0 : i32
    %1276 = arith.addi %1275, %c0_i32_1139 : i32
    %1277 = arith.index_cast %1276 : i32 to index
    %1278 = memref.load %arg2[%1277] : memref<72xf32, #tpu.memory_space<smem>>
    %c0_1140 = arith.constant 0 : index
    %c1_1141 = arith.constant 1 : index
    %c1_1142 = arith.constant 1 : index
    %c2_1143 = arith.constant 2 : index
    %c0_1144 = arith.constant 0 : index
    %c0_1145 = arith.constant 0 : index
    %1279 = vector.load %arg3[%c0_1140, %c1_1141, %c1_1142, %c2_1143, %c0_1144, %c0_1145] : memref<1x2x2x4x9x9xf32, #tpu.memory_space<vmem>>, vector<1x1x1x1x8x8xf32>
    %1280 = vector.shape_cast %1279 : vector<1x1x1x1x8x8xf32> to vector<8x8xf32>
    %1281 = vector.broadcast %1278 : f32 to vector<8x8xf32>
    %1282 = arith.mulf %1281, %1280 : vector<8x8xf32>
    %1283 = arith.addf %1273, %1282 : vector<8x8xf32>
    %c18_i32_1146 = arith.constant 18 : i32
    %1284 = arith.addi %0, %c18_i32_1146 : i32
    %c0_i32_1147 = arith.constant 0 : i32
    %1285 = arith.addi %1284, %c0_i32_1147 : i32
    %c1_i32_1148 = arith.constant 1 : i32
    %1286 = arith.addi %1285, %c1_i32_1148 : i32
    %1287 = arith.index_cast %1286 : i32 to index
    %1288 = memref.load %arg2[%1287] : memref<72xf32, #tpu.memory_space<smem>>
    %c0_1149 = arith.constant 0 : index
    %c1_1150 = arith.constant 1 : index
    %c0_1151 = arith.constant 0 : index
    %c2_1152 = arith.constant 2 : index
    %c0_1153 = arith.constant 0 : index
    %c1_1154 = arith.constant 1 : index
    %1289 = vector.load %arg3[%c0_1149, %c1_1150, %c0_1151, %c2_1152, %c0_1153, %c1_1154] : memref<1x2x2x4x9x9xf32, #tpu.memory_space<vmem>>, vector<1x1x1x1x8x8xf32>
    %1290 = vector.shape_cast %1289 : vector<1x1x1x1x8x8xf32> to vector<8x8xf32>
    %1291 = vector.broadcast %1288 : f32 to vector<8x8xf32>
    %1292 = arith.mulf %1291, %1290 : vector<8x8xf32>
    %1293 = arith.addf %1283, %1292 : vector<8x8xf32>
    %c18_i32_1155 = arith.constant 18 : i32
    %1294 = arith.addi %0, %c18_i32_1155 : i32
    %c0_i32_1156 = arith.constant 0 : i32
    %1295 = arith.addi %1294, %c0_i32_1156 : i32
    %c2_i32_1157 = arith.constant 2 : i32
    %1296 = arith.addi %1295, %c2_i32_1157 : i32
    %1297 = arith.index_cast %1296 : i32 to index
    %1298 = memref.load %arg2[%1297] : memref<72xf32, #tpu.memory_space<smem>>
    %c0_1158 = arith.constant 0 : index
    %c1_1159 = arith.constant 1 : index
    %c1_1160 = arith.constant 1 : index
    %c2_1161 = arith.constant 2 : index
    %c0_1162 = arith.constant 0 : index
    %c1_1163 = arith.constant 1 : index
    %1299 = vector.load %arg3[%c0_1158, %c1_1159, %c1_1160, %c2_1161, %c0_1162, %c1_1163] : memref<1x2x2x4x9x9xf32, #tpu.memory_space<vmem>>, vector<1x1x1x1x8x8xf32>
    %1300 = vector.shape_cast %1299 : vector<1x1x1x1x8x8xf32> to vector<8x8xf32>
    %1301 = vector.broadcast %1298 : f32 to vector<8x8xf32>
    %1302 = arith.mulf %1301, %1300 : vector<8x8xf32>
    %1303 = arith.addf %1293, %1302 : vector<8x8xf32>
    %c18_i32_1164 = arith.constant 18 : i32
    %1304 = arith.addi %0, %c18_i32_1164 : i32
    %c3_i32_1165 = arith.constant 3 : i32
    %1305 = arith.addi %1304, %c3_i32_1165 : i32
    %c0_i32_1166 = arith.constant 0 : i32
    %1306 = arith.addi %1305, %c0_i32_1166 : i32
    %1307 = arith.index_cast %1306 : i32 to index
    %1308 = memref.load %arg2[%1307] : memref<72xf32, #tpu.memory_space<smem>>
    %c0_1167 = arith.constant 0 : index
    %c0_1168 = arith.constant 0 : index
    %c1_1169 = arith.constant 1 : index
    %c2_1170 = arith.constant 2 : index
    %c1_1171 = arith.constant 1 : index
    %c0_1172 = arith.constant 0 : index
    %1309 = vector.load %arg3[%c0_1167, %c0_1168, %c1_1169, %c2_1170, %c1_1171, %c0_1172] : memref<1x2x2x4x9x9xf32, #tpu.memory_space<vmem>>, vector<1x1x1x1x8x8xf32>
    %1310 = vector.shape_cast %1309 : vector<1x1x1x1x8x8xf32> to vector<8x8xf32>
    %1311 = vector.broadcast %1308 : f32 to vector<8x8xf32>
    %1312 = arith.mulf %1311, %1310 : vector<8x8xf32>
    %1313 = arith.addf %1303, %1312 : vector<8x8xf32>
    %c18_i32_1173 = arith.constant 18 : i32
    %1314 = arith.addi %0, %c18_i32_1173 : i32
    %c3_i32_1174 = arith.constant 3 : i32
    %1315 = arith.addi %1314, %c3_i32_1174 : i32
    %c1_i32_1175 = arith.constant 1 : i32
    %1316 = arith.addi %1315, %c1_i32_1175 : i32
    %1317 = arith.index_cast %1316 : i32 to index
    %1318 = memref.load %arg2[%1317] : memref<72xf32, #tpu.memory_space<smem>>
    %c0_1176 = arith.constant 0 : index
    %c0_1177 = arith.constant 0 : index
    %c0_1178 = arith.constant 0 : index
    %c2_1179 = arith.constant 2 : index
    %c1_1180 = arith.constant 1 : index
    %c1_1181 = arith.constant 1 : index
    %1319 = vector.load %arg3[%c0_1176, %c0_1177, %c0_1178, %c2_1179, %c1_1180, %c1_1181] : memref<1x2x2x4x9x9xf32, #tpu.memory_space<vmem>>, vector<1x1x1x1x8x8xf32>
    %1320 = vector.shape_cast %1319 : vector<1x1x1x1x8x8xf32> to vector<8x8xf32>
    %1321 = vector.broadcast %1318 : f32 to vector<8x8xf32>
    %1322 = arith.mulf %1321, %1320 : vector<8x8xf32>
    %1323 = arith.addf %1313, %1322 : vector<8x8xf32>
    %c18_i32_1182 = arith.constant 18 : i32
    %1324 = arith.addi %0, %c18_i32_1182 : i32
    %c3_i32_1183 = arith.constant 3 : i32
    %1325 = arith.addi %1324, %c3_i32_1183 : i32
    %c2_i32_1184 = arith.constant 2 : i32
    %1326 = arith.addi %1325, %c2_i32_1184 : i32
    %1327 = arith.index_cast %1326 : i32 to index
    %1328 = memref.load %arg2[%1327] : memref<72xf32, #tpu.memory_space<smem>>
    %c0_1185 = arith.constant 0 : index
    %c0_1186 = arith.constant 0 : index
    %c1_1187 = arith.constant 1 : index
    %c2_1188 = arith.constant 2 : index
    %c1_1189 = arith.constant 1 : index
    %c1_1190 = arith.constant 1 : index
    %1329 = vector.load %arg3[%c0_1185, %c0_1186, %c1_1187, %c2_1188, %c1_1189, %c1_1190] : memref<1x2x2x4x9x9xf32, #tpu.memory_space<vmem>>, vector<1x1x1x1x8x8xf32>
    %1330 = vector.shape_cast %1329 : vector<1x1x1x1x8x8xf32> to vector<8x8xf32>
    %1331 = vector.broadcast %1328 : f32 to vector<8x8xf32>
    %1332 = arith.mulf %1331, %1330 : vector<8x8xf32>
    %1333 = arith.addf %1323, %1332 : vector<8x8xf32>
    %c18_i32_1191 = arith.constant 18 : i32
    %1334 = arith.addi %0, %c18_i32_1191 : i32
    %c6_i32_1192 = arith.constant 6 : i32
    %1335 = arith.addi %1334, %c6_i32_1192 : i32
    %c0_i32_1193 = arith.constant 0 : i32
    %1336 = arith.addi %1335, %c0_i32_1193 : i32
    %1337 = arith.index_cast %1336 : i32 to index
    %1338 = memref.load %arg2[%1337] : memref<72xf32, #tpu.memory_space<smem>>
    %c0_1194 = arith.constant 0 : index
    %c1_1195 = arith.constant 1 : index
    %c1_1196 = arith.constant 1 : index
    %c2_1197 = arith.constant 2 : index
    %c1_1198 = arith.constant 1 : index
    %c0_1199 = arith.constant 0 : index
    %1339 = vector.load %arg3[%c0_1194, %c1_1195, %c1_1196, %c2_1197, %c1_1198, %c0_1199] : memref<1x2x2x4x9x9xf32, #tpu.memory_space<vmem>>, vector<1x1x1x1x8x8xf32>
    %1340 = vector.shape_cast %1339 : vector<1x1x1x1x8x8xf32> to vector<8x8xf32>
    %1341 = vector.broadcast %1338 : f32 to vector<8x8xf32>
    %1342 = arith.mulf %1341, %1340 : vector<8x8xf32>
    %1343 = arith.addf %1333, %1342 : vector<8x8xf32>
    %c18_i32_1200 = arith.constant 18 : i32
    %1344 = arith.addi %0, %c18_i32_1200 : i32
    %c6_i32_1201 = arith.constant 6 : i32
    %1345 = arith.addi %1344, %c6_i32_1201 : i32
    %c1_i32_1202 = arith.constant 1 : i32
    %1346 = arith.addi %1345, %c1_i32_1202 : i32
    %1347 = arith.index_cast %1346 : i32 to index
    %1348 = memref.load %arg2[%1347] : memref<72xf32, #tpu.memory_space<smem>>
    %c0_1203 = arith.constant 0 : index
    %c1_1204 = arith.constant 1 : index
    %c0_1205 = arith.constant 0 : index
    %c2_1206 = arith.constant 2 : index
    %c1_1207 = arith.constant 1 : index
    %c1_1208 = arith.constant 1 : index
    %1349 = vector.load %arg3[%c0_1203, %c1_1204, %c0_1205, %c2_1206, %c1_1207, %c1_1208] : memref<1x2x2x4x9x9xf32, #tpu.memory_space<vmem>>, vector<1x1x1x1x8x8xf32>
    %1350 = vector.shape_cast %1349 : vector<1x1x1x1x8x8xf32> to vector<8x8xf32>
    %1351 = vector.broadcast %1348 : f32 to vector<8x8xf32>
    %1352 = arith.mulf %1351, %1350 : vector<8x8xf32>
    %1353 = arith.addf %1343, %1352 : vector<8x8xf32>
    %c18_i32_1209 = arith.constant 18 : i32
    %1354 = arith.addi %0, %c18_i32_1209 : i32
    %c6_i32_1210 = arith.constant 6 : i32
    %1355 = arith.addi %1354, %c6_i32_1210 : i32
    %c2_i32_1211 = arith.constant 2 : i32
    %1356 = arith.addi %1355, %c2_i32_1211 : i32
    %1357 = arith.index_cast %1356 : i32 to index
    %1358 = memref.load %arg2[%1357] : memref<72xf32, #tpu.memory_space<smem>>
    %c0_1212 = arith.constant 0 : index
    %c1_1213 = arith.constant 1 : index
    %c1_1214 = arith.constant 1 : index
    %c2_1215 = arith.constant 2 : index
    %c1_1216 = arith.constant 1 : index
    %c1_1217 = arith.constant 1 : index
    %1359 = vector.load %arg3[%c0_1212, %c1_1213, %c1_1214, %c2_1215, %c1_1216, %c1_1217] : memref<1x2x2x4x9x9xf32, #tpu.memory_space<vmem>>, vector<1x1x1x1x8x8xf32>
    %1360 = vector.shape_cast %1359 : vector<1x1x1x1x8x8xf32> to vector<8x8xf32>
    %1361 = vector.broadcast %1358 : f32 to vector<8x8xf32>
    %1362 = arith.mulf %1361, %1360 : vector<8x8xf32>
    %1363 = arith.addf %1353, %1362 : vector<8x8xf32>
    %c27_i32_1218 = arith.constant 27 : i32
    %1364 = arith.addi %0, %c27_i32_1218 : i32
    %c0_i32_1219 = arith.constant 0 : i32
    %1365 = arith.addi %1364, %c0_i32_1219 : i32
    %c0_i32_1220 = arith.constant 0 : i32
    %1366 = arith.addi %1365, %c0_i32_1220 : i32
    %1367 = arith.index_cast %1366 : i32 to index
    %1368 = memref.load %arg2[%1367] : memref<72xf32, #tpu.memory_space<smem>>
    %c0_1221 = arith.constant 0 : index
    %c1_1222 = arith.constant 1 : index
    %c1_1223 = arith.constant 1 : index
    %c3_1224 = arith.constant 3 : index
    %c0_1225 = arith.constant 0 : index
    %c0_1226 = arith.constant 0 : index
    %1369 = vector.load %arg3[%c0_1221, %c1_1222, %c1_1223, %c3_1224, %c0_1225, %c0_1226] : memref<1x2x2x4x9x9xf32, #tpu.memory_space<vmem>>, vector<1x1x1x1x8x8xf32>
    %1370 = vector.shape_cast %1369 : vector<1x1x1x1x8x8xf32> to vector<8x8xf32>
    %1371 = vector.broadcast %1368 : f32 to vector<8x8xf32>
    %1372 = arith.mulf %1371, %1370 : vector<8x8xf32>
    %1373 = arith.addf %1363, %1372 : vector<8x8xf32>
    %c27_i32_1227 = arith.constant 27 : i32
    %1374 = arith.addi %0, %c27_i32_1227 : i32
    %c0_i32_1228 = arith.constant 0 : i32
    %1375 = arith.addi %1374, %c0_i32_1228 : i32
    %c1_i32_1229 = arith.constant 1 : i32
    %1376 = arith.addi %1375, %c1_i32_1229 : i32
    %1377 = arith.index_cast %1376 : i32 to index
    %1378 = memref.load %arg2[%1377] : memref<72xf32, #tpu.memory_space<smem>>
    %c0_1230 = arith.constant 0 : index
    %c1_1231 = arith.constant 1 : index
    %c0_1232 = arith.constant 0 : index
    %c3_1233 = arith.constant 3 : index
    %c0_1234 = arith.constant 0 : index
    %c1_1235 = arith.constant 1 : index
    %1379 = vector.load %arg3[%c0_1230, %c1_1231, %c0_1232, %c3_1233, %c0_1234, %c1_1235] : memref<1x2x2x4x9x9xf32, #tpu.memory_space<vmem>>, vector<1x1x1x1x8x8xf32>
    %1380 = vector.shape_cast %1379 : vector<1x1x1x1x8x8xf32> to vector<8x8xf32>
    %1381 = vector.broadcast %1378 : f32 to vector<8x8xf32>
    %1382 = arith.mulf %1381, %1380 : vector<8x8xf32>
    %1383 = arith.addf %1373, %1382 : vector<8x8xf32>
    %c27_i32_1236 = arith.constant 27 : i32
    %1384 = arith.addi %0, %c27_i32_1236 : i32
    %c0_i32_1237 = arith.constant 0 : i32
    %1385 = arith.addi %1384, %c0_i32_1237 : i32
    %c2_i32_1238 = arith.constant 2 : i32
    %1386 = arith.addi %1385, %c2_i32_1238 : i32
    %1387 = arith.index_cast %1386 : i32 to index
    %1388 = memref.load %arg2[%1387] : memref<72xf32, #tpu.memory_space<smem>>
    %c0_1239 = arith.constant 0 : index
    %c1_1240 = arith.constant 1 : index
    %c1_1241 = arith.constant 1 : index
    %c3_1242 = arith.constant 3 : index
    %c0_1243 = arith.constant 0 : index
    %c1_1244 = arith.constant 1 : index
    %1389 = vector.load %arg3[%c0_1239, %c1_1240, %c1_1241, %c3_1242, %c0_1243, %c1_1244] : memref<1x2x2x4x9x9xf32, #tpu.memory_space<vmem>>, vector<1x1x1x1x8x8xf32>
    %1390 = vector.shape_cast %1389 : vector<1x1x1x1x8x8xf32> to vector<8x8xf32>
    %1391 = vector.broadcast %1388 : f32 to vector<8x8xf32>
    %1392 = arith.mulf %1391, %1390 : vector<8x8xf32>
    %1393 = arith.addf %1383, %1392 : vector<8x8xf32>
    %c27_i32_1245 = arith.constant 27 : i32
    %1394 = arith.addi %0, %c27_i32_1245 : i32
    %c3_i32_1246 = arith.constant 3 : i32
    %1395 = arith.addi %1394, %c3_i32_1246 : i32
    %c0_i32_1247 = arith.constant 0 : i32
    %1396 = arith.addi %1395, %c0_i32_1247 : i32
    %1397 = arith.index_cast %1396 : i32 to index
    %1398 = memref.load %arg2[%1397] : memref<72xf32, #tpu.memory_space<smem>>
    %c0_1248 = arith.constant 0 : index
    %c0_1249 = arith.constant 0 : index
    %c1_1250 = arith.constant 1 : index
    %c3_1251 = arith.constant 3 : index
    %c1_1252 = arith.constant 1 : index
    %c0_1253 = arith.constant 0 : index
    %1399 = vector.load %arg3[%c0_1248, %c0_1249, %c1_1250, %c3_1251, %c1_1252, %c0_1253] : memref<1x2x2x4x9x9xf32, #tpu.memory_space<vmem>>, vector<1x1x1x1x8x8xf32>
    %1400 = vector.shape_cast %1399 : vector<1x1x1x1x8x8xf32> to vector<8x8xf32>
    %1401 = vector.broadcast %1398 : f32 to vector<8x8xf32>
    %1402 = arith.mulf %1401, %1400 : vector<8x8xf32>
    %1403 = arith.addf %1393, %1402 : vector<8x8xf32>
    %c27_i32_1254 = arith.constant 27 : i32
    %1404 = arith.addi %0, %c27_i32_1254 : i32
    %c3_i32_1255 = arith.constant 3 : i32
    %1405 = arith.addi %1404, %c3_i32_1255 : i32
    %c1_i32_1256 = arith.constant 1 : i32
    %1406 = arith.addi %1405, %c1_i32_1256 : i32
    %1407 = arith.index_cast %1406 : i32 to index
    %1408 = memref.load %arg2[%1407] : memref<72xf32, #tpu.memory_space<smem>>
    %c0_1257 = arith.constant 0 : index
    %c0_1258 = arith.constant 0 : index
    %c0_1259 = arith.constant 0 : index
    %c3_1260 = arith.constant 3 : index
    %c1_1261 = arith.constant 1 : index
    %c1_1262 = arith.constant 1 : index
    %1409 = vector.load %arg3[%c0_1257, %c0_1258, %c0_1259, %c3_1260, %c1_1261, %c1_1262] : memref<1x2x2x4x9x9xf32, #tpu.memory_space<vmem>>, vector<1x1x1x1x8x8xf32>
    %1410 = vector.shape_cast %1409 : vector<1x1x1x1x8x8xf32> to vector<8x8xf32>
    %1411 = vector.broadcast %1408 : f32 to vector<8x8xf32>
    %1412 = arith.mulf %1411, %1410 : vector<8x8xf32>
    %1413 = arith.addf %1403, %1412 : vector<8x8xf32>
    %c27_i32_1263 = arith.constant 27 : i32
    %1414 = arith.addi %0, %c27_i32_1263 : i32
    %c3_i32_1264 = arith.constant 3 : i32
    %1415 = arith.addi %1414, %c3_i32_1264 : i32
    %c2_i32_1265 = arith.constant 2 : i32
    %1416 = arith.addi %1415, %c2_i32_1265 : i32
    %1417 = arith.index_cast %1416 : i32 to index
    %1418 = memref.load %arg2[%1417] : memref<72xf32, #tpu.memory_space<smem>>
    %c0_1266 = arith.constant 0 : index
    %c0_1267 = arith.constant 0 : index
    %c1_1268 = arith.constant 1 : index
    %c3_1269 = arith.constant 3 : index
    %c1_1270 = arith.constant 1 : index
    %c1_1271 = arith.constant 1 : index
    %1419 = vector.load %arg3[%c0_1266, %c0_1267, %c1_1268, %c3_1269, %c1_1270, %c1_1271] : memref<1x2x2x4x9x9xf32, #tpu.memory_space<vmem>>, vector<1x1x1x1x8x8xf32>
    %1420 = vector.shape_cast %1419 : vector<1x1x1x1x8x8xf32> to vector<8x8xf32>
    %1421 = vector.broadcast %1418 : f32 to vector<8x8xf32>
    %1422 = arith.mulf %1421, %1420 : vector<8x8xf32>
    %1423 = arith.addf %1413, %1422 : vector<8x8xf32>
    %c27_i32_1272 = arith.constant 27 : i32
    %1424 = arith.addi %0, %c27_i32_1272 : i32
    %c6_i32_1273 = arith.constant 6 : i32
    %1425 = arith.addi %1424, %c6_i32_1273 : i32
    %c0_i32_1274 = arith.constant 0 : i32
    %1426 = arith.addi %1425, %c0_i32_1274 : i32
    %1427 = arith.index_cast %1426 : i32 to index
    %1428 = memref.load %arg2[%1427] : memref<72xf32, #tpu.memory_space<smem>>
    %c0_1275 = arith.constant 0 : index
    %c1_1276 = arith.constant 1 : index
    %c1_1277 = arith.constant 1 : index
    %c3_1278 = arith.constant 3 : index
    %c1_1279 = arith.constant 1 : index
    %c0_1280 = arith.constant 0 : index
    %1429 = vector.load %arg3[%c0_1275, %c1_1276, %c1_1277, %c3_1278, %c1_1279, %c0_1280] : memref<1x2x2x4x9x9xf32, #tpu.memory_space<vmem>>, vector<1x1x1x1x8x8xf32>
    %1430 = vector.shape_cast %1429 : vector<1x1x1x1x8x8xf32> to vector<8x8xf32>
    %1431 = vector.broadcast %1428 : f32 to vector<8x8xf32>
    %1432 = arith.mulf %1431, %1430 : vector<8x8xf32>
    %1433 = arith.addf %1423, %1432 : vector<8x8xf32>
    %c27_i32_1281 = arith.constant 27 : i32
    %1434 = arith.addi %0, %c27_i32_1281 : i32
    %c6_i32_1282 = arith.constant 6 : i32
    %1435 = arith.addi %1434, %c6_i32_1282 : i32
    %c1_i32_1283 = arith.constant 1 : i32
    %1436 = arith.addi %1435, %c1_i32_1283 : i32
    %1437 = arith.index_cast %1436 : i32 to index
    %1438 = memref.load %arg2[%1437] : memref<72xf32, #tpu.memory_space<smem>>
    %c0_1284 = arith.constant 0 : index
    %c1_1285 = arith.constant 1 : index
    %c0_1286 = arith.constant 0 : index
    %c3_1287 = arith.constant 3 : index
    %c1_1288 = arith.constant 1 : index
    %c1_1289 = arith.constant 1 : index
    %1439 = vector.load %arg3[%c0_1284, %c1_1285, %c0_1286, %c3_1287, %c1_1288, %c1_1289] : memref<1x2x2x4x9x9xf32, #tpu.memory_space<vmem>>, vector<1x1x1x1x8x8xf32>
    %1440 = vector.shape_cast %1439 : vector<1x1x1x1x8x8xf32> to vector<8x8xf32>
    %1441 = vector.broadcast %1438 : f32 to vector<8x8xf32>
    %1442 = arith.mulf %1441, %1440 : vector<8x8xf32>
    %1443 = arith.addf %1433, %1442 : vector<8x8xf32>
    %c27_i32_1290 = arith.constant 27 : i32
    %1444 = arith.addi %0, %c27_i32_1290 : i32
    %c6_i32_1291 = arith.constant 6 : i32
    %1445 = arith.addi %1444, %c6_i32_1291 : i32
    %c2_i32_1292 = arith.constant 2 : i32
    %1446 = arith.addi %1445, %c2_i32_1292 : i32
    %1447 = arith.index_cast %1446 : i32 to index
    %1448 = memref.load %arg2[%1447] : memref<72xf32, #tpu.memory_space<smem>>
    %c0_1293 = arith.constant 0 : index
    %c1_1294 = arith.constant 1 : index
    %c1_1295 = arith.constant 1 : index
    %c3_1296 = arith.constant 3 : index
    %c1_1297 = arith.constant 1 : index
    %c1_1298 = arith.constant 1 : index
    %1449 = vector.load %arg3[%c0_1293, %c1_1294, %c1_1295, %c3_1296, %c1_1297, %c1_1298] : memref<1x2x2x4x9x9xf32, #tpu.memory_space<vmem>>, vector<1x1x1x1x8x8xf32>
    %1450 = vector.shape_cast %1449 : vector<1x1x1x1x8x8xf32> to vector<8x8xf32>
    %1451 = vector.broadcast %1448 : f32 to vector<8x8xf32>
    %1452 = arith.mulf %1451, %1450 : vector<8x8xf32>
    %1453 = arith.addf %1443, %1452 : vector<8x8xf32>
    %c0_1299 = arith.constant 0 : index
    %c3_1300 = arith.constant 3 : index
    %c0_1301 = arith.constant 0 : index
    %c0_1302 = arith.constant 0 : index
    %1454 = vector.load %arg4[%c0_1299, %c3_1300, %c0_1301, %c0_1302] : memref<1x4x8x8xf32, #tpu.memory_space<vmem>>, vector<1x1x8x8xf32>
    %1455 = vector.shape_cast %1454 : vector<1x1x8x8xf32> to vector<8x8xf32>
    %1456 = vector.shape_cast %1453 : vector<8x8xf32> to vector<1x1x8x8xf32>
    tpu.vector_store %arg4[%c0_1299, %c3_1300, %c0_1301, %c0_1302], %1456 {strides = array<i32>} : memref<1x4x8x8xf32, #tpu.memory_space<vmem>>, vector<1x1x8x8xf32>,
    return
  }
  func.func @transform_0(%arg0: i32, %arg1: i32) -> i32 {
    %c0_i32 = arith.constant 0 : i32
    %c0_i32_0 = arith.constant 0 : i32
    return %c0_i32 : i32
  }
  func.func @transform_1(%arg0: i32, %arg1: i32) -> (i32, i32, i32, i32, i32, i32) {
    %c0_i32 = arith.constant 0 : i32
    %c0_i32_0 = arith.constant 0 : i32
    %c0_i32_1 = arith.constant 0 : i32
    %c0_i32_2 = arith.constant 0 : i32
    %c0_i32_3 = arith.constant 0 : i32
    %c0_i32_4 = arith.constant 0 : i32
    return %arg0, %c0_i32, %c0_i32_0, %c0_i32_1, %c0_i32_2, %c0_i32_3 : i32, i32, i32, i32, i32, i32
  }
  func.func @transform_2(%arg0: i32, %arg1: i32) -> (i32, i32, i32, i32) {
    %c0_i32 = arith.constant 0 : i32
    %c0_i32_0 = arith.constant 0 : i32
    %c0_i32_1 = arith.constant 0 : i32
    return %arg0, %arg1, %c0_i32, %c0_i32_0 : i32, i32, i32, i32
  }
}

</mosaic_0001>

<bundles_post_ra>
// kernel: tpu_custom_call.1
= control target key start
LH: loop header
LB: loop body
LE: loop exit
PB: predicated region body
PF: predicated region fallthrough
CT: control target
= control target key end

     0   :  { %s2687_s0 = inlined_call_operand.vmem [shape: f32[72], index: 0, kind: input, shape index: {}]   ;;  %s2688_s1 = inlined_call_operand.vmem [shape: f32[2,2,2,4,9,9], index: 1, kind: input, shape index: {}]   ;;  %s2689_s2 = inlined_call_operand.hbm [shape: f32[2,8,8,8], index: 2, kind: output, shape index: {}]  }
   0x1   :  { %2703 = sst [smem:[#allocation24_spill]] %s2687_s0 }
   0x2   :  { %2704 = sst [smem:[#allocation25_spill]] %s2688_s1 }
   0x3   :  { %7 = vsyncpa [#allocation4], 0 }
   0x4   :  { %8 = vsyncpa [#allocation3], 0 }
   0x5   :  { %10 = vsyncpa [#allocation3 + $0x1], 0  ;;  %s1629_s9 = smov 0   ;;  %s1631_s10 = smov 0  }
   0x6   :  { %s1633_s11 = smov 0   ;;  %s1635_s12 = smov 0  }
   0x7   :  { %s1637_s13 = smov 0   ;;  %s1639_s14 = smov 0  }
   0x8   :  { %s1641_s15 = smov 0   ;;  %s1643_s16 = smov 0  }
   0x9 LB: > { %2705 = sst [smem:[#allocation8_spill]] %s1579_s9  ;;  %s1294_s17 = sadd.s32 4294967295, %s1607_s16   ;;  %s1607_s16 = sphi %s1643_s16, %s16_s16   ;;  %s1603_s15 = sphi %s1641_s15, %s2744_s15   ;;  %s1599_s14 = sphi %s1639_s14, %s2747_s14   ;;  %s1595_s13 = sphi %s1637_s13, %s2742_s13   ;;  %s1591_s12 = sphi %s1635_s12, %s2741_s12   ;;  %s1587_s11 = sphi %s1633_s11, %s2740_s11   ;;  %s1583_s10 = sphi %s1631_s10, %s2746_s10   ;;  %s1579_s9 = sphi %s1629_s9, %s2745_s9  }
   0xa   : > { %2706 = sst [smem:[#allocation9_spill]] %s1587_s11  ;;  %s1295_s18 = sadd.s32 4294967294, %s1607_s16  }
   0xb   : > { %2707 = sst [smem:[#allocation10_spill]] %s1599_s14  ;;  %s25_s19 = sadd.s32 1, %s1599_s14 }
   0xc   : > { %2708 = sst [smem:[#allocation11_spill]] %s1603_s15  ;;  %s28_s20 = sadd.s32 1, %s1603_s15 }
   0xd   : > { %p26_p0 = scmp.ge.s32.totalorder %s25_s19, 2  ;;  %s84_s21 = sadd.s32 1, %s1587_s11 }
   0xe   : > { %p94_p1 = scmp.ne.s32.totalorder %s1587_s11, %s1583_s10  ;;  %p95_p2 = scmp.eq.s32.totalorder %s1294_s17, 3 }
   0xf   : > { %s2749_s19 = smov (%p26_p0, %s25_s19), 0  ;;  %s2751_s20 = smov (!%p26_p0, %s28_s20), %s1603_s15 }
  0x10   : > { %2709 = sst [smem:[#allocation12_spill]] %s2749_s19  ;;  %s80_s22 = ssub.s32 %s1599_s14, %s2749_s19 }
  0x11   : > { %p1681_p3 = por %p95_p2, %p94_p1  ;;  %p30_p4 = scmp.ge.s32.totalorder %s2751_s20, 2 }
  0x12   : > { %p100_p5 = scmp.ne.s32.totalorder %s1583_s10, %s1579_s9  ;;  %p101_p6 = scmp.eq.s32.totalorder %s1295_s18, 3 }
  0x13   : > { %p1296_p7 = scmp.ge.s32.totalorder %s1607_s16, 1  ;;  %s2753_s20 = smov (%p30_p4, %s2751_s20), 0 }
  0x14   : > { %2711 = sst [smem:[#allocation13_spill]] %s2753_s20  ;;  %p1690_p8 = por %p101_p6, %p100_p5 }
  0x15   : > { %p108_p9 = scmp.lt.s32.totalorder %s1607_s16, 5  ;;  %s79_s25 = ssub.s32 %s1603_s15, %s2753_s20 }
  0x16   : > { %s2712_s24 = scalar_select %p1690_p8, 1, 0 }
  0x17   : > { %s81_s26 = sor.u32 %s80_s22, %s79_s25  ;;  %p1697_p10 = pnand %p1296_p7, %p108_p9 }
  0x18   : > { %2713 = sst [smem:[#allocation14_spill]] %s2712_s24  ;;  %p82_p11 = scmp.eq.s32.totalorder %s81_s26, 0 }
  0x19   : > { %p1701_p12 = scmp.eq.s32.totalorder %s1294_s17, 0  ;;  %p1410_p13 = pneg %p1697_p10 }
  0x1a   : > { %s2716_s0 = sld [smem:[#allocation24_spill]] }
  0x1b   : > { %s1711_s4 = scalar_select %p82_p11, %s1587_s11, %s84_s21  }
  0x1c   : > { %p1411_p0 = pnand %p1701_p12, %p1410_p13 }
  0x1d   : > { %2717 = sst [smem:[#allocation15_spill]] %s1711_s4 }
  0x1e   : > { %p1496_p2 = pneg %p1411_p0 }
  0x20   : > { %s121_s3 = sshll.u32 %s2716_s0, 4  ;;  %s122_s3 = int_to_ptr.vmem [resolvable:$true] %s121_s3 }
  0x21   : > { %s1494_s5 = scalar_lea.vmem %s122_s3, 16  ;;  %p1502_p6 = scmp.lt.s32.totalorder %s122_s3, %s122_s3 }
  0x22   : > { %p1495_p1 = scmp.ne.s32.totalorder %s122_s3, %s1494_s5  ;;  %p1503_p7 = scmp.lt.s32.totalorder %s1494_s5, %s1494_s5 }
  0x24   : > { %p1497_p4 = pnand %p1496_p2, %p1495_p1  ;;  %p1504_p9 = por %p1503_p7, %p1502_p6 }
  0x26   : > { %p1498_p5 = pneg %p1497_p4 }
  0x28   : > { %p1505_p8 = pnand %p1504_p9, %p1498_p5 }
  0x2a   : > { %1508 = shalt.err (!%p1505_p8)
}
  0x2b   : > { %s1609_s6 = smov [#allocation2]   ;;  %142 = sbr.rel (%p1697_p10) target bundleno = 339 (0x153), region = 28 }
  0x2c   : > { %1413 = dma.vmem_to_smem (!%p1411_p0), %s122_s3, 16, %s1609_s6, [#allocation4]  }
  0x32   : > { %1570 = dma.done.wait (%p1701_p12), [#allocation4], 16  }
  0x33   : > { %1572 = vsyncadd (%p1701_p12), [#allocation4], 4294967280 }
  0x34   : > { %148 = sfence }
  0x35   : > { %p165_p11 = scmp.lt.s32.totalorder %s1595_s13, 1  ;;  %s1723_s7 = smul.u32 36, %s1591_s12  ;;  %vm438_vm0 = vcmask 64512  }
  0x36   : > { %s2718_s1 = sld [smem:[#allocation25_spill]]  ;;  %s2696_s0 = smov 127  }
  0x37   : > { %s166_s8 = scalar_select %p165_p11, %s1595_s13, 1 }
  0x38   : > { %s1727_s17 = sadd.s32 8, %s1723_s7  ;;  %s1736_s27 = sadd.s32 2, %s1723_s7 }
  0x39   : > { %s1403_s18 = sshll.u32 %s166_s8, 8  ;;  %s229_s21 = sld [smem:[#allocation2 + %s1727_s17]] }
  0x3a   : > { %s185_s28 = sld [smem:[#allocation2 + %s1736_s27]]  ;;  %s1740_s29 = sadd.s32 11, %s1723_s7 }
  0x3b   : > { %s252_s30 = sld [smem:[#allocation2 + %s1740_s29]]  ;;  %s1747_s3 = sadd.s32 5, %s1723_s7 }
  0x3c   : > { %s1733_s26 = scalar_lea.vmem %s2718_s1, %s1403_s18  ;;  %s208_s5 = sld [smem:[#allocation2 + %s1747_s3]] }
  0x3d   : > { %v1743_v0 = vld [vmem:[%s1733_s26 + $0x1] sm:$0xff]  ;;  %s1751_s6 = sadd.s32 17, %s1723_s7  ;;  %s1759_s18 = sadd.s32 14, %s1723_s7  ;;  %v1762_v5 = vld [vmem:[%s1733_s26 + $0x10] sm:$0xff] }
  0x3e   : > { %v1754_v2 = vld [vmem:[%s1733_s26] sm:$0xff]  ;;  %s296_s8 = sld [smem:[#allocation2 + %s1751_s6]]  ;;  %s1766_s25 = sadd.s32 23, %s1723_s7  ;;  %v1775_v9 = vld [vmem:[%s1733_s26 + $0x11] sm:$0xff] }
  0x3f   : > { %v230_v1 = vstv %s229_s21  ;;  %s275_s22 = sld [smem:[#allocation2 + %s1759_s18]]  ;;  %v1771_v7 = vld [vmem:[%s1733_s26 + $0x80] sm:$0xff]  ;;  %s1784_s20 = sadd.s32 1, %s1723_s7  ;;  %v1788_v14 = vld [vmem:[%s1733_s26 + $0x90] sm:$0xff] }
  0x40   : > { %v231_v3 = vmul.f32 %v230_v1, %v1743_v0  ;;  %v186_v4 = vstv %s185_s28  ;;  %s342_s21 = sld [smem:[#allocation2 + %s1766_s25]]  ;;  %s1778_s28 = sadd.s32 20, %s1723_s7  ;;  %v1795_v17 = vld [vmem:[%s1733_s26 + $0xa0] sm:$0xff]  ;;  %v1865_v40 = vld [vmem:[%s1733_s26 + $0xd1] sm:$0xff] }
  0x41   : > { %v187_v6 = vmul.f32 %v186_v4, %v1754_v2  ;;  %v253_v8 = vstv %s252_s30  ;;  %s319_s1 = sld [smem:[#allocation2 + %s1778_s28]]  ;;  %v1804_v20 = vld [vmem:[%s1733_s26 + $0x20] sm:$0xff]  ;;  %v1891_v46 = vld [vmem:[%s1733_s26 + $0x91] sm:$0xff]  ;;  %s2719_s9 = smov 127  }
  0x42   : > { %233 = vrot.lane.b32.xlu1 %v231_v3, %s2696_s0  ;;  %v254_v10 = vmul.f32 %v1762_v5, %v253_v8  ;;  %v209_v11 = vstv %s208_s5  ;;  %s929_s30 = sld [smem:[#allocation2 + %s1784_s20]]  ;;  %v1821_v29 = vld [vmem:[%s1733_s26 + $0x40] sm:$0xff] }
  0x43   : > { %189 = vrot.lane.b32.xlu0 %v187_v6, %s2696_s0  ;;  %v210_v12 = vmul.f32 %v1771_v7, %v209_v11  ;;  %s445_s19 = sld [smem:[#allocation2 + %s1784_s20]]  ;;  %v1837_v34 = vld [vmem:[%s1733_s26 + $0xc0] sm:$0xff] }
  0x44   : > { %v297_v13 = vstv %s296_s8  ;;  %s716_s5 = sld [smem:[#allocation2 + %s1736_s27]]  ;;  %s1801_s8 = sadd.s32 4, %s1723_s7  ;;  %v1876_v42 = vld [vmem:[%s1733_s26 + $0x41] sm:$0xff] }
  0x45   : > { %v298_v15 = vmul.f32 %v1775_v9, %v297_v13  ;;  %v276_v16 = vstv %s275_s22  ;;  %s454_s15 = sld [smem:[#allocation2 + %s1736_s27]]  ;;  %v1898_v49 = vld [vmem:[%s1733_s26 + $0x60] sm:$0xff] }
  0x46   : > { %256 = vrot.lane.b32.xlu1 %v254_v10, %s2696_s0  ;;  %v277_v18 = vmul.f32 %v1788_v14, %v276_v16  ;;  %v343_v19 = vstv %s342_s21  ;;  %s467_s22 = sld [smem:[#allocation2 + %s1801_s8]]  ;;  %v1914_v52 = vld [vmem:[%s1733_s26 + $0xe0] sm:$0xff] }
  0x47   : > { %212 = vrot.lane.b32.xlu0 %v210_v12, %s2696_s0  ;;  %v344_v21 = vmul.f32 %v1795_v17, %v343_v19  ;;  %v320_v22 = vstv %s319_s1  ;;  %s938_s21 = sld [smem:[#allocation2 + %s1736_s27]]  ;;  %s1834_s27 = sadd.s32 7, %s1723_s7  ;;  %v1921_v56 = vld [vmem:[%s1733_s26 + $0x81] sm:$0xff] }
  0x48   : > { %v931_v23 = vstv %s929_s30  ;;  %v321_v24 = vmul.f32 %v1804_v20, %v320_v22  ;;  %s1816_s14 = sld [smem:[#allocation2 + %s1747_s3]]  ;;  %v1935_v61 = vld [vmem:[%s1733_s26 + $0x61] sm:$0xff] }
  0x49   : > { %v447_v25 = vstv %s445_s19  ;;  %v932_v26 = vmul.f32 %v1771_v7, %v931_v23  ;;  %s1824_s1 = sld [smem:[#allocation2 + %s1801_s8]]  ;;  %v1954_v10 = vld [vmem:[%s1733_s26 + $0x21] sm:$0xff] }
  0x4a   : > { %300 = vrot.lane.b32.xlu1 %v298_v15, %s2696_s0  ;;  %v717_v27 = vstv %s716_s5  ;;  %v448_v28 = vmul.f32 %v447_v25, %v1754_v2  ;;  %s1829_s19 = sld [smem:[#allocation2 + %s1747_s3]]  ;;  %v1997_v25 = vld [vmem:[%s1733_s26 + $0xc1] sm:$0xff] }
  0x4b   : > { %279 = vrot.lane.b32.xlu0 %v277_v18, %s2696_s0  ;;  %v455_v30 = vstv %s454_s15  ;;  %v718_v31 = vmul.f32 %v1771_v7, %v717_v27  ;;  %s1840_s15 = sld [smem:[#allocation2 + %s1747_s3]] }
  0x4c   : > { %v469_v32 = vstv %s467_s22  ;;  %v456_v33 = vmul.f32 %v1821_v29, %v455_v30  ;;  %s1048_s30 = sld [smem:[#allocation2 + %s1751_s6]]  ;;  %v2016_v30 = vld [vmem:[%s1733_s26 + $0x50] sm:$0xff] }
  0x4d   : > { %v939_v35 = vstv %s938_s21  ;;  %v470_v36 = vmul.f32 %v1771_v7, %v469_v32  ;;  %s1846_s5 = sld [smem:[#allocation2 + %s1751_s6]] }
  0x4e   : > { %346 = vrot.lane.b32.xlu1 %v344_v21, %s2696_s0  ;;  %v477_v37 = vstv %s1816_s14  ;;  %s1850_s22 = sld [smem:[#allocation2 + %s1834_s27]]  ;;  %v940_v38 = vmul.f32 %v1837_v34, %v939_v35 }
  0x4f   : > { %323 = vrot.lane.b32.xlu0 %v321_v24, %s2696_s0  ;;  %s1855_s3 = sld [smem:[#allocation2 + %s1778_s28]]  ;;  %v953_v39 = vstv %s1824_s1  ;;  %v478_v41 = vmul.f32 %v1837_v34, %v477_v37 }
  0x50   : > { %s1858_s21 = sld [smem:[#allocation2 + %s1778_s28]]  ;;  %v961_v43 = vstv %s1829_s19  ;;  %v954_v45 = vmul.f32 %v953_v39, %v1743_v0 }
  0x51   : > { %s1862_s4 = sld [smem:[#allocation2 + %s1834_s27]]  ;;  %v735_v50 = vstv %s1840_s15  ;;  %v962_v53 = vmul.f32 %v1876_v42, %v961_v43 }
  0x52   : > { %934 = vrot.lane.b32.xlu1 %v932_v26, %s2696_s0  ;;  %s1868_s14 = sld [smem:[#allocation2 + %s1778_s28]]  ;;  %v1049_v44 = vstv %s1048_s30  ;;  %s1888_s28 = sadd.s32 10, %s1723_s7  ;;  %v736_v62 = vmul.f32 %v735_v50, %v1743_v0 }
  0x53   : > { %450 = vrot.lane.b32.xlu0 %v448_v28, %s2696_s0  ;;  %s1873_s11 = sld [smem:[#allocation2 + %s1766_s25]]  ;;  %v1894_v47 = vmul.f32 %v1865_v40, %v1049_v44  ;;  %v807_v48 = vstv %s1846_s5  ;;  %s1981_s5 = sadd.s32 13, %s1723_s7  ;;  %v2052_v44 = vld [vmem:[%s1733_s26 + $0xd0] sm:$0xff] }
  0x54   : > { %s1880_s1 = sld [smem:[#allocation2 + %s1727_s17]]  ;;  %v1911_v51 = vmul.f32 %v1891_v46, %v807_v48  ;;  %v975_v57 = vstv %s1850_s22 }
  0x55   : > { %s1883_s24 = sld [smem:[#allocation2 + %s1766_s25]]  ;;  %v825_v54 = vstv %s1855_s3  ;;  %v976_v8 = vmul.f32 %v1921_v56, %v975_v57 }
  0x56   : > { %720 = vrot.lane.b32.xlu1 %v718_v31, %s2696_s0  ;;  %s1901_s19 = sld [smem:[#allocation2 + %s1766_s25]]  ;;  %v587_v55 = vstv %s1858_s21  ;;  %v1928_v58 = vmul.f32 %v1795_v17, %v825_v54 }
  0x57   : > { %458 = vrot.lane.b32.xlu0 %v456_v33, %s2696_s0  ;;  %s1904_s30 = sld [smem:[#allocation2 + %s1723_s7]]  ;;  %v1931_v59 = vmul.f32 %v1898_v49, %v587_v55  ;;  %v491_v3 = vstv %s1862_s4  ;;  %v2069_v55 = vld [vmem:[%s1733_s26 + $0x51] sm:$0xff] }
  0x58   : > { %s1925_s25 = sld [smem:[#allocation2 + %s1888_s28]]  ;;  %v1071_v60 = vstv %s1868_s14  ;;  %v492_v16 = vmul.f32 %v491_v3, %v1743_v0 }
  0x59   : > { %v1940_v63 = vmul.f32 %v1914_v52, %v1071_v60  ;;  %v609_v1 = vstv %s1873_s11  ;;  %s1945_s15 = sld [smem:[#allocation2 + %s1727_s17]] }
  0x5a   : > { %472 = vrot.lane.b32.xlu1 %v470_v36, %s2696_s0  ;;  %v1948_v4 = vmul.f32 %v1914_v52, %v609_v1  ;;  %v753_v13 = vstv %s1880_s1  ;;  %s1962_s11 = sld [smem:[#allocation2 + %s1740_s29]]  ;;  %s2009_s1 = sadd.s32 16, %s1723_s7 }
  0x5b   : > { %942 = vrot.lane.b32.xlu0 %v940_v38, %s2696_s0  ;;  %s1908_s0 = sld [smem:[#allocation2 + %s1727_s17]]  ;;  %v1093_v6 = vstv %s1883_s24  ;;  %v754_v21 = vmul.f32 %v1921_v56, %v753_v13 }
  0x5c   : > { %v1957_v11 = vmul.f32 %v1935_v61, %v1093_v6  ;;  %v843_v12 = vstv %s1901_s19  ;;  %s178_s24 = sld [smem:[#allocation2 + %s1784_s20]] }
  0x5d   : > { %v1965_v15 = vmul.f32 %v1954_v10, %v843_v12  ;;  %v174_v18 = vstv %s1904_s30  ;;  %s1973_s4 = sld [smem:[#allocation2 + %s1888_s28]] }
  0x5e   : > { %480 = vrot.lane.b32.xlu1 %v478_v41, %s2719_s9  ;;  %s1978_s17 = sld [smem:[#allocation2 + %s1740_s29]]  ;;  %v513_v22 = vstv %s1925_s25  ;;  %v175_v23 = vmul.f32 %v174_v18, %v1754_v2 }
  0x5f   : > { %956 = vrot.lane.b32.xlu0 %v954_v45, %s2719_s9  ;;  %s1985_s22 = sld [smem:[#allocation2 + %s1801_s8]]  ;;  %v983_v26 = vstv %s1945_s15  ;;  %v514_v2 = vmul.f32 %v1762_v5, %v513_v22 }
  0x60   : > { %s1988_s3 = sld [smem:[#allocation2 + %s1834_s27]]  ;;  %v521_v31 = vstv %s1962_s11  ;;  %v984_v32 = vmul.f32 %v1997_v25, %v983_v26  ;;  %s2037_s11 = sadd.s32 22, %s1723_s7 }
  0x61   : > { %v499_v19 = vstv %s1908_s0  ;;  %s1994_s0 = sld [smem:[#allocation2 + %s1888_s28]]  ;;  %v522_v38 = vmul.f32 %v2016_v30, %v521_v31 }
  0x62   : > { %964 = vrot.lane.b32.xlu1 %v962_v53, %s2719_s9  ;;  %v500_v24 = vmul.f32 %v1876_v42, %v499_v19  ;;  %s2001_s21 = sld [smem:[#allocation2 + %s1740_s29]]  ;;  %v181_v27 = vstv %s178_s24  ;;  %s2020_s29 = sadd.s32 19, %s1723_s7 }
  0x63   : > { %738 = vrot.lane.b32.xlu0 %v736_v62, %s2719_s9  ;;  %s2004_s14 = sld [smem:[#allocation2 + %s1981_s5]]  ;;  %v182_v28 = vmul.f32 %v1821_v29, %v181_v27  ;;  %v997_v35 = vstv %s1973_s4 }
  0x64   : > { %s2013_s19 = sld [smem:[#allocation2 + %s1981_s5]]  ;;  %v1005_v45 = vstv %s1978_s17  ;;  %v998_v50 = vmul.f32 %v1788_v14, %v997_v35 }
  0x65   : > { %s2023_s30 = sld [smem:[#allocation2 + %s2009_s1]]  ;;  %v2027_v33 = vadd.f32 %v182_v28, %v175_v23  ;;  %v204_v36 = vstv %s1985_s22  ;;  %v1006_v62 = vmul.f32 %v2052_v44, %v1005_v45 }
  0x66   : > { %978 = vrot.lane.b32.xlu1 %v976_v8, %s2719_s9  ;;  %s2030_s25 = sld [smem:[#allocation2 + %s2020_s29]]  ;;  %v225_v37 = vstv %s1988_s3  ;;  %v2044_v39 = vmul.f32 %v1837_v34, %v204_v36 }
  0x67   : > { %494 = vrot.lane.b32.xlu0 %v492_v16, %s2719_s9  ;;  %s2034_s15 = sld [smem:[#allocation2 + %s1981_s5]]  ;;  %v2047_v41 = vmul.f32 %v1876_v42, %v225_v37  ;;  %v248_v43 = vstv %s1994_s0 }
  0x68   : > { %s335_s24 = sld [smem:[#allocation2 + %s2037_s11]]  ;;  %v2059_v48 = vmul.f32 %v2016_v30, %v248_v43  ;;  %v771_v54 = vstv %s2001_s21 }
  0x69   : > { %s2056_s4 = sld [smem:[#allocation2 + %s1759_s18]]  ;;  %v1019_v6 = vstv %s2004_s14  ;;  %v772_v12 = vmul.f32 %v1788_v14, %v771_v54 }
  0x6a   : > { %756 = vrot.lane.b32.xlu1 %v754_v21, %s2719_s9  ;;  %v271_v53 = vstv %s2013_s19  ;;  %s2066_s22 = sld [smem:[#allocation2 + %s1759_s18]]  ;;  %v1020_v19 = vmul.f32 %v1775_v9, %v1019_v6 }
  0x6b   : > { %502 = vrot.lane.b32.xlu0 %v500_v24, %s2719_s9  ;;  %v2072_v57 = vmul.f32 %v2052_v44, %v271_v53  ;;  %v292_v60 = vstv %s2023_s30  ;;  %s2078_s17 = sld [smem:[#allocation2 + %s2009_s1]] }
  0x6c   : > { %v2081_v1 = vmul.f32 %v2069_v55, %v292_v60  ;;  %v315_v3 = vstv %s2030_s25  ;;  %s706_s3 = sld [smem:[#allocation2 + %s1723_s7]]  ;;  %s2146_s25 = sadd.s32 25, %s1723_s7 }
  0x6d   : > { %v2086_v8 = vmul.f32 %v1898_v49, %v315_v3  ;;  %s711_s0 = sld [smem:[#allocation2 + %s1784_s20]]  ;;  %v535_v16 = vstv %s2034_s15 }
  0x6e   : > { %516 = vrot.lane.b32.xlu1 %v514_v2, %s2719_s9  ;;  %v338_v13 = vstv %s335_s24  ;;  %s2094_s21 = sld [smem:[#allocation2 + %s1759_s18]]  ;;  %v536_v22 = vmul.f32 %v1788_v14, %v535_v16 }
  0x6f   : > { %986 = vrot.lane.b32.xlu0 %v984_v32, %s2719_s9  ;;  %v2097_v18 = vmul.f32 %v1914_v52, %v338_v13  ;;  %v789_v21 = vstv %s2056_s4  ;;  %s2103_s14 = sld [smem:[#allocation2 + %s1751_s6]] }
  0x70   : > { %s729_s20 = sld [smem:[#allocation2 + %s1801_s8]]  ;;  %v543_v23 = vstv %s2066_s22  ;;  %v790_v27 = vmul.f32 %v1775_v9, %v789_v21 }
  0x71   : > { %s2110_s18 = sld [smem:[#allocation2 + %s2009_s1]]  ;;  %v557_v31 = vstv %s2078_s17  ;;  %v544_v32 = vmul.f32 %v2052_v44, %v543_v23  ;;  %s362_s17 = sadd.s32 26, %s1723_s7 }
  0x72   : > { %524 = vrot.lane.b32.xlu1 %v522_v38, %s2719_s9  ;;  %v708_v24 = vstv %s706_s3  ;;  %s747_s6 = sld [smem:[#allocation2 + %s1834_s27]]  ;;  %v558_v37 = vmul.f32 %v1775_v9, %v557_v31  ;;  %s378_s3 = sadd.s32 28, %s1723_s7 }
  0x73   : > { %1000 = vrot.lane.b32.xlu0 %v998_v50, %s2719_s9  ;;  %v713_v26 = vstv %s711_s0  ;;  %v709_v2 = vmul.f32 %v1771_v7, %v708_v24  ;;  %s765_s8 = sld [smem:[#allocation2 + %s1888_s28]] }
  0x74   : > { %v714_v28 = vmul.f32 %v1837_v34, %v713_v26  ;;  %v1027_v36 = vstv %s2094_s21  ;;  %s783_s27 = sld [smem:[#allocation2 + %s1981_s5]] }
  0x75   : > { %v565_v43 = vstv %s2103_s14  ;;  %s2129_s19 = sld [smem:[#allocation2 + %s2020_s29]]  ;;  %v1028_v50 = vmul.f32 %v2069_v55, %v1027_v36 }
  0x76   : > { %1008 = vrot.lane.b32.xlu1 %v1006_v62, %s2719_s9  ;;  %v2120_v35 = vadd.f32 %v714_v28, %v709_v2  ;;  %v731_v38 = vstv %s729_s20  ;;  %s801_s28 = sld [smem:[#allocation2 + %s2009_s1]]  ;;  %v566_v62 = vmul.f32 %v2069_v55, %v565_v43 }
  0x77   : > { %774 = vrot.lane.b32.xlu0 %v772_v12, %s2719_s9  ;;  %v2132_v45 = vmul.f32 %v1876_v42, %v731_v38  ;;  %v1041_v54 = vstv %s2110_s18  ;;  %s577_s30 = sld [smem:[#allocation2 + %s2020_s29]] }
  0x78   : > { %v749_v53 = vstv %s747_s6  ;;  %s819_s5 = sld [smem:[#allocation2 + %s2020_s29]]  ;;  %v1042_v12 = vmul.f32 %v1891_v46, %v1041_v54 }
  0x79   : > { %v2140_v60 = vmul.f32 %v1997_v25, %v749_v53  ;;  %v767_v3 = vstv %s765_s8  ;;  %s837_s1 = sld [smem:[#allocation2 + %s2037_s11]] }
  0x7a   : > { %1022 = vrot.lane.b32.xlu1 %v1020_v19, %s2719_s9  ;;  %v2149_v6 = vmul.f32 %v2052_v44, %v767_v3  ;;  %v785_v13 = vstv %s783_s27  ;;  %s357_s15 = sld [smem:[#allocation2 + %s2146_s25]]  ;;  %s385_s27 = sadd.s32 29, %s1723_s7 }
  0x7b   : > { %538 = vrot.lane.b32.xlu0 %v536_v22, %s2719_s9  ;;  %v2156_v16 = vmul.f32 %v2069_v55, %v785_v13  ;;  %v1063_v21 = vstv %s2129_s19  ;;  %s599_s29 = sld [smem:[#allocation2 + %s2037_s11]] }
  0x7c   : > { %v803_v19 = vstv %s801_s28  ;;  %v1064_v2 = vmul.f32 %v1795_v17, %v1063_v21  ;;  %s1083_s24 = sld [smem:[#allocation2 + %s2037_s11]]  ;;  %s2237_s28 = sadd.s32 31, %s1723_s7 }
  0x7d   : > { %v2162_v22 = vmul.f32 %v1865_v40, %v803_v19  ;;  %v579_v24 = vstv %s577_s30  ;;  %s855_s4 = sld [smem:[#allocation2 + %s2146_s25]] }
  0x7e   : > { %792 = vrot.lane.b32.xlu1 %v790_v27, %s2719_s9  ;;  %v821_v23 = vstv %s819_s5  ;;  %s1105_s22 = sld [smem:[#allocation2 + %s2146_s25]] }
  0x7f   : > { %546 = vrot.lane.b32.xlu0 %v544_v32, %s2719_s9  ;;  %v2166_v26 = vmul.f32 %v1914_v52, %v821_v23  ;;  %v839_v27 = vstv %s837_s1  ;;  %v580_v52 = vmul.f32 %v1804_v20, %v579_v24  ;;  %s621_s11 = sld [smem:[#allocation2 + %s2146_s25]] }
  0x80   : > { %v2172_v28 = vmul.f32 %v1935_v61, %v839_v27  ;;  %v359_v40 = vstv %s357_s15  ;;  %s379_s0 = sld [smem:[#allocation2 + %s378_s3]]  ;;  %s2261_s15 = sadd.s32 3, %s1723_s7 }
  0x81   : > { %v2178_v31 = vmul.f32 %v1935_v61, %v359_v40  ;;  %s630_s21 = sld [smem:[#allocation2 + %s362_s17]] }
  0x82   : > { %560 = vrot.lane.b32.xlu1 %v558_v37, %s2719_s9  ;;  %v1085_v37 = vstv %s1083_s24  ;;  %s2203_s14 = sld [smem:[#allocation2 + %s362_s17]] }
  0x83   : > { %1030 = vrot.lane.b32.xlu0 %v1028_v50, %s2719_s9  ;;  %v857_v36 = vstv %s855_s4  ;;  %s873_s20 = sld [smem:[#allocation2 + %s378_s3]]  ;;  %v2214_v50 = vld [vmem:[%s1733_s26 + $0x70] sm:$0xff] }
  0x84   : > { %v1107_v43 = vstv %s1105_s22  ;;  %s2210_s18 = sld [smem:[#allocation2 + %s362_s17]] }
  0x85   : > { %v623_v53 = vstv %s621_s11  ;;  %s2216_s6 = sld [smem:[#allocation2 + %s362_s17]]  ;;  %s2286_s17 = sadd.s32 6, %s1723_s7 }
  0x86   : > { %568 = vrot.lane.b32.xlu1 %v566_v62, %s2719_s9  ;;  %s2224_s8 = sld [smem:[#allocation2 + %s378_s3]]  ;;  %v624_v3 = vmul.f32 %v1954_v10, %v623_v53  ;;  %s2291_s11 = sadd.s32 32, %s1723_s7 }
  0x87   : > { %1044 = vrot.lane.b32.xlu0 %v1042_v12, %s2719_s9  ;;  %v631_v62 = vstv %s630_s21  ;;  %v2231_v12 = vld [vmem:[%s1733_s26 + $0xf0] sm:$0xff]  ;;  %s2234_s19 = sld [smem:[#allocation2 + %s378_s3]] }
  0x88   : > { %2721 = vst [vmem:[#allocation17_spill] sm:$0xff] %v2231_v12  ;;  %v364_v19 = vstv %s2203_s14  ;;  %s402_s30 = sld [smem:[#allocation2 + %s2237_s28]] }
  0x89   : > { %v875_v13 = vstv %s873_s20  ;;  %s2246_s5 = sld [smem:[#allocation2 + %s385_s27]]  ;;  %v365_v23 = vmul.f32 %v1954_v10, %v364_v19 }
  0x8a   : > { %1052 = vrot.lane.b32.xlu1 %v1894_v47, %s2719_s9  ;;  %v601_v47 = vstv %s599_s29  ;;  %v1115_v21 = vstv %s2210_s18  ;;  %s2251_s25 = sld [smem:[#allocation2 + %s385_s27]] }
  0x8b   : > { %810 = vrot.lane.b32.xlu0 %v1911_v51, %s2719_s9  ;;  %v602_v32 = vmul.f32 %v1795_v17, %v601_v47  ;;  %v2192_v51 = vld [vmem:[%s1733_s26 + $0xe1] sm:$0xff]  ;;  %v861_v24 = vstv %s2216_s6  ;;  %s891_s1 = sld [smem:[#allocation2 + %s2237_s28]]  ;;  %v2268_v47 = vld [vmem:[%s1733_s26 + $0x30] sm:$0xff] }
  0x8c   : > { %v2197_v38 = vmul.f32 %v2192_v51, %v857_v36  ;;  %v1116_v27 = vmul.f32 %v2192_v51, %v1115_v21  ;;  %s2263_s29 = sld [smem:[#allocation2 + %s385_s27]] }
  0x8d   : > { %s2271_s24 = sld [smem:[#allocation2 + %s385_s27]] }
  0x8e   : > { %1066 = vrot.lane.b32.xlu1 %v1064_v2, %s2719_s9  ;;  %v1129_v2 = vstv %s2224_s8  ;;  %s2279_s4 = sld [smem:[#allocation2 + %s2261_s15]]  ;;  %s2329_s8 = sadd.s32 9, %s1723_s7 }
  0x8f   : > { %582 = vrot.lane.b32.xlu0 %v580_v52, %s2719_s9  ;;  %v405_v52 = vstv %s402_s30  ;;  %s2283_s22 = sld [smem:[#allocation2 + %s2237_s28]]  ;;  %s2356_s30 = sadd.s32 12, %s1723_s7 }
  0x90   : > { %v2274_v36 = vmul.f32 %v2231_v12, %v405_v52  ;;  %s2298_s3 = sld [smem:[#allocation2 + %s2237_s28]] }
  0x91   : > { %v893_v53 = vstv %s891_s1  ;;  %s2311_s14 = sld [smem:[#allocation2 + %s2291_s11]] }
  0x92   : > { %828 = vrot.lane.b32.xlu1 %v1928_v58, %s2719_s9  ;;  %v1086_v58 = vmul.f32 %v1954_v10, %v1085_v37  ;;  %2724 = vst [vmem:[#allocation20_spill] sm:$0xff] %v2274_v36  ;;  %s2314_s20 = sld [smem:[#allocation2 + %s2286_s17]] }
  0x93   : > { %590 = vrot.lane.b32.xlu0 %v1931_v59, %s2719_s9  ;;  %v2208_v59 = vld [vmem:[%s1733_s26 + $0xa1] sm:$0xff]  ;;  %s2320_s18 = sld [smem:[#allocation2 + %s2291_s11]] }
  0x94   : > { %v1108_v54 = vmul.f32 %v2208_v59, %v1107_v43  ;;  %v862_v40 = vmul.f32 %v2208_v59, %v861_v24  ;;  %v197_v21 = vstv %s2279_s4  ;;  %v2332_v24 = vld [vmem:[%s1733_s26 + $0x31] sm:$0xff]  ;;  %s2336_s27 = sld [smem:[#allocation2 + %s2291_s11]]  ;;  %s2393_s4 = sadd.s32 15, %s1723_s7 }
  0x95   : > { %s2351_s28 = sld [smem:[#allocation2 + %s2329_s8]] }
  0x96   : > { %604 = vrot.lane.b32.xlu1 %v602_v32, %s2719_s9  ;;  %v645_v32 = vstv %s2234_s19  ;;  %s2345_s19 = sld [smem:[#allocation2 + %s2291_s11]] }
  0x97   : > { %1074 = vrot.lane.b32.xlu0 %v1940_v63, %s2719_s9  ;;  %v382_v63 = vstv %s379_s0  ;;  %v646_v43 = vmul.f32 %v2268_v47, %v645_v32  ;;  %s2301_s0 = sadd.s32 34, %s1723_s7  ;;  %v198_v32 = vmul.f32 %v1771_v7, %v197_v21  ;;  %s2404_s11 = sld [smem:[#allocation2 + %s1723_s7]] }
  0x98   : > { %s424_s21 = sld [smem:[#allocation2 + %s2301_s0]] }
  0x99   : > { %s2326_s6 = sld [smem:[#allocation2 + %s2301_s0]] }
  0x9a   : > { %612 = vrot.lane.b32.xlu1 %v1948_v4, %s2719_s9  ;;  %v2219_v4 = vmul.f32 %v2214_v50, %v382_v63  ;;  %v2294_v63 = vld [vmem:[%s1733_s26 + $0x71] sm:$0xff]  ;;  %s2377_s1 = sld [smem:[#allocation2 + %s2301_s0]] }
  0x9b   : > { %1088 = vrot.lane.b32.xlu0 %v1086_v58, %s2719_s9  ;;  %v653_v58 = vstv %s2246_s5  ;;  %s2361_s5 = sld [smem:[#allocation2 + %s2301_s0]] }
  0x9c   : > { %2720 = vst [vmem:[#allocation16_spill] sm:$0xff] %v2219_v4 }
  0x9e   : > { %1096 = vrot.lane.b32.xlu1 %v1957_v11, %s2719_s9  ;;  %v2240_v11 = vmul.f32 %v2231_v12, %v875_v13  ;;  %v1137_v13 = vstv %s2263_s29  ;;  %v426_v52 = vstv %s424_s21  ;;  %s2383_s29 = sld [smem:[#allocation2 + %s2356_s30]] }
  0x9f   : > { %846 = vrot.lane.b32.xlu0 %v1965_v15, %s2719_s9  ;;  %v632_v15 = vmul.f32 %v1935_v61, %v631_v62  ;;  %v2257_v61 = vld [vmem:[%s1733_s26 + $0xb0] sm:$0xff]  ;;  %v2304_v62 = vmul.f32 %v2294_v63, %v893_v53  ;;  %v911_v21 = vstv %s2326_s6  ;;  %s2414_s21 = sld [smem:[#allocation2 + %s2261_s15]] }
  0xa0   : > { %2722 = vst [vmem:[#allocation18_spill] sm:$0xff] %v2240_v11  ;;  %2723 = vst [vmem:[#allocation19_spill] sm:$0xff] %v2257_v61  ;;  %v1130_v37 = vmul.f32 %v2257_v61, %v1129_v2  ;;  %s2442_s6 = sld [smem:[#allocation2 + %s2261_s15]] }
  0xa1   : > { %2725 = vst [vmem:[#allocation21_spill] sm:$0xff] %v2304_v62 }
  0xa2   : > { %1110 = vrot.lane.b32.xlu1 %v1108_v54, %s2719_s9  ;;  %v387_v54 = vstv %s2251_s25  ;;  %s2369_s25 = sadd.s32 35, %s1723_s7 }
  0xa3   : > { %626 = vrot.lane.b32.xlu0 %v624_v3, %s2719_s9  ;;  %v654_v3 = vmul.f32 %v2214_v50, %v653_v58  ;;  %v388_v19 = vmul.f32 %v2268_v47, %v387_v54  ;;  %v2348_v58 = vmul.f32 %v2294_v63, %v426_v52  ;;  %v675_v54 = vstv %s2311_s14  ;;  %s2411_s0 = sld [smem:[#allocation2 + %s2369_s25]] }
  0xa4   : > { %v676_v52 = vmul.f32 %v2231_v12, %v675_v54  ;;  %v897_v54 = vstv %s2345_s19  ;;  %s2422_s14 = sld [smem:[#allocation2 + %s2393_s4]] }
  0xa5   : > { %2726 = vst [vmem:[#allocation22_spill] sm:$0xff] %v2348_v58  ;;  %v264_v58 = vstv %s2383_s29  ;;  %v464_v4 = vstv %s2414_s21  ;;  %s2514_s29 = sadd.s32 24, %s1723_s7  ;;  %s1034_s21 = sld [smem:[#allocation2 + %s2393_s4]] }
  0xa6   : > { %634 = vrot.lane.b32.xlu1 %v632_v15, %s2719_s9  ;;  %v879_v15 = vstv %s2271_s24  ;;  %s2388_s24 = sld [smem:[#allocation2 + %s1723_s7]] }
  0xa7   : > { %367 = vrot.lane.b32.xlu0 %v365_v23, %s2719_s9  ;;  %v1138_v23 = vmul.f32 %v2231_v12, %v1137_v13 }
  0xa9   : > { %v431_v11 = vstv %s2411_s0  ;;  %s550_s0 = sld [smem:[#allocation2 + %s2393_s4]] }
  0xaa   : > { %1118 = vrot.lane.b32.xlu1 %v1116_v27, %s2719_s9  ;;  %v1151_v27 = vstv %s2283_s22  ;;  %s2397_s22 = sld [smem:[#allocation2 + %s2369_s25]] }
  0xab   : > { %864 = vrot.lane.b32.xlu0 %v862_v40, %s2719_s9  ;;  %v880_v40 = vmul.f32 %v2257_v61, %v879_v15  ;;  %v1152_v53 = vmul.f32 %v2332_v24, %v1151_v27  ;;  %v2372_v15 = vld [vmem:[%s1733_s26 + $0xf1] sm:$0xff] }
  0xac   : > { %v2380_v27 = vmul.f32 %v2372_v15, %v911_v21 }
  0xae   : > { %1132 = vrot.lane.b32.xlu1 %v1130_v37, %s2719_s9  ;;  %v667_v37 = vstv %s2298_s3  ;;  %2727 = vst [vmem:[#allocation23_spill] sm:$0xff] %v2380_v27  ;;  %s2407_s3 = sld [smem:[#allocation2 + %s2261_s15]] }
  0xaf   : > { %648 = vrot.lane.b32.xlu0 %v646_v43, %s2719_s9  ;;  %s2460_s15 = sld [smem:[#allocation2 + %s2286_s17]] }
  0xb2   : > { %656 = vrot.lane.b32.xlu1 %v654_v3, %s2719_s9  ;;  %v219_v3 = vstv %s2314_s20  ;;  %s2429_s20 = sld [smem:[#allocation2 + %s2369_s25]] }
  0xb3   : > { %390 = vrot.lane.b32.xlu0 %v388_v19, %s2719_s9  ;;  %v668_v19 = vmul.f32 %v2257_v61, %v667_v37 }
  0xb4   : > { %v2339_v2 = vpop.permute.xlu1 %233 }
  0xb5   : > { %v190_v43 = vpop.permute.xlu0 %189 }
  0xb6   : > { %1140 = vrot.lane.b32.xlu1 %v1138_v23, %s2719_s9  ;;  %v192_v7 = vadd.f32 %v190_v43, %v2027_v33  ;;  %v410_v23 = vstv %s2320_s18  ;;  %v1159_v43 = vstv %s2336_s27  ;;  %s2436_s18 = sld [smem:[#allocation2 + %s2369_s25]]  ;;  %s2451_s27 = sadd.s32 18, %s1723_s7 }
  0xb7   : > { %882 = vrot.lane.b32.xlu0 %v880_v40, %s2719_s9  ;;  %v1160_v21 = vmul.f32 %v2294_v63, %v1159_v43  ;;  %s2467_s19 = sld [smem:[#allocation2 + %s2451_s27]]  ;;  %s2492_s25 = sadd.s32 21, %s1723_s7 }
  0xb8   : > { %v2365_v13 = vpop.permute.xlu1 %256  ;;  %v199_v33 = vadd.f32 %v198_v32, %v192_v7  ;;  %v220_v32 = vmul.f32 %v219_v3, %v1743_v0  ;;  %v411_v7 = vmul.f32 %v2257_v61, %v410_v23  ;;  %v241_v3 = vstv %s2351_s28  ;;  %v2425_v23 = vld [vmem:[%s1733_s26 + $0xb1] sm:$0xff]  ;;  %s2481_s28 = sld [smem:[#allocation2 + %s2286_s17]] }
  0xb9   : > { %v213_v40 = vpop.permute.xlu0 %212 }
  0xba   : > { %1154 = vrot.lane.b32.xlu1 %v1152_v53, %s2719_s9  ;;  %v206_v37 = vadd.f32 %v2044_v39, %v199_v33 }
  0xbb   : > { %670 = vrot.lane.b32.xlu0 %v668_v19, %s2719_s9 }
  0xbc   : > { %v2400_v53 = vpop.permute.xlu1 %300  ;;  %v215_v39 = vadd.f32 %v213_v40, %v206_v37  ;;  %v1173_v40 = vstv %s2361_s5  ;;  %v915_v12 = vstv %s2436_s18  ;;  %s2489_s5 = sld [smem:[#allocation2 + %s2286_s17]] }
  0xbd   : > { %v2417_v19 = vpop.permute.xlu0 %279  ;;  %s2503_s17 = sld [smem:[#allocation2 + %s2492_s25]] }
  0xbe   : > { %678 = vrot.lane.b32.xlu1 %v676_v52, %s2719_s9  ;;  %v221_v33 = vadd.f32 %v220_v32, %v215_v39  ;;  %v898_v52 = vmul.f32 %v2332_v24, %v897_v54  ;;  %v242_v32 = vmul.f32 %v1762_v5, %v241_v3  ;;  %v689_v39 = vstv %s2377_s1  ;;  %s2511_s1 = sld [smem:[#allocation2 + %s2329_s8]] }
  0xbf   : > { %413 = vrot.lane.b32.xlu0 %v411_v7, %s2719_s9  ;;  %v442_v7 = vstv %s2388_s24  ;;  %v1174_v54 = vmul.f32 %v2425_v23, %v1173_v40  ;;  %v926_v3 = vstv %s2404_s11  ;;  %v690_v62 = vmul.f32 %v2332_v24, %v689_v39  ;;  %s2519_s24 = sld [smem:[#allocation2 + %s2329_s8]] }
  0xc0   : > { %v2432_v37 = vpop.permute.xlu1 %346  ;;  %v227_v43 = vadd.f32 %v2047_v41, %v221_v33  ;;  %v697_v41 = vstv %s2397_s22  ;;  %v443_v40 = vmul.f32 %v1821_v29, %v442_v7  ;;  %v286_v39 = vstv %s2422_s14  ;;  %s2527_s22 = sld [smem:[#allocation2 + %s2329_s8]] }
  0xc1   : > { %v2444_v27 = vpop.permute.xlu0 %323  ;;  %v1181_v29 = vstv %s2429_s20  ;;  %v927_v7 = vmul.f32 %v1837_v34, %v926_v3  ;;  %s2534_s11 = sld [smem:[#allocation2 + %s2356_s30]] }
  0xc2   : > { %1162 = vrot.lane.b32.xlu1 %v1160_v21, %s2719_s9  ;;  %v236_v5 = vadd.f32 %v2339_v2, %v227_v43  ;;  %v726_v21 = vstv %s2407_s3  ;;  %v265_v2 = vmul.f32 %v1788_v14, %v264_v58  ;;  %v698_v43 = vmul.f32 %v2294_v63, %v697_v41  ;;  %s2545_s8 = sld [smem:[#allocation2 + %s2356_s30]] }
  0xc3   : > { %900 = vrot.lane.b32.xlu0 %v898_v52, %s2719_s9  ;;  %s2549_s3 = sld [smem:[#allocation2 + %s2356_s30]] }
  0xc4   : > { %v935_v33 = vpop.permute.xlu1 %934  ;;  %v243_v36 = vadd.f32 %v242_v32, %v236_v5  ;;  %v727_v32 = vmul.f32 %v726_v21, %v1743_v0  ;;  %v432_v5 = vmul.f32 %v2332_v24, %v431_v11  ;;  %s796_s30 = sld [smem:[#allocation2 + %s2393_s4]] }
  0xc5   : > { %v451_v52 = vpop.permute.xlu0 %450  ;;  %s572_s14 = sld [smem:[#allocation2 + %s2451_s27]] }
  0xc6   : > { %1176 = vrot.lane.b32.xlu1 %v1174_v54, %s2719_s9  ;;  %v250_v61 = vadd.f32 %v2059_v48, %v243_v36  ;;  %v465_v54 = vmul.f32 %v1837_v34, %v464_v4  ;;  %v453_v48 = vadd.f32 %v451_v52, %v443_v40  ;;  %v948_v36 = vstv %s2442_s6  ;;  %s2572_s20 = sld [smem:[#allocation2 + %s2451_s27]] }
  0xc7   : > { %692 = vrot.lane.b32.xlu0 %v690_v62, %s2719_s9  ;;  %v1182_v62 = vmul.f32 %v2372_v15, %v1181_v29  ;;  %v949_v3 = vmul.f32 %v1876_v42, %v948_v36  ;;  %v486_v40 = vstv %s2460_s15  ;;  %v308_v29 = vstv %s2467_s19  ;;  %s814_s4 = sld [smem:[#allocation2 + %s2451_s27]] }
  0xc8   : > { %v721_v58 = vpop.permute.xlu1 %720  ;;  %v259_v41 = vadd.f32 %v2365_v13, %v250_v61  ;;  %v287_v61 = vmul.f32 %v1775_v9, %v286_v39  ;;  %v916_v13 = vmul.f32 %v2425_v23, %v915_v12  ;;  %s832_s18 = sld [smem:[#allocation2 + %s2492_s25]] }
  0xc9   : > { %v723_v0 = vadd.f32 %v721_v58, %v2120_v35  ;;  %v459_v21 = vpop.permute.xlu0 %458  ;;  %s594_s6 = sld [smem:[#allocation2 + %s2492_s25]] }
  0xca   : > { %700 = vrot.lane.b32.xlu1 %v698_v43, %s2719_s9  ;;  %v266_v11 = vadd.f32 %v265_v2, %v259_v41  ;;  %v461_v4 = vadd.f32 %v459_v21, %v453_v48  ;;  %v937_v2 = vadd.f32 %v935_v33, %v927_v7  ;;  %v970_v33 = vstv %s2481_s28  ;;  %s1078_s27 = sld [smem:[#allocation2 + %s2492_s25]] }
  0xcb   : > { %v728_v34 = vadd.f32 %v727_v32, %v723_v0  ;;  %434 = vrot.lane.b32.xlu0 %v432_v5, %s2719_s9  ;;  %v487_v5 = vmul.f32 %v1876_v42, %v486_v40  ;;  %v744_v48 = vstv %s2489_s5  ;;  %v971_v36 = vmul.f32 %v1997_v25, %v970_v33  ;;  %s616_s15 = sld [smem:[#allocation2 + %s2514_s29]]  ;;  %s371_s5 = sadd.s32 27, %s1723_s7 }
  0xcc   : > { %v473_v35 = vpop.permute.xlu1 %472  ;;  %v273_v52 = vadd.f32 %v2072_v57, %v266_v11  ;;  %v466_v43 = vadd.f32 %v465_v54, %v461_v4  ;;  %v331_v4 = vstv %s2503_s17  ;;  %s1100_s19 = sld [smem:[#allocation2 + %s2514_s29]] }
  0xcd   : > { %v733_v32 = vadd.f32 %v2132_v45, %v728_v34  ;;  %v943_v9 = vpop.permute.xlu0 %942  ;;  %v745_v34 = vmul.f32 %v1921_v56, %v744_v48  ;;  %v332_v40 = vmul.f32 %v1795_v17, %v331_v4  ;;  %v508_v56 = vstv %s2519_s24  ;;  %s850_s28 = sld [smem:[#allocation2 + %s2514_s29]] }
  0xce   : > { %1184 = vrot.lane.b32.xlu1 %v1182_v62, %s2719_s9  ;;  %v282_v12 = vadd.f32 %v2417_v19, %v273_v52  ;;  %v475_v39 = vadd.f32 %v473_v35, %v466_v43  ;;  %v945_v58 = vadd.f32 %v943_v9, %v937_v2  ;;  %v309_v19 = vmul.f32 %v1804_v20, %v308_v29  ;;  %s638_s25 = sld [smem:[#allocation2 + %s371_s5]] }
  0xcf   : > { %918 = vrot.lane.b32.xlu0 %v916_v13, %s2719_s9  ;;  %s2524_s9 = sld [smem:[#allocation2 + %s2514_s29]]  ;;  %s394_s29 = sadd.s32 30, %s1723_s7 }
  0xd0   : > { %v481_v57 = vpop.permute.xlu1 %480  ;;  %v288_v45 = vadd.f32 %v287_v61, %v282_v12  ;;  %v950_v54 = vadd.f32 %v949_v3, %v945_v58  ;;  %v762_v3 = vstv %s2511_s1  ;;  %s372_s17 = sld [smem:[#allocation2 + %s371_s5]] }
  0xd1   : > { %v483_v7 = vadd.f32 %v481_v57, %v475_v39  ;;  %v957_v41 = vpop.permute.xlu0 %956  ;;  %v763_v29 = vmul.f32 %v1788_v14, %v762_v3  ;;  %v992_v39 = vstv %s2527_s22  ;;  %s868_s1 = sld [smem:[#allocation2 + %s371_s5]] }
  0xd2   : > { %v294_v42 = vadd.f32 %v2081_v1, %v288_v45  ;;  %v959_v0 = vadd.f32 %v957_v41, %v950_v54  ;;  %v530_v54 = vstv %s2534_s11  ;;  %s660_s24 = sld [smem:[#allocation2 + %s394_s29]] }
  0xd3   : > { %v488_v21 = vadd.f32 %v487_v5, %v483_v7  ;;  %v993_v7 = vmul.f32 %v2052_v44, %v992_v39  ;;  %s1144_s22 = sld [smem:[#allocation2 + %s394_s29]] }
  0xd4   : > { %v965_v62 = vpop.permute.xlu1 %964  ;;  %v303_v20 = vadd.f32 %v2400_v53, %v294_v42  ;;  %s886_s11 = sld [smem:[#allocation2 + %s394_s29]] }
  0xd5   : > { %v967_v11 = vadd.f32 %v965_v62, %v959_v0  ;;  %v739_v1 = vpop.permute.xlu0 %738  ;;  %v353_v9 = vstv %s2524_s9  ;;  %s395_s9 = sld [smem:[#allocation2 + %s394_s29]] }
  0xd6   : > { %v310_v61 = vadd.f32 %v309_v19, %v303_v20  ;;  %v741_v35 = vadd.f32 %v739_v1, %v733_v32  ;;  %v1014_v20 = vstv %s2545_s8  ;;  %s417_s8 = sadd.s32 33, %s1723_s7 }
  0xd7   : > { %v972_v25 = vadd.f32 %v971_v36, %v967_v11  ;;  %s1166_s7 = sld [smem:[#allocation2 + %s417_s8]] }
  0xd8   : > { %v979_v13 = vpop.permute.xlu1 %978  ;;  %v317_v52 = vadd.f32 %v2086_v8, %v310_v61  ;;  %v746_v53 = vadd.f32 %v745_v34, %v741_v35  ;;  %v509_v8 = vmul.f32 %v2016_v30, %v508_v56  ;;  %v1015_v61 = vmul.f32 %v2069_v55, %v1014_v20 }
  0xd9   : > { %v495_v2 = vpop.permute.xlu0 %494  ;;  %v981_v19 = vadd.f32 %v979_v13, %v972_v25  ;;  %v1489_v13 = vld [vmem:[%s1733_s26 + $0x11] sm:$0xff] }
  0xda   : > { %v326_v43 = vadd.f32 %v2444_v27, %v317_v52  ;;  %v751_v32 = vadd.f32 %v2140_v60, %v746_v53  ;;  %v497_v17 = vadd.f32 %v495_v2, %v488_v21  ;;  %v354_v27 = vmul.f32 %v1954_v10, %v353_v9 }
  0xdb   : > { %v798_v2 = vstv %s796_s30  ;;  %s418_s30 = sld [smem:[#allocation2 + %s417_s8]] }
  0xdc   : > { %v757_v12 = vpop.permute.xlu1 %756  ;;  %v333_v58 = vadd.f32 %v332_v40, %v326_v43 }
  0xdd   : > { %v759_v5 = vadd.f32 %v757_v12, %v751_v32  ;;  %v503_v57 = vpop.permute.xlu0 %502  ;;  %v799_v32 = vmul.f32 %v1891_v46, %v798_v2 }
  0xde   : > { %v340_v14 = vadd.f32 %v2097_v18, %v333_v58  ;;  %v505_v33 = vadd.f32 %v503_v57, %v497_v17  ;;  %v531_v18 = vmul.f32 %v2052_v44, %v530_v54 }
  0xdf   : > { %v764_v60 = vadd.f32 %v763_v29, %v759_v5  ;;  %v552_v29 = vstv %s550_s0  ;;  %s904_s0 = sld [smem:[#allocation2 + %s417_s8]] }
  0xe0   : > { %v517_v45 = vpop.permute.xlu1 %516  ;;  %v510_v41 = vadd.f32 %v509_v8, %v505_v33  ;;  %v349_v48 = vadd.f32 %v2432_v37, %v340_v14  ;;  %v553_v17 = vmul.f32 %v2069_v55, %v552_v29  ;;  %v1036_v8 = vstv %s1034_s21  ;;  %s162_s21 = sand.u32 1, %s1583_s10  }
  0xe1   : > { %v769_v30 = vadd.f32 %v2149_v6, %v764_v60  ;;  %v987_v42 = vpop.permute.xlu0 %986  ;;  %v780_v6 = vstv %s2549_s3  ;;  %v574_v60 = vstv %s572_s14  ;;  %v1080_v29 = vstv %s1078_s27  ;;  %s682_s3 = sld [smem:[#allocation2 + %s417_s8]]  ;;  %s1301_s14 = sshll.u32 %s162_s21, 5 }
  0xe2   : > { %v519_v0 = vadd.f32 %v517_v45, %v510_v41  ;;  %v989_v36 = vadd.f32 %v987_v42, %v981_v19  ;;  %v355_v21 = vadd.f32 %v354_v27, %v349_v48  ;;  %v781_v3 = vmul.f32 %v1489_v13, %v780_v6 }
  0xe3   : > { %v575_v41 = vmul.f32 %v1898_v49, %v574_v60  ;;  %v1058_v48 = vstv %s2572_s20  ;;  %s1398_s20 = sshll.u32 %s1591_s12, 2 }
  0xe4   : > { %v525_v62 = vpop.permute.xlu1 %524  ;;  %v994_v34 = vadd.f32 %v993_v7, %v989_v36  ;;  %v2561_v4 = vadd.f32 %v2178_v31, %v355_v21 }
  0xe5   : > { %v527_v11 = vadd.f32 %v525_v62, %v519_v0  ;;  %v1001_v1 = vpop.permute.xlu0 %1000  ;;  %v1491_v62 = vld [vmem:[%s1733_s26 + $0xe0] sm:$0xff] }
  0xe6   : > { %v1003_v37 = vadd.f32 %v1001_v1, %v994_v34  ;;  %v1059_v20 = vmul.f32 %v1491_v62, %v1058_v48  ;;  %v1492_v1 = vld [vmem:[%s1733_s26 + $0xa0] sm:$0xff] }
  0xe7   : > { %v532_v35 = vadd.f32 %v531_v18, %v527_v11  ;;  %v816_v18 = vstv %s814_s4  ;;  %s1399_s4 = sshll.u32 %s1595_s13, 3 }
  0xe8   : > { %v1009_v44 = vpop.permute.xlu1 %1008  ;;  %v817_v6 = vmul.f32 %v1492_v1, %v816_v18  ;;  %v640_v18 = vstv %s638_s25  ;;  %s1611_s25 = smov [#allocation5]  }
  0xe9   : > { %v1011_v25 = vadd.f32 %v1009_v44, %v1003_v37  ;;  %v775_v40 = vpop.permute.xlu0 %774  ;;  %v834_v44 = vstv %s832_s18  ;;  %s1203_s18 = sadd.s32 %s1399_s4, %s1398_s20 }
  0xea   : > { %v777_v52 = vadd.f32 %v775_v40, %v769_v30  ;;  %v835_v40 = vmul.f32 %v1954_v10, %v834_v44  ;;  %v2728_v44 = vld [vmem:[#allocation17_spill] sm:$0xff] }
  0xeb   : > { %v1016_v53 = vadd.f32 %v1015_v61, %v1011_v25 }
  0xec   : > { %v1023_v31 = vpop.permute.xlu1 %1022  ;;  %v782_v56 = vadd.f32 %v781_v3, %v777_v52  ;;  %v596_v3 = vstv %s594_s6  ;;  %s164_s6 = scalar_lea.vmem [#allocation5], %s1301_s14 }
  0xed   : > { %v539_v43 = vpop.permute.xlu0 %538  ;;  %v1025_v46 = vadd.f32 %v1023_v31, %v1016_v53  ;;  %s1206_s27 = sshll.u32 %s164_s6, 4  ;;  %s2624_s27 = int_to_ptr.vmem [resolvable:$true] %s1206_s27 }
  0xee   : > { %v787_v9 = vadd.f32 %v2156_v16, %v782_v56  ;;  %v541_v39 = vadd.f32 %v539_v43, %v532_v35  ;;  %v1490_v16 = vld [vmem:[%s1733_s26 + $0xd1] sm:$0xff]  ;;  %v597_v56 = vmul.f32 %v1491_v62, %v596_v3 }
  0xef   : > { %v1037_v45 = vmul.f32 %v1490_v16, %v1036_v8 }
  0xf0   : > { %v793_v12 = vpop.permute.xlu1 %792 }
  0xf1   : > { %v795_v58 = vadd.f32 %v793_v12, %v787_v9  ;;  %v547_v5 = vpop.permute.xlu0 %546 }
  0xf2   : > { %v549_v27 = vadd.f32 %v547_v5, %v541_v39  ;;  %v618_v39 = vstv %s616_s15  ;;  %v1493_v5 = vld [vmem:[%s1733_s26 + $0x61] sm:$0xff]  ;;  %s1122_s26 = sld [smem:[#allocation2 + %s371_s5]]  ;;  %s1400_s15 = sshll.u32 %s1203_s18, 7 }
  0xf3   : > { %v800_v57 = vadd.f32 %v799_v32, %v795_v58  ;;  %v1081_v10 = vmul.f32 %v1493_v5, %v1080_v29  ;;  %v662_v29 = vstv %s660_s24  ;;  %s1509_s5 = scalar_lea.vmem %s2624_s27, 512 }
  0xf4   : > { %v561_v14 = vpop.permute.xlu1 %560  ;;  %v554_v33 = vadd.f32 %v553_v17, %v549_v27  ;;  %p1510_p8 = scmp.ne.s32.totalorder %s2624_s27, %s1509_s5 }
  0xf5   : > { %v805_v7 = vadd.f32 %v2162_v22, %v800_v57  ;;  %v1031_v54 = vpop.permute.xlu0 %1030 }
  0xf6   : > { %v563_v19 = vadd.f32 %v561_v14, %v554_v33  ;;  %v1033_v55 = vadd.f32 %v1031_v54, %v1025_v46  ;;  %v619_v14 = vmul.f32 %v1493_v5, %v618_v39  ;;  %v1102_v46 = vstv %s1100_s19  ;;  %v2731_v39 = vld [vmem:[#allocation18_spill] sm:$0xff]  ;;  %s2629_s19 = scalar_lea.hbm %s2689_s2, %s1400_s15  ;;  %p1511_p10 = pnand %p1510_p8, %p1681_p3 }
  0xf8   : > { %v569_v30 = vpop.permute.xlu1 %568  ;;  %v1038_v0 = vadd.f32 %v1037_v45, %v1033_v55  ;;  %v1124_v1 = vstv %s1122_s26  ;;  %p1512_p12 = pneg %p1511_p10 }
  0xf9   : > { %v571_v42 = vadd.f32 %v569_v30, %v563_v19  ;;  %v1045_v36 = vpop.permute.xlu0 %1044  ;;  %v1103_v19 = vmul.f32 %v2192_v51, %v1102_v46  ;;  %v641_v51 = vmul.f32 %v2214_v50, %v640_v18  ;;  %v420_v18 = vstv %s418_s30 }
  0xfa   : > { %v1047_v21 = vadd.f32 %v1045_v36, %v1038_v0 }
  0xfb   : > { %v576_v22 = vadd.f32 %v575_v41, %v571_v42 }
  0xfc   : > { %v1053_v11 = vpop.permute.xlu1 %1052 }
  0xfd   : > { %v1055_v34 = vadd.f32 %v1053_v11, %v1047_v21  ;;  %v811_v49 = vpop.permute.xlu0 %810 }
  0xfe   : > { %v813_v37 = vadd.f32 %v811_v49, %v805_v7  ;;  %v852_v7 = vstv %s850_s28  ;;  %s2635_s28 = scalar_lea.sflag [#allocation3], %s162_s21 }
  0xff   : > { %v1060_v61 = vadd.f32 %v1059_v20, %v1055_v34  ;;  %v853_v30 = vmul.f32 %v2208_v59, %v852_v7  ;;  %v375_v20 = vstv %s372_s17  ;;  %s1513_s17 = sshll.u32 %s1611_s25, 4  ;;  %s1514_s17 = int_to_ptr.vmem [resolvable:$false] %s1513_s17 }
 0x100   : > { %v1067_v35 = vpop.permute.xlu1 %1066  ;;  %v818_v25 = vadd.f32 %v817_v6, %v813_v37  ;;  %v376_v59 = vmul.f32 %v2268_v47, %v375_v20  ;;  %v870_v37 = vstv %s868_s1  ;;  %s1515_s26 = scalar_lea.vmem %s1514_s17, 1024  ;;  %p1516_p13 = scmp.lt.s32.totalorder %s2624_s27, %s1514_s17 }
 0x101   : > { %v583_v13 = vpop.permute.xlu0 %582  ;;  %v1069_v58 = vadd.f32 %v1067_v35, %v1060_v61  ;;  %p1517_p0 = scmp.lt.s32.totalorder %s1515_s26, %s1509_s5 }
 0x102   : > { %v823_v52 = vadd.f32 %v2166_v26, %v818_v25  ;;  %v585_v31 = vadd.f32 %v583_v13, %v576_v22  ;;  %v1125_v25 = vmul.f32 %v2728_v44, %v1124_v1  ;;  %v421_v1 = vmul.f32 %v2332_v24, %v420_v18 }
 0x103   : > { %p1518_p1 = por %p1517_p0, %p1516_p13 }
 0x104   : > { %v829_v53 = vpop.permute.xlu1 %828 }
 0x105   : > { %v831_v2 = vadd.f32 %v829_v53, %v823_v52  ;;  %v591_v43 = vpop.permute.xlu0 %590  ;;  %p1519_p2 = pnand %p1518_p1, %p1512_p12 }
 0x106   : > { %v593_v9 = vadd.f32 %v591_v43, %v585_v31 }
 0x107   : > { %v836_v32 = vadd.f32 %v835_v40, %v831_v2  ;;  %v2729_v40 = vld [vmem:[#allocation19_spill] sm:$0xff]  ;;  %v2730_v2 = vld [vmem:[#allocation16_spill] sm:$0xff] }
 0x108   : > { %v605_v12 = vpop.permute.xlu1 %604  ;;  %v598_v17 = vadd.f32 %v597_v56, %v593_v9  ;;  %v871_v52 = vmul.f32 %v2729_v40, %v870_v37  ;;  %v398_v9 = vstv %s395_s9 }
 0x109   : > { %v841_v8 = vadd.f32 %v2172_v28, %v836_v32  ;;  %v1075_v26 = vpop.permute.xlu0 %1074 }
 0x10a   : > { %v607_v57 = vadd.f32 %v605_v12, %v598_v17  ;;  %v1077_v27 = vadd.f32 %v1075_v26, %v1069_v58  ;;  %v663_v17 = vmul.f32 %v2728_v44, %v662_v29  ;;  %v399_v26 = vmul.f32 %v2729_v40, %v398_v9 }
 0x10c   : > { %v613_v60 = vpop.permute.xlu1 %612  ;;  %v1082_v16 = vadd.f32 %v1081_v10, %v1077_v27  ;;  %v1146_v10 = vstv %s1144_s22  ;;  %v888_v27 = vstv %s886_s11 }
 0x10d   : > { %v615_v33 = vadd.f32 %v613_v60, %v607_v57  ;;  %v1089_v45 = vpop.permute.xlu0 %1088  ;;  %v1147_v46 = vmul.f32 %v2294_v63, %v1146_v10 }
 0x10e   : > { %v1091_v54 = vadd.f32 %v1089_v45, %v1082_v16 }
 0x10f   : > { %v620_v55 = vadd.f32 %v619_v14, %v615_v33 }
 0x110   : > { %v1097_v41 = vpop.permute.xlu1 %1096 }
 0x111   : > { %v1099_v28 = vadd.f32 %v1097_v41, %v1091_v54  ;;  %v847_v48 = vpop.permute.xlu0 %846  ;;  %v889_v54 = vmul.f32 %v2332_v24, %v888_v27  ;;  %v2734_v24 = vld [vmem:[#allocation22_spill] sm:$0xff] }
 0x112   : > { %v849_v42 = vadd.f32 %v847_v48, %v841_v8 }
 0x113   : > { %v1104_v0 = vadd.f32 %v1103_v19, %v1099_v28  ;;  %v2732_v28 = vld [vmem:[#allocation20_spill] sm:$0xff] }
 0x114   : > { %v1111_v36 = vpop.permute.xlu1 %1110  ;;  %v854_v21 = vadd.f32 %v853_v30, %v849_v42  ;;  %v684_v42 = vstv %s682_s3 }
 0x115   : > { %v627_v62 = vpop.permute.xlu0 %626  ;;  %v1113_v61 = vadd.f32 %v1111_v36, %v1104_v0 }
 0x116   : > { %v629_v22 = vadd.f32 %v627_v62, %v620_v55  ;;  %v859_v11 = vadd.f32 %v2197_v38, %v854_v21  ;;  %v2733_v62 = vld [vmem:[#allocation21_spill] sm:$0xff] }
 0x118   : > { %v635_v34 = vpop.permute.xlu1 %634 }
 0x119   : > { %v637_v6 = vadd.f32 %v635_v34, %v629_v22  ;;  %v368_v49 = vpop.permute.xlu0 %367  ;;  %v685_v22 = vmul.f32 %v2294_v63, %v684_v42 }
 0x11a   : > { %v370_v35 = vadd.f32 %v368_v49, %v2561_v4 }
 0x11b   : > { %v642_v13 = vadd.f32 %v641_v51, %v637_v6  ;;  %v1168_v51 = vstv %s1166_s7 }
 0x11c   : > { %v1119_v3 = vpop.permute.xlu1 %1118  ;;  %v377_v38 = vadd.f32 %v376_v59, %v370_v35  ;;  %v906_v59 = vstv %s904_s0 }
 0x11d   : > { %v1121_v50 = vadd.f32 %v1119_v3, %v1113_v61  ;;  %v865_v53 = vpop.permute.xlu0 %864  ;;  %v1169_v61 = vmul.f32 %v2372_v15, %v1168_v51  ;;  %v907_v63 = vmul.f32 %v2425_v23, %v906_v59 }
 0x11e   : > { %v867_v31 = vadd.f32 %v865_v53, %v859_v11  ;;  %v384_v56 = vadd.f32 %v2730_v2, %v377_v38 }
 0x11f   : > { %v1126_v47 = vadd.f32 %v1125_v25, %v1121_v50 }
 0x120   : > { %v1133_v43 = vpop.permute.xlu1 %1132  ;;  %v872_v32 = vadd.f32 %v871_v52, %v867_v31 }
 0x121   : > { %v649_v4 = vpop.permute.xlu0 %648  ;;  %v1135_v14 = vadd.f32 %v1133_v43, %v1126_v47  ;;  %v2735_v47 = vld [vmem:[#allocation23_spill] sm:$0xff] }
 0x122   : > { %v651_v12 = vadd.f32 %v649_v4, %v642_v13  ;;  %v877_v58 = vadd.f32 %v2731_v39, %v872_v32 }
 0x124   : > { %v657_v5 = vpop.permute.xlu1 %656 }
 0x125   : > { %v659_v8 = vadd.f32 %v657_v5, %v651_v12  ;;  %v391_v57 = vpop.permute.xlu0 %390 }
 0x126   : > { %v393_v60 = vadd.f32 %v391_v57, %v384_v56 }
 0x127   : > { %v664_v33 = vadd.f32 %v663_v17, %v659_v8 }
 0x128   : > { %v1141_v16 = vpop.permute.xlu1 %1140  ;;  %v400_v45 = vadd.f32 %v399_v26, %v393_v60 }
 0x129   : > { %v1143_v7 = vadd.f32 %v1141_v16, %v1135_v14  ;;  %v883_v19 = vpop.permute.xlu0 %882 }
 0x12a   : > { %v885_v55 = vadd.f32 %v883_v19, %v877_v58  ;;  %v407_v30 = vadd.f32 %v2732_v28, %v400_v45 }
 0x12b   : > { %v1148_v41 = vadd.f32 %v1147_v46, %v1143_v7 }
 0x12c   : > { %v1155_v48 = vpop.permute.xlu1 %1154  ;;  %v890_v0 = vadd.f32 %v889_v54, %v885_v55 }
 0x12d   : > { %v671_v36 = vpop.permute.xlu0 %670  ;;  %v1157_v49 = vadd.f32 %v1155_v48, %v1148_v41 }
 0x12e   : > { %v673_v21 = vadd.f32 %v671_v36, %v664_v33  ;;  %v895_v20 = vadd.f32 %v2733_v62, %v890_v0 }
 0x130   : > { %v679_v11 = vpop.permute.xlu1 %678 }
 0x131   : > { %v681_v34 = vadd.f32 %v679_v11, %v673_v21  ;;  %v414_v6 = vpop.permute.xlu0 %413 }
 0x132   : > { %v416_v37 = vadd.f32 %v414_v6, %v407_v30 }
 0x133   : > { %v686_v35 = vadd.f32 %v685_v22, %v681_v34 }
 0x134   : > { %v1163_v44 = vpop.permute.xlu1 %1162  ;;  %v422_v25 = vadd.f32 %v421_v1, %v416_v37 }
 0x135   : > { %v1165_v13 = vadd.f32 %v1163_v44, %v1157_v49  ;;  %v901_v3 = vpop.permute.xlu0 %900 }
 0x136   : > { %v903_v38 = vadd.f32 %v901_v3, %v895_v20  ;;  %v428_v40 = vadd.f32 %v2734_v24, %v422_v25 }
 0x137   : > { %v1170_v50 = vadd.f32 %v1169_v61, %v1165_v13 }
 0x138   : > { %v1177_v52 = vpop.permute.xlu1 %1176  ;;  %v908_v53 = vadd.f32 %v907_v63, %v903_v38 }
 0x139   : > { %v693_v31 = vpop.permute.xlu0 %692  ;;  %v1179_v29 = vadd.f32 %v1177_v52, %v1170_v50 }
 0x13a   : > { %v695_v15 = vadd.f32 %v693_v31, %v686_v35  ;;  %v913_v2 = vadd.f32 %v2735_v47, %v908_v53 }
 0x13c   : > { %v701_v56 = vpop.permute.xlu1 %700 }
 0x13d   : > { %v703_v23 = vadd.f32 %v701_v56, %v695_v15  ;;  %v435_v43 = vpop.permute.xlu0 %434 }
 0x13e   : > { %v437_v32 = vadd.f32 %v435_v43, %v428_v40 }
 0x13f   : > { %1348 = vst.msk [vmem:[%s164_s6 + $0x8] sm:$0xff] %vm438_vm0, %v703_v23 }
 0x140   : > { %v1185_v4 = vpop.permute.xlu1 %1184  ;;  %439 = vst.msk [vmem:[%s164_s6] sm:$0xff] %vm438_vm0, %v437_v32 }
 0x141   : > { %v1187_v9 = vadd.f32 %v1185_v4, %v1179_v29  ;;  %v919_v12 = vpop.permute.xlu0 %918 }
 0x142   : > { %v921_v39 = vadd.f32 %v919_v12, %v913_v2 }
 0x143   : > { %1396 = vst.msk [vmem:[%s164_s6 + $0x18] sm:$0xff] %vm438_vm0, %v1187_v9 }
 0x144   : > { %1372 = vst.msk [vmem:[%s164_s6 + $0x10] sm:$0xff] %vm438_vm0, %v921_v39 }
 0x145   : > { %1522 = shalt.err (!%p1519_p2)
}
 0x146   : > { %s1523_s1 = scalar_lea.hbm %s2629_s19, 512  ;;  %s1527_s9 = scalar_lea.hbm %s2689_s2, 2048 }
 0x147   : > { %p1524_p4 = scmp.ne.s32.totalorder %s2629_s19, %s1523_s1  ;;  %p1528_p7 = scmp.lt.u32.totalorder %s2629_s19, %s2689_s2 }
 0x148   : > { %p1529_p9 = scmp.lt.u32.totalorder %s1527_s9, %s1523_s1  ;;  %p1531_p8 = scmp.lt.u32.totalorder %s1523_s1, %s2629_s19 }
 0x149   : > { %p1525_p5 = pnand %p1524_p4, %p1681_p3 }
 0x14a   : > { %p1530_p11 = por %p1529_p9, %p1528_p7 }
 0x14b   : > { %p1526_p6 = pneg %p1525_p5 }
 0x14c   : > { %p1532_p10 = por %p1531_p8, %p1530_p11 }
 0x14e   : > { %p1533_p12 = pnand %p1532_p10, %p1526_p6 }
 0x150   : > { %1536 = shalt.err (!%p1533_p12)
}
 0x151   : > { %s1612_s8 = smov 128   ;;  %s1613_s3 = smov 8  }
 0x152   : > { %1408 = dma.vmem_to_hbm [thread:$0]  (%p1681_p3), %s2624_s27, 512, %s2629_s19, %s2635_s28, %s1612_s8, %s1612_s8, %s1613_s3  }
 0x153 PF: > { %s2736_s30 = sld [smem:[#allocation8_spill]]  ;;  %s2737_s7 = sld [smem:[#allocation14_spill]] }
 0x154   : > { %p1420_p13 = scmp.ge.s32.totalorder %s1607_s16, 2 }
 0x159   : > { %s1221_s0 = sand.u32 1, %s2736_s30   ;;  %p2738_p0 = scmp.ne.s32.totalorder %s2737_s7, 0 }
 0x15a   : > { %s1222_s21 = scalar_lea.sflag [#allocation3], %s1221_s0 }
 0x15b   : > { %p1415_p1 = pnand %p1420_p13, %p2738_p0 }
 0x15d   : > { %1574 = dma.done.wait (!%p1415_p1), %s1222_s21, 512  }
 0x15e   : > { %1576 = vsyncadd (!%p1415_p1), %s1222_s21, 4294966784  ;;  %s16_s16 = sadd.s32 1, %s1607_s16   ;;  %s2739_s14 = sld [smem:[#allocation9_spill]] }
 0x15f   : > { %p13_p2 = scmp.ge.s32.totalorder %s16_s16, 6   ;;  %s2740_s11 = sld [smem:[#allocation15_spill]] }
 0x160   : > { %s2741_s12 = sld [smem:[#allocation10_spill]]  ;;  %s2742_s13 = sld [smem:[#allocation11_spill]] }
 0x161   : > { %s2743_s23 = sld [smem:[#allocation12_spill]]  ;;  %s2744_s15 = sld [smem:[#allocation13_spill]] }
 0x162   : > { %s2745_s9 = smov %s1583_s10  ;;  %15 = sbr.rel (!%p13_p2) target bundleno = 9 (0x9), region = 86 }
 0x164   : > { %s2746_s10 = smov %s2739_s14 }
 0x167   : > { %s2747_s14 = smov %s2743_s23 }
 0x169   :  { %1227 = vsyncpa [#allocation3], 1 }
 0x16a   :  { %1229 = vsyncpa [#allocation3 + $0x1], 1 }
 0x16b   :  { %1230 = vsyncpa [#allocation4], 1 }
 0x16c   :  { %1232 = vsyncpa [#allocation4 + $0x1], 1 }

</bundles_post_ra>
